<compile_context>
chip_gen: v7x
topology: tpu7x:2x2x1
jax: 0.10.0
libtpu: 0.0.40
codegen_flags: <defaults>
</compile_context>

<pallas_src>
import functools

import numpy as np
import jax
import jax.numpy as jnp
from jax import lax
from jax.experimental import pallas as pl
from jax.experimental.pallas import tpu as pltpu


def outblock_kernel(w1_ref, b1_ref, w2_ref, b2_ref, x_ref, o_ref, *, W):
    # w1_ref: (Cmid*Cin*9,) SMEM  - BN-folded conv1 weights, OIHW-flattened
    # b1_ref: (Cmid,)       SMEM  - BN-folded conv1 bias
    # w2_ref: (Cmid*9,)     SMEM  - conv2 weights, OIHW-flattened (O=1)
    # b2_ref: (1,)          SMEM  - conv2 bias
    # x_ref : (Cin, N, H*W) VMEM  - lane-dense: spatial plane on lanes
    # o_ref : (N, H*W)      VMEM
    Cin, N, HW = x_ref.shape
    Cmid = b1_ref.shape[0]

    # 128-lane-aligned zero pad on both sides of the flat plane (>= W+1).
    PAD = -(-(W + 1) // 128) * 128

    # ---- hoisted scalar loads (one sld each, schedulable early) -----------
    w1_s = [w1_ref[i] for i in range(Cmid * Cin * 9)]
    w2_s = [w2_ref[i] for i in range(Cmid * 9)]
    b1_s = [b1_ref[i] for i in range(Cmid)]
    b2_s = b2_ref[0]

    zpad = jnp.zeros((N, PAD), jnp.float32)

    # Column masks that undo the row-wrap of the flat row-major layout:
    # sx=-1 taps must never see input column W-1, sx=+1 taps never column 0.
    idx = lax.broadcasted_iota(jnp.int32, (N, HW), 1)
    if W & (W - 1) == 0:
        col = idx & (W - 1)
    else:
        col = idx % W
    keep_m = col != (W - 1)   # keep-mask used for sx == -1 taps
    keep_p = col != 0         # keep-mask used for sx == +1 taps

    taps = [(sy, sx) for sy in (-1, 0, 1) for sx in (-1, 0, 1)]

    def padded_variants(plane):
        # plane: (N, HW) f32 -> {sx: zero-extended, column-masked flat plane}
        return {
            -1: jnp.concatenate([zpad, jnp.where(keep_m, plane, 0.0), zpad], axis=1),
            0: jnp.concatenate([zpad, plane, zpad], axis=1),
            1: jnp.concatenate([zpad, jnp.where(keep_p, plane, 0.0), zpad], axis=1),
        }

    def tap_view(variants, sy, sx):
        off = PAD + sy * W + sx
        return variants[sx][:, off:off + HW]

    # ---- conv1 (+ folded BN): each shifted input view built once and shared
    # across all Cmid output channels ----------------------------------------
    acc1 = [jnp.zeros((N, HW), jnp.float32) + b1_s[co] for co in range(Cmid)]
    for ci in range(Cin):
        variants = padded_variants(x_ref[ci])
        for (sy, sx) in taps:
            v = tap_view(variants, sy, sx)
            ky, kx = sy + 1, sx + 1
            for co in range(Cmid):
                w = w1_s[((co * Cin + ci) * 3 + ky) * 3 + kx]
                acc1[co] = acc1[co] + w * v

    # ---- ReLU + conv2, fused per mid channel (no VMEM scratch round trip) --
    acc2 = jnp.zeros((N, HW), jnp.float32) + b2_s
    for co in range(Cmid):
        h = jnp.maximum(acc1[co], 0.0)
        variants = padded_variants(h)
        for (sy, sx) in taps:
            w = w2_s[(co * 3 + (sy + 1)) * 3 + (sx + 1)]
            acc2 = acc2 + w * tap_view(variants, sy, sx)

    o_ref[...] = acc2.astype(o_ref.dtype)


def outblock_pallas(x, w1_eff, b1_eff, w2, b2):
    """x: (N, Cin, H, W) f32 -> (N, 1, H, W) f32 (conv1 + BN(eval) + ReLU + conv2)."""
    N, Cin, H, W = x.shape
    Cmid = w1_eff.shape[0]
    HW = H * W

    # Lane-dense repack (tiny, ~8 KB): spatial plane flattened onto the lane
    # axis, batch on sublanes, channel outermost. No spatial zero-pad pass.
    x_packed = jnp.transpose(x, (1, 0, 2, 3)).reshape(Cin, N, HW).astype(jnp.float32)

    w1_flat = w1_eff.reshape(-1).astype(jnp.float32)   # (Cmid*Cin*9,)
    w2_flat = w2.reshape(-1).astype(jnp.float32)       # (Cmid*9,)
    b1_flat = b1_eff.astype(jnp.float32)               # (Cmid,)
    b2_flat = b2.astype(jnp.float32)                   # (1,)

    smem = pl.BlockSpec(memory_space=pltpu.MemorySpace.SMEM)
    vmem = pl.BlockSpec(memory_space=pltpu.MemorySpace.VMEM)

    out_flat = pl.pallas_call(
        functools.partial(outblock_kernel, W=W),
        out_shape=jax.ShapeDtypeStruct((N, HW), jnp.float32),
        in_specs=[smem, smem, smem, smem, vmem],
        out_specs=vmem,
    )(w1_flat, b1_flat, w2_flat, b2_flat, x_packed)

    return out_flat.reshape(N, 1, H, W)


def ref_forward(x, w1, b1, gamma, beta, rmean, rvar, w2, b2, eps=1e-5):
    """Pure-JAX reference (NCHW), BatchNorm in eval mode."""
    dn = ("NCHW", "OIHW", "NCHW")
    y = lax.conv_general_dilated(x, w1, (1, 1), "SAME", dimension_numbers=dn)
    y = y + b1[None, :, None, None]
    y = (gamma[None, :, None, None] * (y - rmean[None, :, None, None])
         / jnp.sqrt(rvar[None, :, None, None] + eps) + beta[None, :, None, None])
    y = jnp.maximum(y, 0.0)
    z = lax.conv_general_dilated(y, w2, (1, 1), "SAME", dimension_numbers=dn)
    return z + b2[None, :, None, None]


if __name__ == "__main__":
    # Small shapes consistent with the module: N=2, in_channel=4, 16x16 spatial.
    N, Cin, H, W = 2, 4, 16, 16
    Cmid = Cin // 2
    eps = 1e-5

    key = jax.random.PRNGKey(0)
    ks = jax.random.split(key, 9)
    x = jax.random.normal(ks[0], (N, Cin, H, W), jnp.float32)

    # Deterministic parameter init (shapes from nn.Conv2d / nn.BatchNorm2d).
    w1 = 0.1 * jax.random.normal(ks[1], (Cmid, Cin, 3, 3), jnp.float32)   # conv1 weight (OIHW)
    b1 = 0.1 * jax.random.normal(ks[2], (Cmid,), jnp.float32)             # conv1 bias
    gamma = 1.0 + 0.1 * jax.random.normal(ks[3], (Cmid,), jnp.float32)    # BN weight
    beta = 0.1 * jax.random.normal(ks[4], (Cmid,), jnp.float32)           # BN bias
    rmean = 0.1 * jax.random.normal(ks[5], (Cmid,), jnp.float32)          # BN running_mean
    rvar = 0.5 + jnp.abs(jax.random.normal(ks[6], (Cmid,), jnp.float32))  # BN running_var
    w2 = 0.1 * jax.random.normal(ks[7], (1, Cmid, 3, 3), jnp.float32)     # conv2 weight
    b2 = 0.1 * jax.random.normal(ks[8], (1,), jnp.float32)                # conv2 bias

    # Fold eval-mode BatchNorm into conv1.
    scale = gamma / jnp.sqrt(rvar + eps)                                   # (Cmid,)
    w1_eff = w1 * scale[:, None, None, None]
    b1_eff = (b1 - rmean) * scale + beta

    out = outblock_pallas(x, w1_eff, b1_eff, w2, b2)
    out = jax.block_until_ready(out)

    ref = jax.block_until_ready(
        ref_forward(x, w1, b1, gamma, beta, rmean, rvar, w2, b2, eps))

    assert out.shape == (N, 1, H, W), out.shape
    np.testing.assert_allclose(np.asarray(out), np.asarray(ref), rtol=1e-4, atol=1e-4)
    print("KERNEL_OK")
</pallas_src>

<mosaic_0001>
module attributes {stable_mosaic.version = 11 : i64} {
  func.func @outblock_kernel(%arg0: memref<72xf32, #tpu.memory_space<smem>>, %arg1: memref<2xf32, #tpu.memory_space<smem>>, %arg2: memref<18xf32, #tpu.memory_space<smem>>, %arg3: memref<1xf32, #tpu.memory_space<smem>>, %arg4: memref<4x2x256xf32, #tpu.memory_space<vmem>>, %arg5: memref<2x256xf32, #tpu.memory_space<vmem>>) attributes {dimension_semantics = [], scalar_prefetch = 0 : i64, scratch_operands = 0 : i64, tpu.core_type = #tpu.core_type<tc>} {
    %c0 = arith.constant 0 : index
    %0 = memref.load %arg0[%c0] : memref<72xf32, #tpu.memory_space<smem>>
    %c1 = arith.constant 1 : index
    %1 = memref.load %arg0[%c1] : memref<72xf32, #tpu.memory_space<smem>>
    %c2 = arith.constant 2 : index
    %2 = memref.load %arg0[%c2] : memref<72xf32, #tpu.memory_space<smem>>
    %c3 = arith.constant 3 : index
    %3 = memref.load %arg0[%c3] : memref<72xf32, #tpu.memory_space<smem>>
    %c4 = arith.constant 4 : index
    %4 = memref.load %arg0[%c4] : memref<72xf32, #tpu.memory_space<smem>>
    %c5 = arith.constant 5 : index
    %5 = memref.load %arg0[%c5] : memref<72xf32, #tpu.memory_space<smem>>
    %c6 = arith.constant 6 : index
    %6 = memref.load %arg0[%c6] : memref<72xf32, #tpu.memory_space<smem>>
    %c7 = arith.constant 7 : index
    %7 = memref.load %arg0[%c7] : memref<72xf32, #tpu.memory_space<smem>>
    %c8 = arith.constant 8 : index
    %8 = memref.load %arg0[%c8] : memref<72xf32, #tpu.memory_space<smem>>
    %c9 = arith.constant 9 : index
    %9 = memref.load %arg0[%c9] : memref<72xf32, #tpu.memory_space<smem>>
    %c10 = arith.constant 10 : index
    %10 = memref.load %arg0[%c10] : memref<72xf32, #tpu.memory_space<smem>>
    %c11 = arith.constant 11 : index
    %11 = memref.load %arg0[%c11] : memref<72xf32, #tpu.memory_space<smem>>
    %c12 = arith.constant 12 : index
    %12 = memref.load %arg0[%c12] : memref<72xf32, #tpu.memory_space<smem>>
    %c13 = arith.constant 13 : index
    %13 = memref.load %arg0[%c13] : memref<72xf32, #tpu.memory_space<smem>>
    %c14 = arith.constant 14 : index
    %14 = memref.load %arg0[%c14] : memref<72xf32, #tpu.memory_space<smem>>
    %c15 = arith.constant 15 : index
    %15 = memref.load %arg0[%c15] : memref<72xf32, #tpu.memory_space<smem>>
    %c16 = arith.constant 16 : index
    %16 = memref.load %arg0[%c16] : memref<72xf32, #tpu.memory_space<smem>>
    %c17 = arith.constant 17 : index
    %17 = memref.load %arg0[%c17] : memref<72xf32, #tpu.memory_space<smem>>
    %c18 = arith.constant 18 : index
    %18 = memref.load %arg0[%c18] : memref<72xf32, #tpu.memory_space<smem>>
    %c19 = arith.constant 19 : index
    %19 = memref.load %arg0[%c19] : memref<72xf32, #tpu.memory_space<smem>>
    %c20 = arith.constant 20 : index
    %20 = memref.load %arg0[%c20] : memref<72xf32, #tpu.memory_space<smem>>
    %c21 = arith.constant 21 : index
    %21 = memref.load %arg0[%c21] : memref<72xf32, #tpu.memory_space<smem>>
    %c22 = arith.constant 22 : index
    %22 = memref.load %arg0[%c22] : memref<72xf32, #tpu.memory_space<smem>>
    %c23 = arith.constant 23 : index
    %23 = memref.load %arg0[%c23] : memref<72xf32, #tpu.memory_space<smem>>
    %c24 = arith.constant 24 : index
    %24 = memref.load %arg0[%c24] : memref<72xf32, #tpu.memory_space<smem>>
    %c25 = arith.constant 25 : index
    %25 = memref.load %arg0[%c25] : memref<72xf32, #tpu.memory_space<smem>>
    %c26 = arith.constant 26 : index
    %26 = memref.load %arg0[%c26] : memref<72xf32, #tpu.memory_space<smem>>
    %c27 = arith.constant 27 : index
    %27 = memref.load %arg0[%c27] : memref<72xf32, #tpu.memory_space<smem>>
    %c28 = arith.constant 28 : index
    %28 = memref.load %arg0[%c28] : memref<72xf32, #tpu.memory_space<smem>>
    %c29 = arith.constant 29 : index
    %29 = memref.load %arg0[%c29] : memref<72xf32, #tpu.memory_space<smem>>
    %c30 = arith.constant 30 : index
    %30 = memref.load %arg0[%c30] : memref<72xf32, #tpu.memory_space<smem>>
    %c31 = arith.constant 31 : index
    %31 = memref.load %arg0[%c31] : memref<72xf32, #tpu.memory_space<smem>>
    %c32 = arith.constant 32 : index
    %32 = memref.load %arg0[%c32] : memref<72xf32, #tpu.memory_space<smem>>
    %c33 = arith.constant 33 : index
    %33 = memref.load %arg0[%c33] : memref<72xf32, #tpu.memory_space<smem>>
    %c34 = arith.constant 34 : index
    %34 = memref.load %arg0[%c34] : memref<72xf32, #tpu.memory_space<smem>>
    %c35 = arith.constant 35 : index
    %35 = memref.load %arg0[%c35] : memref<72xf32, #tpu.memory_space<smem>>
    %c36 = arith.constant 36 : index
    %36 = memref.load %arg0[%c36] : memref<72xf32, #tpu.memory_space<smem>>
    %c37 = arith.constant 37 : index
    %37 = memref.load %arg0[%c37] : memref<72xf32, #tpu.memory_space<smem>>
    %c38 = arith.constant 38 : index
    %38 = memref.load %arg0[%c38] : memref<72xf32, #tpu.memory_space<smem>>
    %c39 = arith.constant 39 : index
    %39 = memref.load %arg0[%c39] : memref<72xf32, #tpu.memory_space<smem>>
    %c40 = arith.constant 40 : index
    %40 = memref.load %arg0[%c40] : memref<72xf32, #tpu.memory_space<smem>>
    %c41 = arith.constant 41 : index
    %41 = memref.load %arg0[%c41] : memref<72xf32, #tpu.memory_space<smem>>
    %c42 = arith.constant 42 : index
    %42 = memref.load %arg0[%c42] : memref<72xf32, #tpu.memory_space<smem>>
    %c43 = arith.constant 43 : index
    %43 = memref.load %arg0[%c43] : memref<72xf32, #tpu.memory_space<smem>>
    %c44 = arith.constant 44 : index
    %44 = memref.load %arg0[%c44] : memref<72xf32, #tpu.memory_space<smem>>
    %c45 = arith.constant 45 : index
    %45 = memref.load %arg0[%c45] : memref<72xf32, #tpu.memory_space<smem>>
    %c46 = arith.constant 46 : index
    %46 = memref.load %arg0[%c46] : memref<72xf32, #tpu.memory_space<smem>>
    %c47 = arith.constant 47 : index
    %47 = memref.load %arg0[%c47] : memref<72xf32, #tpu.memory_space<smem>>
    %c48 = arith.constant 48 : index
    %48 = memref.load %arg0[%c48] : memref<72xf32, #tpu.memory_space<smem>>
    %c49 = arith.constant 49 : index
    %49 = memref.load %arg0[%c49] : memref<72xf32, #tpu.memory_space<smem>>
    %c50 = arith.constant 50 : index
    %50 = memref.load %arg0[%c50] : memref<72xf32, #tpu.memory_space<smem>>
    %c51 = arith.constant 51 : index
    %51 = memref.load %arg0[%c51] : memref<72xf32, #tpu.memory_space<smem>>
    %c52 = arith.constant 52 : index
    %52 = memref.load %arg0[%c52] : memref<72xf32, #tpu.memory_space<smem>>
    %c53 = arith.constant 53 : index
    %53 = memref.load %arg0[%c53] : memref<72xf32, #tpu.memory_space<smem>>
    %c54 = arith.constant 54 : index
    %54 = memref.load %arg0[%c54] : memref<72xf32, #tpu.memory_space<smem>>
    %c55 = arith.constant 55 : index
    %55 = memref.load %arg0[%c55] : memref<72xf32, #tpu.memory_space<smem>>
    %c56 = arith.constant 56 : index
    %56 = memref.load %arg0[%c56] : memref<72xf32, #tpu.memory_space<smem>>
    %c57 = arith.constant 57 : index
    %57 = memref.load %arg0[%c57] : memref<72xf32, #tpu.memory_space<smem>>
    %c58 = arith.constant 58 : index
    %58 = memref.load %arg0[%c58] : memref<72xf32, #tpu.memory_space<smem>>
    %c59 = arith.constant 59 : index
    %59 = memref.load %arg0[%c59] : memref<72xf32, #tpu.memory_space<smem>>
    %c60 = arith.constant 60 : index
    %60 = memref.load %arg0[%c60] : memref<72xf32, #tpu.memory_space<smem>>
    %c61 = arith.constant 61 : index
    %61 = memref.load %arg0[%c61] : memref<72xf32, #tpu.memory_space<smem>>
    %c62 = arith.constant 62 : index
    %62 = memref.load %arg0[%c62] : memref<72xf32, #tpu.memory_space<smem>>
    %c63 = arith.constant 63 : index
    %63 = memref.load %arg0[%c63] : memref<72xf32, #tpu.memory_space<smem>>
    %c64 = arith.constant 64 : index
    %64 = memref.load %arg0[%c64] : memref<72xf32, #tpu.memory_space<smem>>
    %c65 = arith.constant 65 : index
    %65 = memref.load %arg0[%c65] : memref<72xf32, #tpu.memory_space<smem>>
    %c66 = arith.constant 66 : index
    %66 = memref.load %arg0[%c66] : memref<72xf32, #tpu.memory_space<smem>>
    %c67 = arith.constant 67 : index
    %67 = memref.load %arg0[%c67] : memref<72xf32, #tpu.memory_space<smem>>
    %c68 = arith.constant 68 : index
    %68 = memref.load %arg0[%c68] : memref<72xf32, #tpu.memory_space<smem>>
    %c69 = arith.constant 69 : index
    %69 = memref.load %arg0[%c69] : memref<72xf32, #tpu.memory_space<smem>>
    %c70 = arith.constant 70 : index
    %70 = memref.load %arg0[%c70] : memref<72xf32, #tpu.memory_space<smem>>
    %c71 = arith.constant 71 : index
    %71 = memref.load %arg0[%c71] : memref<72xf32, #tpu.memory_space<smem>>
    %c0_0 = arith.constant 0 : index
    %72 = memref.load %arg2[%c0_0] : memref<18xf32, #tpu.memory_space<smem>>
    %c1_1 = arith.constant 1 : index
    %73 = memref.load %arg2[%c1_1] : memref<18xf32, #tpu.memory_space<smem>>
    %c2_2 = arith.constant 2 : index
    %74 = memref.load %arg2[%c2_2] : memref<18xf32, #tpu.memory_space<smem>>
    %c3_3 = arith.constant 3 : index
    %75 = memref.load %arg2[%c3_3] : memref<18xf32, #tpu.memory_space<smem>>
    %c4_4 = arith.constant 4 : index
    %76 = memref.load %arg2[%c4_4] : memref<18xf32, #tpu.memory_space<smem>>
    %c5_5 = arith.constant 5 : index
    %77 = memref.load %arg2[%c5_5] : memref<18xf32, #tpu.memory_space<smem>>
    %c6_6 = arith.constant 6 : index
    %78 = memref.load %arg2[%c6_6] : memref<18xf32, #tpu.memory_space<smem>>
    %c7_7 = arith.constant 7 : index
    %79 = memref.load %arg2[%c7_7] : memref<18xf32, #tpu.memory_space<smem>>
    %c8_8 = arith.constant 8 : index
    %80 = memref.load %arg2[%c8_8] : memref<18xf32, #tpu.memory_space<smem>>
    %c9_9 = arith.constant 9 : index
    %81 = memref.load %arg2[%c9_9] : memref<18xf32, #tpu.memory_space<smem>>
    %c10_10 = arith.constant 10 : index
    %82 = memref.load %arg2[%c10_10] : memref<18xf32, #tpu.memory_space<smem>>
    %c11_11 = arith.constant 11 : index
    %83 = memref.load %arg2[%c11_11] : memref<18xf32, #tpu.memory_space<smem>>
    %c12_12 = arith.constant 12 : index
    %84 = memref.load %arg2[%c12_12] : memref<18xf32, #tpu.memory_space<smem>>
    %c13_13 = arith.constant 13 : index
    %85 = memref.load %arg2[%c13_13] : memref<18xf32, #tpu.memory_space<smem>>
    %c14_14 = arith.constant 14 : index
    %86 = memref.load %arg2[%c14_14] : memref<18xf32, #tpu.memory_space<smem>>
    %c15_15 = arith.constant 15 : index
    %87 = memref.load %arg2[%c15_15] : memref<18xf32, #tpu.memory_space<smem>>
    %c16_16 = arith.constant 16 : index
    %88 = memref.load %arg2[%c16_16] : memref<18xf32, #tpu.memory_space<smem>>
    %c17_17 = arith.constant 17 : index
    %89 = memref.load %arg2[%c17_17] : memref<18xf32, #tpu.memory_space<smem>>
    %c0_18 = arith.constant 0 : index
    %90 = memref.load %arg1[%c0_18] : memref<2xf32, #tpu.memory_space<smem>>
    %c1_19 = arith.constant 1 : index
    %91 = memref.load %arg1[%c1_19] : memref<2xf32, #tpu.memory_space<smem>>
    %c0_20 = arith.constant 0 : index
    %92 = memref.load %arg3[%c0_20] : memref<1xf32, #tpu.memory_space<smem>>
    %cst = arith.constant 0.000000e+00 : f32
    %93 = vector.broadcast %cst : f32 to vector<2x128xf32>
    %94 = tpu.iota {dimensions = array<i32: 1>} : vector<2x256xi32>
    %c15_i32 = arith.constant 15 : i32
    %95 = vector.broadcast %c15_i32 : i32 to vector<2x256xi32>
    %96 = arith.andi %94, %95 : vector<2x256xi32>
    %c15_i32_21 = arith.constant 15 : i32
    %97 = vector.broadcast %c15_i32_21 : i32 to vector<2x256xi32>
    %98 = arith.cmpi ne, %96, %97 : vector<2x256xi32>
    %c0_i32 = arith.constant 0 : i32
    %99 = vector.broadcast %c0_i32 : i32 to vector<2x256xi32>
    %100 = arith.cmpi ne, %96, %99 : vector<2x256xi32>
    %cst_22 = arith.constant 0.000000e+00 : f32
    %101 = vector.broadcast %cst_22 : f32 to vector<2x256xf32>
    %102 = vector.broadcast %90 : f32 to vector<2x256xf32>
    %103 = arith.addf %101, %102 : vector<2x256xf32>
    %cst_23 = arith.constant 0.000000e+00 : f32
    %104 = vector.broadcast %cst_23 : f32 to vector<2x256xf32>
    %105 = vector.broadcast %91 : f32 to vector<2x256xf32>
    %106 = arith.addf %104, %105 : vector<2x256xf32>
    %c0_24 = arith.constant 0 : index
    %c0_25 = arith.constant 0 : index
    %c0_26 = arith.constant 0 : index
    %107 = vector.load %arg4[%c0_24, %c0_25, %c0_26] : memref<4x2x256xf32, #tpu.memory_space<vmem>>, vector<1x2x256xf32>
    %108 = vector.shape_cast %107 : vector<1x2x256xf32> to vector<2x256xf32>
    %cst_27 = arith.constant 0.000000e+00 : f32
    %109 = vector.broadcast %cst_27 : f32 to vector<2x256xf32>
    %110 = arith.select %98, %108, %109 : vector<2x256xi1>, vector<2x256xf32>
    %111 = tpu.concatenate %93, %110, %93 in 1 : vector<2x128xf32>, vector<2x256xf32>, vector<2x128xf32> -> vector<2x512xf32>
    %112 = tpu.concatenate %93, %108, %93 in 1 : vector<2x128xf32>, vector<2x256xf32>, vector<2x128xf32> -> vector<2x512xf32>
    %cst_28 = arith.constant 0.000000e+00 : f32
    %113 = vector.broadcast %cst_28 : f32 to vector<2x256xf32>
    %114 = arith.select %100, %108, %113 : vector<2x256xi1>, vector<2x256xf32>
    %115 = tpu.concatenate %93, %114, %93 in 1 : vector<2x128xf32>, vector<2x256xf32>, vector<2x128xf32> -> vector<2x512xf32>
    %116 = vector.extract_strided_slice %111 {offsets = [0, 111], sizes = [2, 256], strides = [1, 1]} : vector<2x512xf32> to vector<2x256xf32>
    %117 = vector.broadcast %0 : f32 to vector<2x256xf32>
    %118 = arith.mulf %117, %116 : vector<2x256xf32>
    %119 = arith.addf %103, %118 : vector<2x256xf32>
    %120 = vector.broadcast %36 : f32 to vector<2x256xf32>
    %121 = arith.mulf %120, %116 : vector<2x256xf32>
    %122 = arith.addf %106, %121 : vector<2x256xf32>
    %123 = vector.extract_strided_slice %112 {offsets = [0, 112], sizes = [2, 256], strides = [1, 1]} : vector<2x512xf32> to vector<2x256xf32>
    %124 = vector.broadcast %1 : f32 to vector<2x256xf32>
    %125 = arith.mulf %124, %123 : vector<2x256xf32>
    %126 = arith.addf %119, %125 : vector<2x256xf32>
    %127 = vector.broadcast %37 : f32 to vector<2x256xf32>
    %128 = arith.mulf %127, %123 : vector<2x256xf32>
    %129 = arith.addf %122, %128 : vector<2x256xf32>
    %130 = vector.extract_strided_slice %115 {offsets = [0, 113], sizes = [2, 256], strides = [1, 1]} : vector<2x512xf32> to vector<2x256xf32>
    %131 = vector.broadcast %2 : f32 to vector<2x256xf32>
    %132 = arith.mulf %131, %130 : vector<2x256xf32>
    %133 = arith.addf %126, %132 : vector<2x256xf32>
    %134 = vector.broadcast %38 : f32 to vector<2x256xf32>
    %135 = arith.mulf %134, %130 : vector<2x256xf32>
    %136 = arith.addf %129, %135 : vector<2x256xf32>
    %137 = vector.extract_strided_slice %111 {offsets = [0, 127], sizes = [2, 256], strides = [1, 1]} : vector<2x512xf32> to vector<2x256xf32>
    %138 = vector.broadcast %3 : f32 to vector<2x256xf32>
    %139 = arith.mulf %138, %137 : vector<2x256xf32>
    %140 = arith.addf %133, %139 : vector<2x256xf32>
    %141 = vector.broadcast %39 : f32 to vector<2x256xf32>
    %142 = arith.mulf %141, %137 : vector<2x256xf32>
    %143 = arith.addf %136, %142 : vector<2x256xf32>
    %144 = vector.extract_strided_slice %112 {offsets = [0, 128], sizes = [2, 256], strides = [1, 1]} : vector<2x512xf32> to vector<2x256xf32>
    %145 = vector.broadcast %4 : f32 to vector<2x256xf32>
    %146 = arith.mulf %145, %144 : vector<2x256xf32>
    %147 = arith.addf %140, %146 : vector<2x256xf32>
    %148 = vector.broadcast %40 : f32 to vector<2x256xf32>
    %149 = arith.mulf %148, %144 : vector<2x256xf32>
    %150 = arith.addf %143, %149 : vector<2x256xf32>
    %151 = vector.extract_strided_slice %115 {offsets = [0, 129], sizes = [2, 256], strides = [1, 1]} : vector<2x512xf32> to vector<2x256xf32>
    %152 = vector.broadcast %5 : f32 to vector<2x256xf32>
    %153 = arith.mulf %152, %151 : vector<2x256xf32>
    %154 = arith.addf %147, %153 : vector<2x256xf32>
    %155 = vector.broadcast %41 : f32 to vector<2x256xf32>
    %156 = arith.mulf %155, %151 : vector<2x256xf32>
    %157 = arith.addf %150, %156 : vector<2x256xf32>
    %158 = vector.extract_strided_slice %111 {offsets = [0, 143], sizes = [2, 256], strides = [1, 1]} : vector<2x512xf32> to vector<2x256xf32>
    %159 = vector.broadcast %6 : f32 to vector<2x256xf32>
    %160 = arith.mulf %159, %158 : vector<2x256xf32>
    %161 = arith.addf %154, %160 : vector<2x256xf32>
    %162 = vector.broadcast %42 : f32 to vector<2x256xf32>
    %163 = arith.mulf %162, %158 : vector<2x256xf32>
    %164 = arith.addf %157, %163 : vector<2x256xf32>
    %165 = vector.extract_strided_slice %112 {offsets = [0, 144], sizes = [2, 256], strides = [1, 1]} : vector<2x512xf32> to vector<2x256xf32>
    %166 = vector.broadcast %7 : f32 to vector<2x256xf32>
    %167 = arith.mulf %166, %165 : vector<2x256xf32>
    %168 = arith.addf %161, %167 : vector<2x256xf32>
    %169 = vector.broadcast %43 : f32 to vector<2x256xf32>
    %170 = arith.mulf %169, %165 : vector<2x256xf32>
    %171 = arith.addf %164, %170 : vector<2x256xf32>
    %172 = vector.extract_strided_slice %115 {offsets = [0, 145], sizes = [2, 256], strides = [1, 1]} : vector<2x512xf32> to vector<2x256xf32>
    %173 = vector.broadcast %8 : f32 to vector<2x256xf32>
    %174 = arith.mulf %173, %172 : vector<2x256xf32>
    %175 = arith.addf %168, %174 : vector<2x256xf32>
    %176 = vector.broadcast %44 : f32 to vector<2x256xf32>
    %177 = arith.mulf %176, %172 : vector<2x256xf32>
    %178 = arith.addf %171, %177 : vector<2x256xf32>
    %c1_29 = arith.constant 1 : index
    %c0_30 = arith.constant 0 : index
    %c0_31 = arith.constant 0 : index
    %179 = vector.load %arg4[%c1_29, %c0_30, %c0_31] : memref<4x2x256xf32, #tpu.memory_space<vmem>>, vector<1x2x256xf32>
    %180 = vector.shape_cast %179 : vector<1x2x256xf32> to vector<2x256xf32>
    %cst_32 = arith.constant 0.000000e+00 : f32
    %181 = vector.broadcast %cst_32 : f32 to vector<2x256xf32>
    %182 = arith.select %98, %180, %181 : vector<2x256xi1>, vector<2x256xf32>
    %183 = tpu.concatenate %93, %182, %93 in 1 : vector<2x128xf32>, vector<2x256xf32>, vector<2x128xf32> -> vector<2x512xf32>
    %184 = tpu.concatenate %93, %180, %93 in 1 : vector<2x128xf32>, vector<2x256xf32>, vector<2x128xf32> -> vector<2x512xf32>
    %cst_33 = arith.constant 0.000000e+00 : f32
    %185 = vector.broadcast %cst_33 : f32 to vector<2x256xf32>
    %186 = arith.select %100, %180, %185 : vector<2x256xi1>, vector<2x256xf32>
    %187 = tpu.concatenate %93, %186, %93 in 1 : vector<2x128xf32>, vector<2x256xf32>, vector<2x128xf32> -> vector<2x512xf32>
    %188 = vector.extract_strided_slice %183 {offsets = [0, 111], sizes = [2, 256], strides = [1, 1]} : vector<2x512xf32> to vector<2x256xf32>
    %189 = vector.broadcast %9 : f32 to vector<2x256xf32>
    %190 = arith.mulf %189, %188 : vector<2x256xf32>
    %191 = arith.addf %175, %190 : vector<2x256xf32>
    %192 = vector.broadcast %45 : f32 to vector<2x256xf32>
    %193 = arith.mulf %192, %188 : vector<2x256xf32>
    %194 = arith.addf %178, %193 : vector<2x256xf32>
    %195 = vector.extract_strided_slice %184 {offsets = [0, 112], sizes = [2, 256], strides = [1, 1]} : vector<2x512xf32> to vector<2x256xf32>
    %196 = vector.broadcast %10 : f32 to vector<2x256xf32>
    %197 = arith.mulf %196, %195 : vector<2x256xf32>
    %198 = arith.addf %191, %197 : vector<2x256xf32>
    %199 = vector.broadcast %46 : f32 to vector<2x256xf32>
    %200 = arith.mulf %199, %195 : vector<2x256xf32>
    %201 = arith.addf %194, %200 : vector<2x256xf32>
    %202 = vector.extract_strided_slice %187 {offsets = [0, 113], sizes = [2, 256], strides = [1, 1]} : vector<2x512xf32> to vector<2x256xf32>
    %203 = vector.broadcast %11 : f32 to vector<2x256xf32>
    %204 = arith.mulf %203, %202 : vector<2x256xf32>
    %205 = arith.addf %198, %204 : vector<2x256xf32>
    %206 = vector.broadcast %47 : f32 to vector<2x256xf32>
    %207 = arith.mulf %206, %202 : vector<2x256xf32>
    %208 = arith.addf %201, %207 : vector<2x256xf32>
    %209 = vector.extract_strided_slice %183 {offsets = [0, 127], sizes = [2, 256], strides = [1, 1]} : vector<2x512xf32> to vector<2x256xf32>
    %210 = vector.broadcast %12 : f32 to vector<2x256xf32>
    %211 = arith.mulf %210, %209 : vector<2x256xf32>
    %212 = arith.addf %205, %211 : vector<2x256xf32>
    %213 = vector.broadcast %48 : f32 to vector<2x256xf32>
    %214 = arith.mulf %213, %209 : vector<2x256xf32>
    %215 = arith.addf %208, %214 : vector<2x256xf32>
    %216 = vector.extract_strided_slice %184 {offsets = [0, 128], sizes = [2, 256], strides = [1, 1]} : vector<2x512xf32> to vector<2x256xf32>
    %217 = vector.broadcast %13 : f32 to vector<2x256xf32>
    %218 = arith.mulf %217, %216 : vector<2x256xf32>
    %219 = arith.addf %212, %218 : vector<2x256xf32>
    %220 = vector.broadcast %49 : f32 to vector<2x256xf32>
    %221 = arith.mulf %220, %216 : vector<2x256xf32>
    %222 = arith.addf %215, %221 : vector<2x256xf32>
    %223 = vector.extract_strided_slice %187 {offsets = [0, 129], sizes = [2, 256], strides = [1, 1]} : vector<2x512xf32> to vector<2x256xf32>
    %224 = vector.broadcast %14 : f32 to vector<2x256xf32>
    %225 = arith.mulf %224, %223 : vector<2x256xf32>
    %226 = arith.addf %219, %225 : vector<2x256xf32>
    %227 = vector.broadcast %50 : f32 to vector<2x256xf32>
    %228 = arith.mulf %227, %223 : vector<2x256xf32>
    %229 = arith.addf %222, %228 : vector<2x256xf32>
    %230 = vector.extract_strided_slice %183 {offsets = [0, 143], sizes = [2, 256], strides = [1, 1]} : vector<2x512xf32> to vector<2x256xf32>
    %231 = vector.broadcast %15 : f32 to vector<2x256xf32>
    %232 = arith.mulf %231, %230 : vector<2x256xf32>
    %233 = arith.addf %226, %232 : vector<2x256xf32>
    %234 = vector.broadcast %51 : f32 to vector<2x256xf32>
    %235 = arith.mulf %234, %230 : vector<2x256xf32>
    %236 = arith.addf %229, %235 : vector<2x256xf32>
    %237 = vector.extract_strided_slice %184 {offsets = [0, 144], sizes = [2, 256], strides = [1, 1]} : vector<2x512xf32> to vector<2x256xf32>
    %238 = vector.broadcast %16 : f32 to vector<2x256xf32>
    %239 = arith.mulf %238, %237 : vector<2x256xf32>
    %240 = arith.addf %233, %239 : vector<2x256xf32>
    %241 = vector.broadcast %52 : f32 to vector<2x256xf32>
    %242 = arith.mulf %241, %237 : vector<2x256xf32>
    %243 = arith.addf %236, %242 : vector<2x256xf32>
    %244 = vector.extract_strided_slice %187 {offsets = [0, 145], sizes = [2, 256], strides = [1, 1]} : vector<2x512xf32> to vector<2x256xf32>
    %245 = vector.broadcast %17 : f32 to vector<2x256xf32>
    %246 = arith.mulf %245, %244 : vector<2x256xf32>
    %247 = arith.addf %240, %246 : vector<2x256xf32>
    %248 = vector.broadcast %53 : f32 to vector<2x256xf32>
    %249 = arith.mulf %248, %244 : vector<2x256xf32>
    %250 = arith.addf %243, %249 : vector<2x256xf32>
    %c2_34 = arith.constant 2 : index
    %c0_35 = arith.constant 0 : index
    %c0_36 = arith.constant 0 : index
    %251 = vector.load %arg4[%c2_34, %c0_35, %c0_36] : memref<4x2x256xf32, #tpu.memory_space<vmem>>, vector<1x2x256xf32>
    %252 = vector.shape_cast %251 : vector<1x2x256xf32> to vector<2x256xf32>
    %cst_37 = arith.constant 0.000000e+00 : f32
    %253 = vector.broadcast %cst_37 : f32 to vector<2x256xf32>
    %254 = arith.select %98, %252, %253 : vector<2x256xi1>, vector<2x256xf32>
    %255 = tpu.concatenate %93, %254, %93 in 1 : vector<2x128xf32>, vector<2x256xf32>, vector<2x128xf32> -> vector<2x512xf32>
    %256 = tpu.concatenate %93, %252, %93 in 1 : vector<2x128xf32>, vector<2x256xf32>, vector<2x128xf32> -> vector<2x512xf32>
    %cst_38 = arith.constant 0.000000e+00 : f32
    %257 = vector.broadcast %cst_38 : f32 to vector<2x256xf32>
    %258 = arith.select %100, %252, %257 : vector<2x256xi1>, vector<2x256xf32>
    %259 = tpu.concatenate %93, %258, %93 in 1 : vector<2x128xf32>, vector<2x256xf32>, vector<2x128xf32> -> vector<2x512xf32>
    %260 = vector.extract_strided_slice %255 {offsets = [0, 111], sizes = [2, 256], strides = [1, 1]} : vector<2x512xf32> to vector<2x256xf32>
    %261 = vector.broadcast %18 : f32 to vector<2x256xf32>
    %262 = arith.mulf %261, %260 : vector<2x256xf32>
    %263 = arith.addf %247, %262 : vector<2x256xf32>
    %264 = vector.broadcast %54 : f32 to vector<2x256xf32>
    %265 = arith.mulf %264, %260 : vector<2x256xf32>
    %266 = arith.addf %250, %265 : vector<2x256xf32>
    %267 = vector.extract_strided_slice %256 {offsets = [0, 112], sizes = [2, 256], strides = [1, 1]} : vector<2x512xf32> to vector<2x256xf32>
    %268 = vector.broadcast %19 : f32 to vector<2x256xf32>
    %269 = arith.mulf %268, %267 : vector<2x256xf32>
    %270 = arith.addf %263, %269 : vector<2x256xf32>
    %271 = vector.broadcast %55 : f32 to vector<2x256xf32>
    %272 = arith.mulf %271, %267 : vector<2x256xf32>
    %273 = arith.addf %266, %272 : vector<2x256xf32>
    %274 = vector.extract_strided_slice %259 {offsets = [0, 113], sizes = [2, 256], strides = [1, 1]} : vector<2x512xf32> to vector<2x256xf32>
    %275 = vector.broadcast %20 : f32 to vector<2x256xf32>
    %276 = arith.mulf %275, %274 : vector<2x256xf32>
    %277 = arith.addf %270, %276 : vector<2x256xf32>
    %278 = vector.broadcast %56 : f32 to vector<2x256xf32>
    %279 = arith.mulf %278, %274 : vector<2x256xf32>
    %280 = arith.addf %273, %279 : vector<2x256xf32>
    %281 = vector.extract_strided_slice %255 {offsets = [0, 127], sizes = [2, 256], strides = [1, 1]} : vector<2x512xf32> to vector<2x256xf32>
    %282 = vector.broadcast %21 : f32 to vector<2x256xf32>
    %283 = arith.mulf %282, %281 : vector<2x256xf32>
    %284 = arith.addf %277, %283 : vector<2x256xf32>
    %285 = vector.broadcast %57 : f32 to vector<2x256xf32>
    %286 = arith.mulf %285, %281 : vector<2x256xf32>
    %287 = arith.addf %280, %286 : vector<2x256xf32>
    %288 = vector.extract_strided_slice %256 {offsets = [0, 128], sizes = [2, 256], strides = [1, 1]} : vector<2x512xf32> to vector<2x256xf32>
    %289 = vector.broadcast %22 : f32 to vector<2x256xf32>
    %290 = arith.mulf %289, %288 : vector<2x256xf32>
    %291 = arith.addf %284, %290 : vector<2x256xf32>
    %292 = vector.broadcast %58 : f32 to vector<2x256xf32>
    %293 = arith.mulf %292, %288 : vector<2x256xf32>
    %294 = arith.addf %287, %293 : vector<2x256xf32>
    %295 = vector.extract_strided_slice %259 {offsets = [0, 129], sizes = [2, 256], strides = [1, 1]} : vector<2x512xf32> to vector<2x256xf32>
    %296 = vector.broadcast %23 : f32 to vector<2x256xf32>
    %297 = arith.mulf %296, %295 : vector<2x256xf32>
    %298 = arith.addf %291, %297 : vector<2x256xf32>
    %299 = vector.broadcast %59 : f32 to vector<2x256xf32>
    %300 = arith.mulf %299, %295 : vector<2x256xf32>
    %301 = arith.addf %294, %300 : vector<2x256xf32>
    %302 = vector.extract_strided_slice %255 {offsets = [0, 143], sizes = [2, 256], strides = [1, 1]} : vector<2x512xf32> to vector<2x256xf32>
    %303 = vector.broadcast %24 : f32 to vector<2x256xf32>
    %304 = arith.mulf %303, %302 : vector<2x256xf32>
    %305 = arith.addf %298, %304 : vector<2x256xf32>
    %306 = vector.broadcast %60 : f32 to vector<2x256xf32>
    %307 = arith.mulf %306, %302 : vector<2x256xf32>
    %308 = arith.addf %301, %307 : vector<2x256xf32>
    %309 = vector.extract_strided_slice %256 {offsets = [0, 144], sizes = [2, 256], strides = [1, 1]} : vector<2x512xf32> to vector<2x256xf32>
    %310 = vector.broadcast %25 : f32 to vector<2x256xf32>
    %311 = arith.mulf %310, %309 : vector<2x256xf32>
    %312 = arith.addf %305, %311 : vector<2x256xf32>
    %313 = vector.broadcast %61 : f32 to vector<2x256xf32>
    %314 = arith.mulf %313, %309 : vector<2x256xf32>
    %315 = arith.addf %308, %314 : vector<2x256xf32>
    %316 = vector.extract_strided_slice %259 {offsets = [0, 145], sizes = [2, 256], strides = [1, 1]} : vector<2x512xf32> to vector<2x256xf32>
    %317 = vector.broadcast %26 : f32 to vector<2x256xf32>
    %318 = arith.mulf %317, %316 : vector<2x256xf32>
    %319 = arith.addf %312, %318 : vector<2x256xf32>
    %320 = vector.broadcast %62 : f32 to vector<2x256xf32>
    %321 = arith.mulf %320, %316 : vector<2x256xf32>
    %322 = arith.addf %315, %321 : vector<2x256xf32>
    %c3_39 = arith.constant 3 : index
    %c0_40 = arith.constant 0 : index
    %c0_41 = arith.constant 0 : index
    %323 = vector.load %arg4[%c3_39, %c0_40, %c0_41] : memref<4x2x256xf32, #tpu.memory_space<vmem>>, vector<1x2x256xf32>
    %324 = vector.shape_cast %323 : vector<1x2x256xf32> to vector<2x256xf32>
    %cst_42 = arith.constant 0.000000e+00 : f32
    %325 = vector.broadcast %cst_42 : f32 to vector<2x256xf32>
    %326 = arith.select %98, %324, %325 : vector<2x256xi1>, vector<2x256xf32>
    %327 = tpu.concatenate %93, %326, %93 in 1 : vector<2x128xf32>, vector<2x256xf32>, vector<2x128xf32> -> vector<2x512xf32>
    %328 = tpu.concatenate %93, %324, %93 in 1 : vector<2x128xf32>, vector<2x256xf32>, vector<2x128xf32> -> vector<2x512xf32>
    %cst_43 = arith.constant 0.000000e+00 : f32
    %329 = vector.broadcast %cst_43 : f32 to vector<2x256xf32>
    %330 = arith.select %100, %324, %329 : vector<2x256xi1>, vector<2x256xf32>
    %331 = tpu.concatenate %93, %330, %93 in 1 : vector<2x128xf32>, vector<2x256xf32>, vector<2x128xf32> -> vector<2x512xf32>
    %332 = vector.extract_strided_slice %327 {offsets = [0, 111], sizes = [2, 256], strides = [1, 1]} : vector<2x512xf32> to vector<2x256xf32>
    %333 = vector.broadcast %27 : f32 to vector<2x256xf32>
    %334 = arith.mulf %333, %332 : vector<2x256xf32>
    %335 = arith.addf %319, %334 : vector<2x256xf32>
    %336 = vector.broadcast %63 : f32 to vector<2x256xf32>
    %337 = arith.mulf %336, %332 : vector<2x256xf32>
    %338 = arith.addf %322, %337 : vector<2x256xf32>
    %339 = vector.extract_strided_slice %328 {offsets = [0, 112], sizes = [2, 256], strides = [1, 1]} : vector<2x512xf32> to vector<2x256xf32>
    %340 = vector.broadcast %28 : f32 to vector<2x256xf32>
    %341 = arith.mulf %340, %339 : vector<2x256xf32>
    %342 = arith.addf %335, %341 : vector<2x256xf32>
    %343 = vector.broadcast %64 : f32 to vector<2x256xf32>
    %344 = arith.mulf %343, %339 : vector<2x256xf32>
    %345 = arith.addf %338, %344 : vector<2x256xf32>
    %346 = vector.extract_strided_slice %331 {offsets = [0, 113], sizes = [2, 256], strides = [1, 1]} : vector<2x512xf32> to vector<2x256xf32>
    %347 = vector.broadcast %29 : f32 to vector<2x256xf32>
    %348 = arith.mulf %347, %346 : vector<2x256xf32>
    %349 = arith.addf %342, %348 : vector<2x256xf32>
    %350 = vector.broadcast %65 : f32 to vector<2x256xf32>
    %351 = arith.mulf %350, %346 : vector<2x256xf32>
    %352 = arith.addf %345, %351 : vector<2x256xf32>
    %353 = vector.extract_strided_slice %327 {offsets = [0, 127], sizes = [2, 256], strides = [1, 1]} : vector<2x512xf32> to vector<2x256xf32>
    %354 = vector.broadcast %30 : f32 to vector<2x256xf32>
    %355 = arith.mulf %354, %353 : vector<2x256xf32>
    %356 = arith.addf %349, %355 : vector<2x256xf32>
    %357 = vector.broadcast %66 : f32 to vector<2x256xf32>
    %358 = arith.mulf %357, %353 : vector<2x256xf32>
    %359 = arith.addf %352, %358 : vector<2x256xf32>
    %360 = vector.extract_strided_slice %328 {offsets = [0, 128], sizes = [2, 256], strides = [1, 1]} : vector<2x512xf32> to vector<2x256xf32>
    %361 = vector.broadcast %31 : f32 to vector<2x256xf32>
    %362 = arith.mulf %361, %360 : vector<2x256xf32>
    %363 = arith.addf %356, %362 : vector<2x256xf32>
    %364 = vector.broadcast %67 : f32 to vector<2x256xf32>
    %365 = arith.mulf %364, %360 : vector<2x256xf32>
    %366 = arith.addf %359, %365 : vector<2x256xf32>
    %367 = vector.extract_strided_slice %331 {offsets = [0, 129], sizes = [2, 256], strides = [1, 1]} : vector<2x512xf32> to vector<2x256xf32>
    %368 = vector.broadcast %32 : f32 to vector<2x256xf32>
    %369 = arith.mulf %368, %367 : vector<2x256xf32>
    %370 = arith.addf %363, %369 : vector<2x256xf32>
    %371 = vector.broadcast %68 : f32 to vector<2x256xf32>
    %372 = arith.mulf %371, %367 : vector<2x256xf32>
    %373 = arith.addf %366, %372 : vector<2x256xf32>
    %374 = vector.extract_strided_slice %327 {offsets = [0, 143], sizes = [2, 256], strides = [1, 1]} : vector<2x512xf32> to vector<2x256xf32>
    %375 = vector.broadcast %33 : f32 to vector<2x256xf32>
    %376 = arith.mulf %375, %374 : vector<2x256xf32>
    %377 = arith.addf %370, %376 : vector<2x256xf32>
    %378 = vector.broadcast %69 : f32 to vector<2x256xf32>
    %379 = arith.mulf %378, %374 : vector<2x256xf32>
    %380 = arith.addf %373, %379 : vector<2x256xf32>
    %381 = vector.extract_strided_slice %328 {offsets = [0, 144], sizes = [2, 256], strides = [1, 1]} : vector<2x512xf32> to vector<2x256xf32>
    %382 = vector.broadcast %34 : f32 to vector<2x256xf32>
    %383 = arith.mulf %382, %381 : vector<2x256xf32>
    %384 = arith.addf %377, %383 : vector<2x256xf32>
    %385 = vector.broadcast %70 : f32 to vector<2x256xf32>
    %386 = arith.mulf %385, %381 : vector<2x256xf32>
    %387 = arith.addf %380, %386 : vector<2x256xf32>
    %388 = vector.extract_strided_slice %331 {offsets = [0, 145], sizes = [2, 256], strides = [1, 1]} : vector<2x512xf32> to vector<2x256xf32>
    %389 = vector.broadcast %35 : f32 to vector<2x256xf32>
    %390 = arith.mulf %389, %388 : vector<2x256xf32>
    %391 = arith.addf %384, %390 : vector<2x256xf32>
    %392 = vector.broadcast %71 : f32 to vector<2x256xf32>
    %393 = arith.mulf %392, %388 : vector<2x256xf32>
    %394 = arith.addf %387, %393 : vector<2x256xf32>
    %cst_44 = arith.constant 0.000000e+00 : f32
    %395 = vector.broadcast %cst_44 : f32 to vector<2x256xf32>
    %396 = vector.broadcast %92 : f32 to vector<2x256xf32>
    %397 = arith.addf %395, %396 : vector<2x256xf32>
    %cst_45 = arith.constant 0.000000e+00 : f32
    %398 = vector.broadcast %cst_45 : f32 to vector<2x256xf32>
    %399 = arith.maximumf %391, %398 : vector<2x256xf32>
    %cst_46 = arith.constant 0.000000e+00 : f32
    %400 = vector.broadcast %cst_46 : f32 to vector<2x256xf32>
    %401 = arith.select %98, %399, %400 : vector<2x256xi1>, vector<2x256xf32>
    %402 = tpu.concatenate %93, %401, %93 in 1 : vector<2x128xf32>, vector<2x256xf32>, vector<2x128xf32> -> vector<2x512xf32>
    %403 = tpu.concatenate %93, %399, %93 in 1 : vector<2x128xf32>, vector<2x256xf32>, vector<2x128xf32> -> vector<2x512xf32>
    %cst_47 = arith.constant 0.000000e+00 : f32
    %404 = vector.broadcast %cst_47 : f32 to vector<2x256xf32>
    %405 = arith.select %100, %399, %404 : vector<2x256xi1>, vector<2x256xf32>
    %406 = tpu.concatenate %93, %405, %93 in 1 : vector<2x128xf32>, vector<2x256xf32>, vector<2x128xf32> -> vector<2x512xf32>
    %407 = vector.extract_strided_slice %402 {offsets = [0, 111], sizes = [2, 256], strides = [1, 1]} : vector<2x512xf32> to vector<2x256xf32>
    %408 = vector.broadcast %72 : f32 to vector<2x256xf32>
    %409 = arith.mulf %408, %407 : vector<2x256xf32>
    %410 = arith.addf %397, %409 : vector<2x256xf32>
    %411 = vector.extract_strided_slice %403 {offsets = [0, 112], sizes = [2, 256], strides = [1, 1]} : vector<2x512xf32> to vector<2x256xf32>
    %412 = vector.broadcast %73 : f32 to vector<2x256xf32>
    %413 = arith.mulf %412, %411 : vector<2x256xf32>
    %414 = arith.addf %410, %413 : vector<2x256xf32>
    %415 = vector.extract_strided_slice %406 {offsets = [0, 113], sizes = [2, 256], strides = [1, 1]} : vector<2x512xf32> to vector<2x256xf32>
    %416 = vector.broadcast %74 : f32 to vector<2x256xf32>
    %417 = arith.mulf %416, %415 : vector<2x256xf32>
    %418 = arith.addf %414, %417 : vector<2x256xf32>
    %419 = vector.extract_strided_slice %402 {offsets = [0, 127], sizes = [2, 256], strides = [1, 1]} : vector<2x512xf32> to vector<2x256xf32>
    %420 = vector.broadcast %75 : f32 to vector<2x256xf32>
    %421 = arith.mulf %420, %419 : vector<2x256xf32>
    %422 = arith.addf %418, %421 : vector<2x256xf32>
    %423 = vector.extract_strided_slice %403 {offsets = [0, 128], sizes = [2, 256], strides = [1, 1]} : vector<2x512xf32> to vector<2x256xf32>
    %424 = vector.broadcast %76 : f32 to vector<2x256xf32>
    %425 = arith.mulf %424, %423 : vector<2x256xf32>
    %426 = arith.addf %422, %425 : vector<2x256xf32>
    %427 = vector.extract_strided_slice %406 {offsets = [0, 129], sizes = [2, 256], strides = [1, 1]} : vector<2x512xf32> to vector<2x256xf32>
    %428 = vector.broadcast %77 : f32 to vector<2x256xf32>
    %429 = arith.mulf %428, %427 : vector<2x256xf32>
    %430 = arith.addf %426, %429 : vector<2x256xf32>
    %431 = vector.extract_strided_slice %402 {offsets = [0, 143], sizes = [2, 256], strides = [1, 1]} : vector<2x512xf32> to vector<2x256xf32>
    %432 = vector.broadcast %78 : f32 to vector<2x256xf32>
    %433 = arith.mulf %432, %431 : vector<2x256xf32>
    %434 = arith.addf %430, %433 : vector<2x256xf32>
    %435 = vector.extract_strided_slice %403 {offsets = [0, 144], sizes = [2, 256], strides = [1, 1]} : vector<2x512xf32> to vector<2x256xf32>
    %436 = vector.broadcast %79 : f32 to vector<2x256xf32>
    %437 = arith.mulf %436, %435 : vector<2x256xf32>
    %438 = arith.addf %434, %437 : vector<2x256xf32>
    %439 = vector.extract_strided_slice %406 {offsets = [0, 145], sizes = [2, 256], strides = [1, 1]} : vector<2x512xf32> to vector<2x256xf32>
    %440 = vector.broadcast %80 : f32 to vector<2x256xf32>
    %441 = arith.mulf %440, %439 : vector<2x256xf32>
    %442 = arith.addf %438, %441 : vector<2x256xf32>
    %cst_48 = arith.constant 0.000000e+00 : f32
    %443 = vector.broadcast %cst_48 : f32 to vector<2x256xf32>
    %444 = arith.maximumf %394, %443 : vector<2x256xf32>
    %cst_49 = arith.constant 0.000000e+00 : f32
    %445 = vector.broadcast %cst_49 : f32 to vector<2x256xf32>
    %446 = arith.select %98, %444, %445 : vector<2x256xi1>, vector<2x256xf32>
    %447 = tpu.concatenate %93, %446, %93 in 1 : vector<2x128xf32>, vector<2x256xf32>, vector<2x128xf32> -> vector<2x512xf32>
    %448 = tpu.concatenate %93, %444, %93 in 1 : vector<2x128xf32>, vector<2x256xf32>, vector<2x128xf32> -> vector<2x512xf32>
    %cst_50 = arith.constant 0.000000e+00 : f32
    %449 = vector.broadcast %cst_50 : f32 to vector<2x256xf32>
    %450 = arith.select %100, %444, %449 : vector<2x256xi1>, vector<2x256xf32>
    %451 = tpu.concatenate %93, %450, %93 in 1 : vector<2x128xf32>, vector<2x256xf32>, vector<2x128xf32> -> vector<2x512xf32>
    %452 = vector.extract_strided_slice %447 {offsets = [0, 111], sizes = [2, 256], strides = [1, 1]} : vector<2x512xf32> to vector<2x256xf32>
    %453 = vector.broadcast %81 : f32 to vector<2x256xf32>
    %454 = arith.mulf %453, %452 : vector<2x256xf32>
    %455 = arith.addf %442, %454 : vector<2x256xf32>
    %456 = vector.extract_strided_slice %448 {offsets = [0, 112], sizes = [2, 256], strides = [1, 1]} : vector<2x512xf32> to vector<2x256xf32>
    %457 = vector.broadcast %82 : f32 to vector<2x256xf32>
    %458 = arith.mulf %457, %456 : vector<2x256xf32>
    %459 = arith.addf %455, %458 : vector<2x256xf32>
    %460 = vector.extract_strided_slice %451 {offsets = [0, 113], sizes = [2, 256], strides = [1, 1]} : vector<2x512xf32> to vector<2x256xf32>
    %461 = vector.broadcast %83 : f32 to vector<2x256xf32>
    %462 = arith.mulf %461, %460 : vector<2x256xf32>
    %463 = arith.addf %459, %462 : vector<2x256xf32>
    %464 = vector.extract_strided_slice %447 {offsets = [0, 127], sizes = [2, 256], strides = [1, 1]} : vector<2x512xf32> to vector<2x256xf32>
    %465 = vector.broadcast %84 : f32 to vector<2x256xf32>
    %466 = arith.mulf %465, %464 : vector<2x256xf32>
    %467 = arith.addf %463, %466 : vector<2x256xf32>
    %468 = vector.extract_strided_slice %448 {offsets = [0, 128], sizes = [2, 256], strides = [1, 1]} : vector<2x512xf32> to vector<2x256xf32>
    %469 = vector.broadcast %85 : f32 to vector<2x256xf32>
    %470 = arith.mulf %469, %468 : vector<2x256xf32>
    %471 = arith.addf %467, %470 : vector<2x256xf32>
    %472 = vector.extract_strided_slice %451 {offsets = [0, 129], sizes = [2, 256], strides = [1, 1]} : vector<2x512xf32> to vector<2x256xf32>
    %473 = vector.broadcast %86 : f32 to vector<2x256xf32>
    %474 = arith.mulf %473, %472 : vector<2x256xf32>
    %475 = arith.addf %471, %474 : vector<2x256xf32>
    %476 = vector.extract_strided_slice %447 {offsets = [0, 143], sizes = [2, 256], strides = [1, 1]} : vector<2x512xf32> to vector<2x256xf32>
    %477 = vector.broadcast %87 : f32 to vector<2x256xf32>
    %478 = arith.mulf %477, %476 : vector<2x256xf32>
    %479 = arith.addf %475, %478 : vector<2x256xf32>
    %480 = vector.extract_strided_slice %448 {offsets = [0, 144], sizes = [2, 256], strides = [1, 1]} : vector<2x512xf32> to vector<2x256xf32>
    %481 = vector.broadcast %88 : f32 to vector<2x256xf32>
    %482 = arith.mulf %481, %480 : vector<2x256xf32>
    %483 = arith.addf %479, %482 : vector<2x256xf32>
    %484 = vector.extract_strided_slice %451 {offsets = [0, 145], sizes = [2, 256], strides = [1, 1]} : vector<2x512xf32> to vector<2x256xf32>
    %485 = vector.broadcast %89 : f32 to vector<2x256xf32>
    %486 = arith.mulf %485, %484 : vector<2x256xf32>
    %487 = arith.addf %483, %486 : vector<2x256xf32>
    %c0_51 = arith.constant 0 : index
    %c0_52 = arith.constant 0 : index
    %488 = vector.load %arg5[%c0_51, %c0_52] : memref<2x256xf32, #tpu.memory_space<vmem>>, vector<2x256xf32>
    tpu.vector_store %arg5[%c0_51, %c0_52], %487 {strides = array<i32>} : memref<2x256xf32, #tpu.memory_space<vmem>>, vector<2x256xf32>,
    return
  }
}

</mosaic_0001>

<bundles_post_ra>
// kernel: tpu_custom_call.1
= control target key start
LH: loop header
LB: loop body
LE: loop exit
PB: predicated region body
PF: predicated region fallthrough
CT: control target
= control target key end

     0   :  { %11 = vsyncpa [#allocation6], 0  ;;  %s3666_s0 = inlined_call_operand.vmem [shape: f32[72], index: 0, kind: input, shape index: {}]   ;;  %s3667_s1 = inlined_call_operand.vmem [shape: f32[2], index: 1, kind: input, shape index: {}]   ;;  %s3668_s2 = inlined_call_operand.vmem [shape: f32[18], index: 2, kind: input, shape index: {}]   ;;  %s3669_s3 = inlined_call_operand.<no memory space> [shape: f32[1], index: 3, kind: input, shape index: {}]   ;;  %s3670_s4 = inlined_call_operand.hbm [shape: f32[4,2,256], index: 4, kind: input, shape index: {}]   ;;  %s3671_s5 = inlined_call_operand.hbm [shape: f32[2,256], index: 5, kind: output, shape index: {}]  }
   0x1   :  { %12 = vsyncpa [#allocation8], 0 }
   0x2   :  { %13 = vsyncpa [#allocation4], 0  ;;  %s31_s20 = sshll.u32 %s3667_s1, 4  ;;  %s32_s20 = int_to_ptr.vmem [resolvable:$true] %s31_s20 }
   0x3   :  { %14 = vsyncpa [#allocation5], 0  ;;  %s21_s23 = sshll.u32 %s3666_s0, 4  ;;  %s2148_s24 = scalar_lea.vmem %s32_s20, 16  ;;  %s22_s23 = int_to_ptr.vmem [resolvable:$true] %s21_s23 }
   0x4   :  { %p2149_p0 = scmp.ne.s32.totalorder %s32_s20, %s2148_s24  ;;  %p2153_p1 = scmp.lt.s32.totalorder %s32_s20, %s32_s20 }
   0x5   :  { %p2154_p2 = scmp.lt.s32.totalorder %s2148_s24, %s2148_s24 }
   0x7   :  { %p2155_p3 = por %p2154_p2, %p2153_p1 }
   0x9   :  { %p2156_p4 = pnand %p2155_p3, %p2149_p0 }
   0xb   :  { %2159 = shalt.err (!%p2156_p4)
}
   0xc   :  { %s2236_s25 = smov [#allocation7]   ;;  %s2160_s26 = scalar_lea.vmem %s22_s23, 16 }
   0xd   :  { %34 = dma.vmem_to_smem %s32_s20, 16, %s2236_s25, [#allocation8]  }
   0xe   :  { %p2161_p5 = scmp.ne.s32.totalorder %s22_s23, %s2160_s26  ;;  %p2165_p6 = scmp.lt.s32.totalorder %s22_s23, %s22_s23 }
   0xf   :  { %p2166_p7 = scmp.lt.s32.totalorder %s2160_s26, %s2160_s26 }
  0x11   :  { %p2167_p8 = por %p2166_p7, %p2165_p6 }
  0x13   :  { %p2168_p9 = pnand %p2167_p8, %p2161_p5 }
  0x15   :  { %2171 = shalt.err (!%p2168_p9)
}
  0x16   :  { %s2237_s1 = smov [#allocation3]   ;;  %s41_s28 = sshll.u32 %s3668_s2, 4  ;;  %s42_s28 = int_to_ptr.vmem [resolvable:$true] %s41_s28 }
  0x17   :  { %24 = dma.vmem_to_smem %s22_s23, 16, %s2237_s1, [#allocation6]  }
  0x18   :  { %s2172_s29 = scalar_lea.vmem %s42_s28, 16  ;;  %p2177_p11 = scmp.lt.s32.totalorder %s42_s28, %s42_s28 }
  0x19   :  { %p2173_p10 = scmp.ne.s32.totalorder %s42_s28, %s2172_s29  ;;  %p2178_p12 = scmp.lt.s32.totalorder %s2172_s29, %s2172_s29 }
  0x1b   :  { %p2179_p13 = por %p2178_p12, %p2177_p11 }
  0x1d   :  { %p2180_p0 = pnand %p2179_p13, %p2173_p10 }
  0x1f   :  { %2183 = shalt.err (!%p2180_p0)
}
  0x20   :  { %s2238_s30 = smov [#allocation9]   ;;  %s2239_s6 = smov [#allocation10]  }
  0x21   :  { %44 = dma.vmem_to_smem %s42_s28, 16, %s2238_s30, [#allocation8]  }
  0x22   :  { %s52_s7 = sshll.u32 %s2239_s6, 4  ;;  %s2184_s10 = scalar_lea.hbm %s3670_s4, 256  ;;  %s53_s7 = int_to_ptr.vmem [resolvable:$true] %s52_s7 }
  0x23   :  { %p2185_p1 = scmp.ne.s32.totalorder %s3670_s4, %s2184_s10  ;;  %p2188_p2 = scmp.lt.u32.totalorder %s2184_s10, %s3670_s4 }
  0x25   :  { %p2190_p3 = pnand %p2188_p2, %p2185_p1 }
  0x27   :  { %2193 = shalt.err (!%p2190_p3)
}
  0x28   :  { %s2194_s14 = scalar_lea.vmem %s53_s7, 256  ;;  %p2199_p5 = scmp.lt.s32.totalorder %s53_s7, %s53_s7 }
  0x29   :  { %p2195_p4 = scmp.ne.s32.totalorder %s53_s7, %s2194_s14  ;;  %p2200_p6 = scmp.lt.s32.totalorder %s2194_s14, %s2194_s14 }
  0x2b   :  { %p2201_p7 = por %p2200_p6, %p2199_p5 }
  0x2d   :  { %p2202_p8 = pnand %p2201_p7, %p2195_p4 }
  0x2f   :  { %2205 = shalt.err (!%p2202_p8)
}
  0x30   :  { %s2240_s15 = smov 64   ;;  %s2241_s16 = smov 4  }
  0x31   :  { %58 = dma.hbm_to_vmem [thread:$0]  %s3670_s4, 256, %s53_s7, [#allocation4], %s2240_s15, %s2240_s15, %s2241_s16  }
  0x32   :  { %2228 = dma.done.wait [#allocation6], 16  }
  0x33   :  { %2229 = vsyncadd [#allocation6], 4294967280 }
  0x34   :  { %2230 = dma.done.wait [#allocation8], 32  }
  0x35   :  { %2231 = vsyncadd [#allocation8], 4294967264 }
  0x36   :  { %2232 = dma.done.wait [#allocation4], 256  }
  0x37   :  { %2233 = vsyncadd [#allocation4], 4294967040 }
  0x38   :  { %71 = sfence }
  0x39   :  { %s2038_s19 = sld [smem:[#allocation3 + $0x1]]  ;;  %v2304_v0 = vld.sshfl [vmem:[#allocation10] sm:$0x33 pattern:$0x76325410]  ;;  %v3672_v1 = vlaneseq  ;;  %s2074_s20 = sld [smem:[#allocation3 + $0x25]] }
  0x3a   :  { %v2309_v3 = vcombine.high %v2304_v0, %v2304_v0  ;;  %s2039_s4 = sld [smem:[#allocation3 + $0x2]]  ;;  %s2242_s21 = smov 127   ;;  %v3731_v12 = vmov 0  ;;  %v3734_v18 = vmov 0  ;;  %v3737_v25 = vmov 0 }
  0x3b   :  { %v166_v2 = vand.u32 127, %v3672_v1  ;;  %s2075_s22 = sld [smem:[#allocation3 + $0x26]]  ;;  %s2040_s23 = sld [smem:[#allocation3 + $0x3]]  ;;  %v3740_v30 = vmov 0  ;;  %vm221_vm4 = vcmask 1039360   ;;  %vm264_vm5 = vcmask 1031168  }
  0x3c   :  { %s2243_s24 = smov 126   ;;  %s2076_s25 = sld [smem:[#allocation3 + $0x27]]  ;;  %vm307_vm6 = vcmask 916480   ;;  %vm346_vm7 = vcmask 908288   ;;  %vm383_vm8 = vcmask 900096   ;;  %vm426_vm9 = vcmask 785408  }
  0x3d   :  { %v168_v5 = vand.u32 15, %v166_v2  ;;  %v167_v9 = vadd.s32 128, %v166_v2  ;;  %s2041_s26 = sld [smem:[#allocation3 + $0x4]]  ;;  %s2244_s1 = smov 112   ;;  %vm469_vm10 = vcmask 777216   ;;  %vm512_vm11 = vcmask 769024  }
  0x3e   :  { %s2077_s0 = sld [smem:[#allocation3 + $0x28]]  ;;  %s2042_s27 = sld [smem:[#allocation3 + $0x5]]  ;;  %vm1627_vm12 = vcmask 138240  }
  0x3f   :  { %v208_v4 = vstv %s2038_s19  ;;  %v230_v8 = vstv %s2074_s20  ;;  %vm2315_vm0 = vcmp.ne.s32.totalorder %v168_v5, 0  ;;  %v169_v13 = vand.u32 15, %v167_v9  ;;  %s2078_s28 = sld [smem:[#allocation3 + $0x29]]  ;;  %s2245_s29 = smov 111  }
  0x40   :  { %v211_v6 = vmul.f32 %v208_v4, %v2309_v3  ;;  %v209_v7 = vmul.f32 0.0, %v208_v4  ;;  %v231_v10 = vmul.f32 0.0, %v230_v8  ;;  %v210_v11 = vmul.f32 %v2304_v0, %v208_v4  ;;  %s2043_s30 = sld [smem:[#allocation3 + $0x6]]  ;;  %s2246_s6 = smov 110  }
  0x41   :  { %v3732_v12 = vsel %vm2315_vm0, 4294967295, %v3731_v12  ;;  %v233_v14 = vmul.f32 %v230_v8, %v2309_v3  ;;  %v232_v15 = vmul.f32 %v2304_v0, %v230_v8  ;;  %v2326_v16 = vsel %vm2315_vm0, %v2304_v0, 0.0  ;;  %s2079_s7 = sld [smem:[#allocation3 + $0x2a]]  ;;  %s2044_s8 = sld [smem:[#allocation3 + $0x7]] }
  0x42   :  { %219 = vrot.lane.b32.xlu1 %v211_v6, %s2242_s21  ;;  %215 = vrot.lane.b32.xlu0 %v209_v7, %s2242_s21  ;;  %3733 = vst [vmem:[#allocation16_spill] sm:$0xff] %v3732_v12  ;;  %v251_v17 = vstv %s2039_s4  ;;  %vm2328_vm1 = vcmp.ne.s32.totalorder %v169_v13, 0  ;;  %v273_v21 = vstv %s2075_s22  ;;  %vm2343_vm2 = vcmp.ne.s32.totalorder %v168_v5, 15  ;;  %s2247_s9 = smov 96   ;;  %s2080_s10 = sld [smem:[#allocation3 + $0x2b]] }
  0x43   :  { %v3735_v18 = vsel %vm2328_vm1, 4294967295, %v3734_v18  ;;  %v253_v19 = vmul.f32 %v251_v17, %v2326_v16  ;;  %v252_v20 = vmul.f32 0.0, %v251_v17  ;;  %v2338_v22 = vsel %vm2328_vm1, %v2309_v3, 0.0  ;;  %s2045_s11 = sld [smem:[#allocation3 + $0x8]]  ;;  %s2248_s12 = smov 95  }
  0x44   :  { %3736 = vst [vmem:[#allocation17_spill] sm:$0xff] %v3735_v18  ;;  %v274_v23 = vmul.f32 0.0, %v273_v21  ;;  %v254_v24 = vmul.f32 %v251_v17, %v2338_v22  ;;  %v3738_v25 = vsel %vm2343_vm2, 4294967295, %v3737_v25  ;;  %v276_v26 = vmul.f32 %v273_v21, %v2338_v22  ;;  %s2081_s2 = sld [smem:[#allocation3 + $0x2c]]  ;;  %s2047_s13 = sld [smem:[#allocation3 + $0xa]] }
  0x45   :  { %3739 = vst [vmem:[#allocation18_spill] sm:$0xff] %v3738_v25  ;;  %v275_v27 = vmul.f32 %v273_v21, %v2326_v16  ;;  %v2354_v28 = vsel %vm2343_vm2, %v2304_v0, 0.0  ;;  %v294_v29 = vstv %s2040_s23  ;;  %vm2356_vm3 = vcmp.ne.s32.totalorder %v169_v13, 15  ;;  %s2249_s14 = smov 94   ;;  %s2083_s15 = sld [smem:[#allocation3 + $0x2e]] }
  0x46   :  { %237 = vrot.lane.b32.xlu1 %v231_v10, %s2242_s21  ;;  %217 = vrot.lane.b32.xlu0 %v210_v11, %s2242_s21  ;;  %v3741_v30 = vsel %vm2356_vm3, 4294967295, %v3740_v30  ;;  %v296_v31 = vmul.f32 %v294_v29, %v2354_v28  ;;  %v295_v32 = vmul.f32 0.0, %v294_v29  ;;  %v316_v33 = vstv %s2076_s25  ;;  %s2048_s16 = sld [smem:[#allocation3 + $0xb]]  ;;  %s2084_s17 = sld [smem:[#allocation3 + $0x2f]] }
  0x47   :  { %3742 = vst [vmem:[#allocation19_spill] sm:$0xff] %v3741_v30  ;;  %v2366_v34 = vsel %vm2356_vm3, %v2309_v3, 0.0  ;;  %v317_v35 = vmul.f32 0.0, %v316_v33  ;;  %v318_v38 = vmul.f32 %v316_v33, %v2354_v28  ;;  %v337_v39 = vstv %s2041_s26  ;;  %s2049_s18 = sld [smem:[#allocation3 + $0xc]]  ;;  %s2085_s19 = sld [smem:[#allocation3 + $0x30]] }
  0x48   :  { %v297_v36 = vmul.f32 %v294_v29, %v2366_v34  ;;  %v319_v37 = vmul.f32 %v316_v33, %v2366_v34  ;;  %v339_v40 = vmul.f32 %v337_v39, %v2309_v3  ;;  %v338_v41 = vmul.f32 %v2304_v0, %v337_v39  ;;  %s2050_s20 = sld [smem:[#allocation3 + $0xd]]  ;;  %s2086_s4 = sld [smem:[#allocation3 + $0x31]] }
  0x49   :  { %v354_v42 = vstv %s2077_s0  ;;  %v370_v45 = vstv %s2042_s27  ;;  %v392_v48 = vstv %s2078_s28  ;;  %v413_v53 = vstv %s2043_s30  ;;  %s2051_s22 = sld [smem:[#allocation3 + $0xe]]  ;;  %s2087_s23 = sld [smem:[#allocation3 + $0x32]] }
  0x4a   :  { %241 = vrot.lane.b32.xlu1 %v233_v14, %s2242_s21  ;;  %239 = vrot.lane.b32.xlu0 %v232_v15, %s2242_s21  ;;  %v356_v43 = vmul.f32 %v354_v42, %v2309_v3  ;;  %v355_v44 = vmul.f32 %v2304_v0, %v354_v42  ;;  %v372_v46 = vmul.f32 %v370_v45, %v2338_v22  ;;  %v373_v50 = vmul.f32 0.0, %v370_v45  ;;  %v2423_v15 = vld.sshfl [vmem:[#allocation10 + $0x4] sm:$0x33 pattern:$0x76325410]  ;;  %s2052_s25 = sld [smem:[#allocation3 + $0xf]] }
  0x4b   :  { %v371_v47 = vmul.f32 %v370_v45, %v2326_v16  ;;  %v393_v49 = vmul.f32 %v392_v48, %v2326_v16  ;;  %v395_v51 = vmul.f32 0.0, %v392_v48  ;;  %v394_v52 = vmul.f32 %v392_v48, %v2338_v22  ;;  %s2053_s26 = sld [smem:[#allocation3 + $0x10]]  ;;  %s2054_s0 = sld [smem:[#allocation3 + $0x11]] }
  0x4c   :  { %v415_v54 = vmul.f32 %v413_v53, %v2366_v34  ;;  %v414_v55 = vmul.f32 %v413_v53, %v2354_v28  ;;  %v435_v56 = vstv %s2079_s7  ;;  %v416_v58 = vmul.f32 0.0, %v413_v53  ;;  %s2056_s27 = sld [smem:[#allocation3 + $0x13]]  ;;  %s2057_s28 = sld [smem:[#allocation3 + $0x14]] }
  0x4d   :  { %v436_v57 = vmul.f32 %v435_v56, %v2354_v28  ;;  %v438_v59 = vmul.f32 0.0, %v435_v56  ;;  %v437_v60 = vmul.f32 %v435_v56, %v2366_v34  ;;  %v456_v61 = vstv %s2044_s8  ;;  %s2058_s30 = sld [smem:[#allocation3 + $0x15]]  ;;  %s72_s7 = sld [smem:[#allocation3]] }
  0x4e   :  { %260 = vrot.lane.b32.xlu1 %v253_v19, %s2243_s24  ;;  %258 = vrot.lane.b32.xlu0 %v252_v20, %s2243_s24  ;;  %v458_v62 = vmul.f32 %v456_v61, %v2309_v3  ;;  %v457_v63 = vmul.f32 %v2304_v0, %v456_v61  ;;  %v478_v2 = vstv %s2080_s10  ;;  %v459_v5 = vmul.f32 0.0, %v456_v61  ;;  %s2073_s8 = sld [smem:[#allocation3 + $0x24]]  ;;  %s162_s10 = sld [smem:[#allocation7]] }
  0x4f   :  { %v479_v4 = vmul.f32 %v2304_v0, %v478_v2  ;;  %v481_v6 = vmul.f32 0.0, %v478_v2  ;;  %v480_v7 = vmul.f32 %v478_v2, %v2309_v3  ;;  %v499_v8 = vstv %s2045_s11  ;;  %s2592_s11 = sld [smem:[#allocation3 + $0x16]] }
  0x50   :  { %v501_v9 = vmul.f32 %v499_v8, %v2338_v22  ;;  %v500_v10 = vmul.f32 %v499_v8, %v2326_v16  ;;  %v521_v11 = vstv %s2081_s2  ;;  %v502_v13 = vmul.f32 0.0, %v499_v8  ;;  %s2126_s2 = sld [smem:[#allocation7 + $0x1]] }
  0x51   :  { %v522_v0 = vmul.f32 %v521_v11, %v2326_v16  ;;  %v524_v3 = vmul.f32 0.0, %v521_v11  ;;  %v523_v14 = vmul.f32 %v521_v11, %v2338_v22  ;;  %v573_v17 = vstv %s2047_s13  ;;  %s2060_s13 = sld [smem:[#allocation3 + $0x17]] }
  0x52   :  { %280 = vrot.lane.b32.xlu1 %v274_v23, %s2243_s24  ;;  %262 = vrot.lane.b32.xlu0 %v254_v24, %s2243_s24  ;;  %v575_v19 = vmul.f32 %v2423_v15, %v573_v17  ;;  %v574_v20 = vmul.f32 0.0, %v573_v17  ;;  %v2430_v16 = vcombine.high %v2423_v15, %v2423_v15  ;;  %v594_v21 = vstv %s2083_s15  ;;  %s2625_s15 = sld [smem:[#allocation3 + $0x33]] }
  0x53   :  { %v595_v22 = vmul.f32 0.0, %v594_v21  ;;  %v615_v29 = vstv %s2048_s16  ;;  %v636_v33 = vstv %s2084_s17  ;;  %v731_v2 = vstv %s2051_s22  ;;  %s2637_s16 = sld [smem:[#allocation3 + $0x9]]  ;;  %s2660_s17 = sld [smem:[#allocation3 + $0x18]] }
  0x54   :  { %v576_v23 = vmul.f32 %v573_v17, %v2430_v16  ;;  %v597_v24 = vmul.f32 %v594_v21, %v2430_v16  ;;  %v2470_v45 = vsel %vm2356_vm3, %v2430_v16, 0.0  ;;  %v752_v8 = vstv %s2087_s23  ;;  %s2063_s22 = sld [smem:[#allocation3 + $0x1a]]  ;;  %s2092_s23 = sld [smem:[#allocation3 + $0x37]] }
  0x56   :  { %284 = vrot.lane.b32.xlu1 %v276_v26, %s2243_s24  ;;  %282 = vrot.lane.b32.xlu0 %v275_v27, %s2243_s24  ;;  %v596_v26 = vmul.f32 %v2423_v15, %v594_v21  ;;  %v2442_v27 = vsel %vm2315_vm0, %v2423_v15, 0.0 }
  0x57   :  { %v638_v39 = vmul.f32 %v636_v33, %v2442_v27  ;;  %v753_v11 = vmul.f32 %v752_v8, %v2442_v27 }
  0x5a   :  { %303 = vrot.lane.b32.xlu1 %v296_v31, %s2244_s1  ;;  %301 = vrot.lane.b32.xlu0 %v295_v32, %s2244_s1  ;;  %v617_v31 = vmul.f32 %v615_v29, %v2442_v27  ;;  %v616_v32 = vmul.f32 0.0, %v615_v29 }
  0x5e   :  { %323 = vrot.lane.b32.xlu1 %v317_v35, %s2244_s1  ;;  %305 = vrot.lane.b32.xlu0 %v297_v36, %s2244_s1  ;;  %v2450_v35 = vsel %vm2328_vm1, %v2430_v16, 0.0  ;;  %v637_v36 = vmul.f32 0.0, %v636_v33 }
  0x5f   :  { %v754_v17 = vmul.f32 %v752_v8, %v2450_v35 }
  0x62   :  { %327 = vrot.lane.b32.xlu1 %v319_v37, %s2244_s1  ;;  %325 = vrot.lane.b32.xlu0 %v318_v38, %s2244_s1  ;;  %v618_v37 = vmul.f32 %v615_v29, %v2450_v35  ;;  %v639_v38 = vmul.f32 %v636_v33, %v2450_v35 }
  0x66   :  { %344 = vrot.lane.b32.xlu1 %v339_v40, %s2245_s29  ;;  %342 = vrot.lane.b32.xlu0 %v338_v41, %s2245_s29  ;;  %v2462_v40 = vsel %vm2343_vm2, %v2423_v15, 0.0  ;;  %v657_v41 = vstv %s2049_s18  ;;  %s2695_s18 = sld [smem:[#allocation3 + $0x34]] }
  0x67   :  { %v659_v42 = vmul.f32 %v657_v41, %v2462_v40 }
  0x6a   :  { %361 = vrot.lane.b32.xlu1 %v356_v43, %s2245_s29  ;;  %359 = vrot.lane.b32.xlu0 %v355_v44, %s2245_s29  ;;  %v658_v43 = vmul.f32 0.0, %v657_v41  ;;  %v678_v44 = vstv %s2085_s19  ;;  %s2701_s19 = sld [smem:[#allocation3 + $0x2d]] }
  0x6b   :  { %v679_v48 = vmul.f32 0.0, %v678_v44  ;;  %v680_v53 = vmul.f32 %v678_v44, %v2462_v40 }
  0x6e   :  { %379 = vrot.lane.b32.xlu1 %v372_v46, %s2246_s6  ;;  %377 = vrot.lane.b32.xlu0 %v371_v47, %s2246_s6 }
  0x72   :  { %399 = vrot.lane.b32.xlu1 %v393_v49, %s2246_s6  ;;  %381 = vrot.lane.b32.xlu0 %v373_v50, %s2246_s6  ;;  %v660_v49 = vmul.f32 %v657_v41, %v2470_v45 }
  0x76   :  { %403 = vrot.lane.b32.xlu1 %v395_v51, %s2246_s6  ;;  %401 = vrot.lane.b32.xlu0 %v394_v52, %s2246_s6  ;;  %v681_v52 = vmul.f32 %v678_v44, %v2470_v45 }
  0x7a   :  { %422 = vrot.lane.b32.xlu1 %v415_v54, %s2247_s9  ;;  %420 = vrot.lane.b32.xlu0 %v414_v55, %s2247_s9  ;;  %v699_v54 = vstv %s2050_s20  ;;  %s2756_s20 = sld [smem:[#allocation3 + $0x19]] }
  0x7e   :  { %442 = vrot.lane.b32.xlu1 %v436_v57, %s2247_s9  ;;  %424 = vrot.lane.b32.xlu0 %v416_v58, %s2247_s9  ;;  %v701_v57 = vmul.f32 %v699_v54, %v2430_v16  ;;  %v700_v58 = vmul.f32 %v2423_v15, %v699_v54 }
  0x82   :  { %446 = vrot.lane.b32.xlu1 %v438_v59, %s2247_s9  ;;  %444 = vrot.lane.b32.xlu0 %v437_v60, %s2247_s9  ;;  %v715_v59 = vstv %s2086_s4  ;;  %s2090_s4 = sld [smem:[#allocation3 + $0x35]] }
  0x86   :  { %465 = vrot.lane.b32.xlu1 %v458_v62, %s2248_s12  ;;  %463 = vrot.lane.b32.xlu0 %v457_v63, %s2248_s12  ;;  %v717_v62 = vmul.f32 %v715_v59, %v2430_v16  ;;  %v716_v63 = vmul.f32 %v2423_v15, %v715_v59 }
  0x8a   :  { %485 = vrot.lane.b32.xlu1 %v479_v4, %s2248_s12  ;;  %467 = vrot.lane.b32.xlu0 %v459_v5, %s2248_s12 }
  0x8e   :  { %489 = vrot.lane.b32.xlu1 %v481_v6, %s2248_s12  ;;  %487 = vrot.lane.b32.xlu0 %v480_v7, %s2248_s12  ;;  %v733_v6 = vmul.f32 %v731_v2, %v2450_v35  ;;  %v732_v7 = vmul.f32 %v731_v2, %v2442_v27 }
  0x92   :  { %508 = vrot.lane.b32.xlu1 %v501_v9, %s2249_s14  ;;  %506 = vrot.lane.b32.xlu0 %v500_v10, %s2249_s14 }
  0x96   :  { %528 = vrot.lane.b32.xlu1 %v522_v0, %s2249_s14  ;;  %510 = vrot.lane.b32.xlu0 %v502_v13, %s2249_s14  ;;  %v734_v0 = vmul.f32 0.0, %v731_v2 }
  0x9a   :  { %532 = vrot.lane.b32.xlu1 %v524_v3, %s2249_s14  ;;  %530 = vrot.lane.b32.xlu0 %v523_v14, %s2249_s14  ;;  %v755_v14 = vmul.f32 0.0, %v752_v8 }
  0x9e   :  { %582 = vrot.lane.b32.xlu1 %v575_v19, %s2242_s21  ;;  %580 = vrot.lane.b32.xlu0 %v574_v20, %s2242_s21  ;;  %v773_v19 = vstv %s2052_s25  ;;  %s2065_s25 = sld [smem:[#allocation3 + $0x1c]] }
  0xa2   :  { %601 = vrot.lane.b32.xlu1 %v595_v22, %s2242_s21  ;;  %584 = vrot.lane.b32.xlu0 %v576_v23, %s2242_s21  ;;  %v775_v22 = vmul.f32 %v773_v19, %v2470_v45  ;;  %v774_v23 = vmul.f32 %v773_v19, %v2462_v40 }
  0xa6   :  { %605 = vrot.lane.b32.xlu1 %v597_v24, %s2242_s21  ;;  %603 = vrot.lane.b32.xlu0 %v596_v26, %s2242_s21  ;;  %v815_v24 = vstv %s2053_s26  ;;  %s2093_s26 = sld [smem:[#allocation3 + $0x38]] }
  0xaa   :  { %624 = vrot.lane.b32.xlu1 %v617_v31, %s2243_s24  ;;  %622 = vrot.lane.b32.xlu0 %v616_v32, %s2243_s24  ;;  %v816_v31 = vmul.f32 %v2423_v15, %v815_v24  ;;  %v776_v32 = vmul.f32 0.0, %v773_v19 }
  0xae   :  { %643 = vrot.lane.b32.xlu1 %v637_v36, %s2243_s24  ;;  %626 = vrot.lane.b32.xlu0 %v618_v37, %s2243_s24  ;;  %v818_v37 = vmul.f32 0.0, %v815_v24 }
  0xb2   :  { %647 = vrot.lane.b32.xlu1 %v639_v38, %s2243_s24  ;;  %645 = vrot.lane.b32.xlu0 %v638_v39, %s2243_s24  ;;  %v817_v38 = vmul.f32 %v815_v24, %v2430_v16  ;;  %v857_v39 = vstv %s2054_s0  ;;  %s2066_s0 = sld [smem:[#allocation3 + $0x1d]] }
  0xb3   :  { %v858_v44 = vmul.f32 %v857_v39, %v2442_v27 }
  0xb4   :  { %v2472_v46 = vpop.permute.xlu1 %219  ;;  %v2474_v47 = vpop.permute.xlu0 %215 }
  0xb5   :  { %3743 = vst [vmem:[#allocation20_spill] sm:$0xff] %v2474_v47  ;;  %v2682_v47 = vstv %s2637_s16  ;;  %s2099_s16 = sld [smem:[#allocation3 + $0x3e]] }
  0xb6   :  { %666 = vrot.lane.b32.xlu1 %v659_v42, %s2244_s1  ;;  %664 = vrot.lane.b32.xlu0 %v658_v43, %s2244_s1  ;;  %v859_v43 = vmul.f32 %v857_v39, %v2450_v35 }
  0xb8   :  { %v2479_v50 = vpop.permute.xlu1 %237  ;;  %v2481_v51 = vpop.permute.xlu0 %217 }
  0xb9   :  { %3744 = vst [vmem:[#allocation21_spill] sm:$0xff] %v2479_v50  ;;  %3745 = vst [vmem:[#allocation22_spill] sm:$0xff] %v2481_v51 }
  0xba   :  { %685 = vrot.lane.b32.xlu1 %v679_v48, %s2244_s1  ;;  %668 = vrot.lane.b32.xlu0 %v660_v49, %s2244_s1  ;;  %v930_v48 = vstv %s2056_s27  ;;  %v2555_v49 = vld.sshfl [vmem:[#allocation10 + $0x8] sm:$0x33 pattern:$0x76325410]  ;;  %s2094_s27 = sld [smem:[#allocation3 + $0x39]] }
  0xbb   :  { %v931_v54 = vmul.f32 0.0, %v930_v48  ;;  %v932_v2 = vmul.f32 %v2555_v49, %v930_v48 }
  0xbc   :  { %v2487_v55 = vpop.permute.xlu1 %241  ;;  %v2489_v56 = vpop.permute.xlu0 %239 }
  0xbd   :  { %3746 = vst [vmem:[#allocation23_spill] sm:$0xff] %v2489_v56 }
  0xbe   :  { %689 = vrot.lane.b32.xlu1 %v681_v52, %s2244_s1  ;;  %687 = vrot.lane.b32.xlu0 %v680_v53, %s2244_s1 }
  0xc0   :  { %v2495_v60 = vpop.permute.xlu1 %260  ;;  %v2497_v61 = vpop.permute.xlu0 %258 }
  0xc1   :  { %3747 = vst [vmem:[#allocation24_spill] sm:$0xff] %v2495_v60  ;;  %3748 = vst [vmem:[#allocation25_spill] sm:$0xff] %v2497_v61 }
  0xc2   :  { %706 = vrot.lane.b32.xlu1 %v701_v57, %s2245_s29  ;;  %704 = vrot.lane.b32.xlu0 %v700_v58, %s2245_s29  ;;  %v860_v57 = vmul.f32 0.0, %v857_v39  ;;  %v2565_v58 = vcombine.high %v2555_v49, %v2555_v49 }
  0xc4   :  { %v2503_v4 = vpop.permute.xlu1 %280  ;;  %v2505_v5 = vpop.permute.xlu0 %262  ;;  %v2590_v19 = vsel %vm2328_vm1, %v2565_v58, 0.0 }
  0xc5   :  { %3749 = vst [vmem:[#allocation26_spill] sm:$0xff] %v2503_v4  ;;  %v266_v50 = vsel %vm264_vm5, %v2495_v60, %v2505_v5 }
  0xc6   :  { %722 = vrot.lane.b32.xlu1 %v717_v62, %s2245_s29  ;;  %720 = vrot.lane.b32.xlu0 %v716_v63, %s2245_s29  ;;  %v933_v63 = vmul.f32 %v930_v48, %v2565_v58  ;;  %v2619_v48 = vstv %s2073_s8  ;;  %s2096_s8 = sld [smem:[#allocation3 + $0x3b]] }
  0xc7   :  { %3760 = vst [vmem:[#allocation37_spill] sm:$0xff] %v2619_v48  ;;  %v203_v4 = vmul.f32 %v2619_v48, %v2354_v28 }
  0xc8   :  { %v2511_v9 = vpop.permute.xlu1 %284  ;;  %v2513_v10 = vpop.permute.xlu0 %282 }
  0xc9   :  { %3750 = vst [vmem:[#allocation27_spill] sm:$0xff] %v2513_v10 }
  0xca   :  { %740 = vrot.lane.b32.xlu1 %v733_v6, %s2246_s6  ;;  %738 = vrot.lane.b32.xlu0 %v732_v7, %s2246_s6  ;;  %v2578_v6 = vsel %vm2315_vm0, %v2555_v49, 0.0  ;;  %v972_v7 = vstv %s2057_s28  ;;  %s2067_s28 = sld [smem:[#allocation3 + $0x1e]] }
  0xcc   :  { %v2518_v13 = vpop.permute.xlu1 %303  ;;  %v2520_v3 = vpop.permute.xlu0 %301 }
  0xcd   :  { %3751 = vst [vmem:[#allocation28_spill] sm:$0xff] %v2518_v13  ;;  %3752 = vst [vmem:[#allocation29_spill] sm:$0xff] %v2520_v3  ;;  %v1088_v3 = vstv %s2060_s13  ;;  %s2098_s13 = sld [smem:[#allocation3 + $0x3d]] }
  0xce   :  { %759 = vrot.lane.b32.xlu1 %v753_v11, %s2246_s6  ;;  %742 = vrot.lane.b32.xlu0 %v734_v0, %s2246_s6  ;;  %v974_v0 = vmul.f32 %v972_v7, %v2578_v6 }
  0xd0   :  { %v2525_v20 = vpop.permute.xlu1 %323  ;;  %v2527_v21 = vpop.permute.xlu0 %305 }
  0xd1   :  { %3753 = vst [vmem:[#allocation30_spill] sm:$0xff] %v2525_v20 }
  0xd2   :  { %763 = vrot.lane.b32.xlu1 %v755_v14, %s2246_s6  ;;  %761 = vrot.lane.b32.xlu0 %v754_v17, %s2246_s6  ;;  %v973_v14 = vmul.f32 0.0, %v972_v7  ;;  %v1014_v17 = vstv %s2058_s30  ;;  %s2882_s30 = sld [smem:[#allocation3 + $0x3a]] }
  0xd3   :  { %v1015_v24 = vmul.f32 0.0, %v1014_v17 }
  0xd4   :  { %v2533_v26 = vpop.permute.xlu1 %327  ;;  %v2535_v29 = vpop.permute.xlu0 %325 }
  0xd5   :  { %3754 = vst [vmem:[#allocation31_spill] sm:$0xff] %v2535_v29 }
  0xd6   :  { %782 = vrot.lane.b32.xlu1 %v775_v22, %s2247_s9  ;;  %780 = vrot.lane.b32.xlu0 %v774_v23, %s2247_s9 }
  0xd8   :  { %v2540_v33 = vpop.permute.xlu1 %344  ;;  %v2542_v36 = vpop.permute.xlu0 %342  ;;  %v1072_v12 = vstv %s2882_s30  ;;  %s2250_s30 = smov 17  }
  0xd9   :  { %3755 = vst [vmem:[#allocation32_spill] sm:$0xff] %v2542_v36 }
  0xda   :  { %822 = vrot.lane.b32.xlu1 %v816_v31, %s2248_s12  ;;  %784 = vrot.lane.b32.xlu0 %v776_v32, %s2247_s9  ;;  %v975_v31 = vmul.f32 %v972_v7, %v2590_v19  ;;  %v2601_v32 = vstv %s72_s7  ;;  %s2068_s7 = sld [smem:[#allocation3 + $0x1f]] }
  0xdb   :  { %v196_v39 = vmul.f32 %v2601_v32, %v2354_v28  ;;  %v197_v7 = vmul.f32 %v2601_v32, %v2366_v34  ;;  %v309_v28 = vsel %vm307_vm6, %v2518_v13, %v2527_v21 }
  0xdc   :  { %v2547_v41 = vpop.permute.xlu1 %361  ;;  %v2549_v42 = vpop.permute.xlu0 %359 }
  0xdd   :  { %3756 = vst [vmem:[#allocation33_spill] sm:$0xff] %v2549_v42 }
  0xde   :  { %826 = vrot.lane.b32.xlu1 %v818_v37, %s2248_s12  ;;  %824 = vrot.lane.b32.xlu0 %v817_v38, %s2248_s12  ;;  %v2606_v37 = vsel %vm2356_vm3, %v2565_v58, 0.0  ;;  %v2611_v38 = vsel %vm2343_vm2, %v2555_v49, 0.0 }
  0xdf   :  { %3758 = vst [vmem:[#allocation35_spill] sm:$0xff] %v2611_v38 }
  0xe0   :  { %v2557_v52 = vpop.permute.xlu1 %379  ;;  %v2559_v53 = vpop.permute.xlu0 %377 }
  0xe2   :  { %866 = vrot.lane.b32.xlu1 %v859_v43, %s2249_s14  ;;  %864 = vrot.lane.b32.xlu0 %v858_v44, %s2249_s14 }
  0xe4   :  { %v2567_v59 = vpop.permute.xlu1 %399  ;;  %v2569_v62 = vpop.permute.xlu0 %381 }
  0xe5   :  { %3757 = vst [vmem:[#allocation34_spill] sm:$0xff] %v2567_v59 }
  0xe6   :  { %937 = vrot.lane.b32.xlu1 %v931_v54, %s2242_s21  ;;  %868 = vrot.lane.b32.xlu0 %v860_v57, %s2249_s14  ;;  %v1017_v54 = vmul.f32 %v1014_v17, %v2606_v37  ;;  %v1016_v57 = vmul.f32 %v1014_v17, %v2611_v38  ;;  %v223_v17 = vsel %vm221_vm4, %v2481_v51, %v2472_v46  ;;  %v1091_v51 = vmul.f32 0.0, %v1088_v3 }
  0xe8   :  { %v2580_v8 = vpop.permute.xlu1 %403  ;;  %v2582_v11 = vpop.permute.xlu0 %401 }
  0xea   :  { %941 = vrot.lane.b32.xlu1 %v933_v63, %s2242_s21  ;;  %939 = vrot.lane.b32.xlu0 %v932_v2, %s2242_s21  ;;  %v2627_v63 = vstv %s162_s10  ;;  %v1056_v2 = vstv %s2592_s11  ;;  %s2069_s10 = sld [smem:[#allocation3 + $0x20]]  ;;  %s2097_s11 = sld [smem:[#allocation3 + $0x3c]] }
  0xeb   :  { %v1057_v20 = vmul.f32 %v2555_v49, %v1056_v2 }
  0xec   :  { %v2594_v22 = vpop.permute.xlu1 %422  ;;  %v2596_v23 = vpop.permute.xlu0 %420 }
  0xee   :  { %981 = vrot.lane.b32.xlu1 %v974_v0, %s2243_s24  ;;  %979 = vrot.lane.b32.xlu0 %v973_v14, %s2243_s24  ;;  %v199_v0 = vadd.f32 %v196_v39, %v2627_v63  ;;  %v1058_v39 = vmul.f32 %v1056_v2, %v2565_v58 }
  0xf0   :  { %v2615_v43 = vpop.permute.xlu1 %442  ;;  %v2617_v44 = vpop.permute.xlu0 %424  ;;  %v228_v61 = vadd.f32 %v223_v17, %v199_v0  ;;  %v1089_v0 = vmul.f32 %v1088_v3, %v2578_v6  ;;  %v794_v17 = vstv %s2625_s15  ;;  %s2071_s15 = sld [smem:[#allocation3 + $0x22]] }
  0xf1   :  { %3759 = vst [vmem:[#allocation36_spill] sm:$0xff] %v2615_v43 }
  0xf2   :  { %1021 = vrot.lane.b32.xlu1 %v1015_v24, %s2244_s1  ;;  %983 = vrot.lane.b32.xlu0 %v975_v31, %s2243_s24  ;;  %v204_v24 = vmul.f32 %v2619_v48, %v2366_v34  ;;  %v2644_v31 = vstv %s2126_s2  ;;  %v200_v34 = vadd.f32 %v197_v7, %v2627_v63  ;;  %v271_v48 = vadd.f32 %v266_v50, %v228_v61  ;;  %s2070_s2 = sld [smem:[#allocation3 + $0x21]] }
  0xf3   :  { %3761 = vst [vmem:[#allocation38_spill] sm:$0xff] %v2644_v31  ;;  %v1090_v7 = vmul.f32 %v1088_v3, %v2590_v19  ;;  %v206_v60 = vadd.f32 %v203_v4, %v2644_v31  ;;  %v244_v50 = vsel %vm221_vm4, %v2489_v56, %v2487_v55  ;;  %v427_v3 = vsel %vm426_vm9, %v2596_v23, %v2594_v22 }
  0xf4   :  { %v2633_v14 = vpop.permute.xlu1 %446  ;;  %v2635_v1 = vpop.permute.xlu0 %444  ;;  %v207_v2 = vadd.f32 %v204_v24, %v2644_v31  ;;  %v347_v24 = vsel %vm346_vm7, %v2542_v36, %v2540_v33  ;;  %v229_v13 = vadd.f32 %v2472_v46, %v200_v34  ;;  %v314_v61 = vadd.f32 %v309_v28, %v271_v48 }
  0xf5   :  { %v384_v31 = vsel %vm383_vm8, %v2559_v53, %v2557_v52  ;;  %v795_v36 = vmul.f32 %v794_v17, %v2462_v40  ;;  %v287_v48 = vsel %vm264_vm5, %v2513_v10, %v2511_v9  ;;  %v385_v10 = vsel %vm383_vm8, %v2557_v52, %v2569_v62 }
  0xf6   :  { %1025 = vrot.lane.b32.xlu1 %v1017_v54, %s2244_s1  ;;  %1023 = vrot.lane.b32.xlu0 %v1016_v57, %s2244_s1  ;;  %v250_v4 = vadd.f32 %v2487_v55, %v207_v2  ;;  %v272_v46 = vadd.f32 %v2505_v5, %v229_v13  ;;  %v352_v34 = vadd.f32 %v347_v24, %v314_v61  ;;  %v1130_v61 = vstv %s2660_s17  ;;  %s2072_s17 = sld [smem:[#allocation3 + $0x23]] }
  0xf7   :  { %v249_v55 = vadd.f32 %v244_v50, %v206_v60  ;;  %v796_v5 = vmul.f32 %v794_v17, %v2470_v45  ;;  %v561_v13 = vmul.f32 %v2682_v47, %v2462_v40  ;;  %v330_v50 = vsel %vm307_vm6, %v2535_v29, %v2533_v26 }
  0xf8   :  { %v2656_v54 = vpop.permute.xlu1 %465  ;;  %v2658_v57 = vpop.permute.xlu0 %463  ;;  %v293_v2 = vadd.f32 %v2511_v9, %v250_v4  ;;  %v315_v28 = vadd.f32 %v2527_v21, %v272_v46  ;;  %v797_v4 = vmul.f32 0.0, %v794_v17  ;;  %v363_v46 = vsel %vm346_vm7, %v2549_v42, %v2547_v41 }
  0xf9   :  { %v292_v60 = vadd.f32 %v287_v48, %v249_v55  ;;  %v470_v56 = vsel %vm469_vm10, %v2658_v57, %v2656_v54  ;;  %v428_v52 = vsel %vm426_vm9, %v2594_v22, %v2617_v44  ;;  %v1132_v62 = vmul.f32 %v1130_v61, %v2606_v37 }
  0xfa   :  { %1063 = vrot.lane.b32.xlu1 %v1058_v39, %s2245_s29  ;;  %1061 = vrot.lane.b32.xlu0 %v1057_v20, %s2245_s29  ;;  %v336_v9 = vadd.f32 %v2533_v26, %v293_v2  ;;  %v353_v21 = vadd.f32 %v2540_v33, %v315_v28  ;;  %v1131_v26 = vmul.f32 %v1130_v61, %v2611_v38  ;;  %v836_v2 = vstv %s2695_s18  ;;  %s2101_s18 = sld [smem:[#allocation3 + $0x40]] }
  0xfb   :  { %v335_v33 = vadd.f32 %v330_v50, %v292_v60  ;;  %v405_v55 = vsel %vm383_vm8, %v2567_v59, %v2582_v11  ;;  %v406_v22 = vsel %vm383_vm8, %v2582_v11, %v2580_v8  ;;  %v448_v28 = vsel %vm426_vm9, %v2615_v43, %v2635_v1 }
  0xfc   :  { %v2679_v20 = vpop.permute.xlu1 %485  ;;  %v468_v39 = vpop.permute.xlu0 %467  ;;  %v369_v48 = vadd.f32 %v2547_v41, %v336_v9  ;;  %v449_v8 = vsel %vm426_vm9, %v2635_v1, %v2633_v14  ;;  %v2752_v11 = vstv %s2701_s19  ;;  %v1487_v42 = vstv %s2070_s2  ;;  %s2102_s19 = sld [smem:[#allocation3 + $0x41]]  ;;  %s2112_s2 = sld [smem:[#allocation9 + $0x4]] }
  0xfd   :  { %3762 = vst [vmem:[#allocation39_spill] sm:$0xff] %v2679_v20  ;;  %v471_v44 = vsel %vm469_vm10, %v2656_v54, %v468_v39  ;;  %3763 = vst [vmem:[#allocation40_spill] sm:$0xff] %v2752_v11  ;;  %v562_v54 = vmul.f32 %v2682_v47, %v2470_v45 }
  0xfe   :  { %1097 = vrot.lane.b32.xlu1 %v1090_v7, %s2246_s6  ;;  %1095 = vrot.lane.b32.xlu0 %v1089_v0, %s2246_s6  ;;  %v390_v7 = vadd.f32 %v384_v31, %v352_v34 }
 0x100   :  { %v490_v0 = vpop.permute.xlu1 %489  ;;  %v488_v24 = vpop.permute.xlu0 %487  ;;  %v433_v31 = vadd.f32 %v427_v3, %v390_v7  ;;  %v412_v7 = vadd.f32 %v406_v22, %v369_v48  ;;  %v1172_v22 = vstv %s2756_s20  ;;  %s2103_s20 = sld [smem:[#allocation3 + $0x42]] }
 0x101   :  { %v492_v1 = vsel %vm469_vm10, %v488_v24, %v490_v0 }
 0x102   :  { %801 = vrot.lane.b32.xlu1 %v795_v36, %s2247_s9  ;;  %1099 = vrot.lane.b32.xlu0 %v1091_v51, %s2246_s6  ;;  %v391_v36 = vadd.f32 %v385_v10, %v353_v21  ;;  %v476_v51 = vadd.f32 %v470_v56, %v433_v31  ;;  %v368_v10 = vadd.f32 %v363_v46, %v335_v33  ;;  %v1133_v33 = vmul.f32 0.0, %v1130_v61 }
 0x103   :  { %v491_v21 = vsel %vm469_vm10, %v2679_v20, %v488_v24  ;;  %v837_v31 = vmul.f32 %v2423_v15, %v836_v2  ;;  %v455_v46 = vadd.f32 %v449_v8, %v412_v7  ;;  %v568_v15 = vmul.f32 %v2752_v11, %v2462_v40 }
 0x104   :  { %v509_v17 = vpop.permute.xlu1 %508  ;;  %v2730_v34 = vpop.permute.xlu0 %506  ;;  %v434_v3 = vadd.f32 %v428_v52, %v391_v36  ;;  %v411_v39 = vadd.f32 %v405_v55, %v368_v10  ;;  %v838_v55 = vmul.f32 %v836_v2, %v2430_v16 }
 0x105   :  { %v513_v41 = vsel %vm512_vm11, %v2730_v34, %v509_v17  ;;  %v498_v36 = vadd.f32 %v492_v1, %v455_v46 }
 0x106   :  { %v519_v56 = vadd.f32 %v513_v41, %v476_v51  ;;  %805 = vrot.lane.b32.xlu1 %v797_v4, %s2247_s9  ;;  %803 = vrot.lane.b32.xlu0 %v796_v5, %s2247_s9  ;;  %v477_v60 = vadd.f32 %v471_v44, %v434_v3  ;;  %v454_v4 = vadd.f32 %v448_v28, %v411_v39  ;;  %v878_v28 = vstv %s2090_s4  ;;  %s2104_s4 = sld [smem:[#allocation3 + $0x43]] }
 0x107   :  { %v1174_v3 = vmul.f32 %v1172_v22, %v2565_v58  ;;  %v879_v8 = vmul.f32 %v878_v28, %v2442_v27 }
 0x108   :  { %v2758_v5 = vpop.permute.xlu1 %528  ;;  %v511_v50 = vpop.permute.xlu0 %510  ;;  %v2760_v9 = vadd.f32 %v561_v13, %v519_v56  ;;  %v569_v13 = vmul.f32 %v2752_v11, %v2470_v45  ;;  %v497_v48 = vadd.f32 %v491_v21, %v454_v4  ;;  %v839_v45 = vmul.f32 0.0, %v836_v2 }
 0x109   :  { %3764 = vst [vmem:[#allocation41_spill] sm:$0xff] %v2758_v5  ;;  %v514_v14 = vsel %vm512_vm11, %v509_v17, %v511_v50  ;;  %v1173_v56 = vmul.f32 %v2555_v49, %v1172_v22  ;;  %v880_v50 = vmul.f32 %v878_v28, %v2450_v35  ;;  %v1214_v21 = vstv %s2063_s22  ;;  %s2105_s22 = sld [smem:[#allocation3 + $0x44]] }
 0x10a   :  { %v520_v52 = vadd.f32 %v514_v14, %v477_v60  ;;  %1139 = vrot.lane.b32.xlu1 %v1132_v62, %s2247_s9  ;;  %1137 = vrot.lane.b32.xlu0 %v1131_v26, %s2247_s9  ;;  %v881_v60 = vmul.f32 0.0, %v878_v28  ;;  %v1216_v27 = vmul.f32 %v1214_v21, %v2590_v19  ;;  %v951_v4 = vstv %s2092_s23  ;;  %s2106_s23 = sld [smem:[#allocation3 + $0x45]] }
 0x10b   :  { %v952_v35 = vmul.f32 0.0, %v951_v4  ;;  %v1151_v11 = vstv %s2097_s11  ;;  %s2111_s11 = sld [smem:[#allocation9 + $0x3]] }
 0x10c   :  { %v2771_v0 = vadd.f32 %v562_v54, %v520_v52  ;;  %v533_v24 = vpop.permute.xlu1 %532  ;;  %v531_v51 = vpop.permute.xlu0 %530  ;;  %v1175_v54 = vmul.f32 0.0, %v1172_v22  ;;  %v1154_v43 = vmul.f32 0.0, %v1151_v11  ;;  %v1153_v59 = vmul.f32 %v1151_v11, %v2606_v37 }
 0x10d   :  { %v534_v62 = vsel %vm512_vm11, %v2758_v5, %v531_v51  ;;  %v535_v26 = vsel %vm512_vm11, %v531_v51, %v533_v24  ;;  %v953_v24 = vmul.f32 %v2555_v49, %v951_v4  ;;  %v2830_v51 = vld.sshfl [vmem:[#allocation10 + $0xc] sm:$0x33 pattern:$0x76325410] }
 0x10e   :  { %v540_v61 = vadd.f32 %v534_v62, %v497_v48  ;;  %v541_v17 = vadd.f32 %v535_v26, %v498_v36  ;;  %843 = vrot.lane.b32.xlu1 %v837_v31, %s2248_s12  ;;  %1141 = vrot.lane.b32.xlu0 %v1133_v33, %s2247_s9  ;;  %v1215_v31 = vmul.f32 %v1214_v21, %v2578_v6  ;;  %v1217_v33 = vmul.f32 0.0, %v1214_v21 }
 0x10f   :  { %v954_v36 = vmul.f32 %v951_v4, %v2565_v58  ;;  %v2861_v21 = vsel %vm2315_vm0, %v2830_v51, 0.0 }
 0x110   :  { %v2782_v44 = vpop.permute.xlu1 %582  ;;  %v2784_v41 = vpop.permute.xlu0 %580  ;;  %v2786_v40 = vadd.f32 %v569_v13, %v541_v17  ;;  %v2788_v10 = vadd.f32 %v568_v15, %v540_v61  ;;  %v1287_v15 = vstv %s2065_s25  ;;  %s2107_s25 = sld [smem:[#allocation3 + $0x46]] }
 0x111   :  { %v1289_v61 = vmul.f32 %v2830_v51, %v1287_v15  ;;  %v1288_v17 = vmul.f32 0.0, %v1287_v15 }
 0x112   :  { %3765 = vst [vmem:[#allocation42_spill] sm:$0xff] %v2788_v10  ;;  %847 = vrot.lane.b32.xlu1 %v839_v45, %s2248_s12  ;;  %845 = vrot.lane.b32.xlu0 %v838_v55, %s2248_s12  ;;  %v2841_v45 = vcombine.high %v2830_v51, %v2830_v51  ;;  %v993_v55 = vstv %s2093_s26  ;;  %s2108_s26 = sld [smem:[#allocation3 + $0x47]] }
 0x114   :  { %v2794_v16 = vpop.permute.xlu1 %601  ;;  %v2796_v2 = vpop.permute.xlu0 %584  ;;  %v1290_v28 = vmul.f32 %v1287_v15, %v2841_v45 }
 0x115   :  { %3766 = vst [vmem:[#allocation43_spill] sm:$0xff] %v2794_v16 }
 0x116   :  { %1181 = vrot.lane.b32.xlu1 %v1174_v3, %s2248_s12  ;;  %1179 = vrot.lane.b32.xlu0 %v1173_v56, %s2248_s12  ;;  %v994_v56 = vmul.f32 0.0, %v993_v55 }
 0x118   :  { %v2801_v39 = vpop.permute.xlu1 %605  ;;  %v2803_v7 = vpop.permute.xlu0 %603 }
 0x119   :  { %3767 = vst [vmem:[#allocation44_spill] sm:$0xff] %v2803_v7  ;;  %v1445_v7 = vstv %s2069_s10  ;;  %s2110_s10 = sld [smem:[#allocation9 + $0x2]] }
 0x11a   :  { %885 = vrot.lane.b32.xlu1 %v879_v8, %s2249_s14  ;;  %1183 = vrot.lane.b32.xlu0 %v1175_v54, %s2248_s12  ;;  %v1446_v5 = vmul.f32 %v1445_v7, %v2861_v21  ;;  %v1448_v20 = vmul.f32 0.0, %v1445_v7 }
 0x11c   :  { %v2808_v1 = vpop.permute.xlu1 %624  ;;  %v2810_v14 = vpop.permute.xlu0 %622 }
 0x11e   :  { %889 = vrot.lane.b32.xlu1 %v881_v60, %s2249_s14  ;;  %887 = vrot.lane.b32.xlu0 %v880_v50, %s2249_s14  ;;  %v996_v60 = vmul.f32 %v993_v55, %v2590_v19  ;;  %v995_v50 = vmul.f32 %v993_v55, %v2578_v6 }
 0x120   :  { %v2816_v46 = vpop.permute.xlu1 %643  ;;  %v2818_v52 = vpop.permute.xlu0 %626 }
 0x121   :  { %3768 = vst [vmem:[#allocation45_spill] sm:$0xff] %v2816_v46 }
 0x122   :  { %1223 = vrot.lane.b32.xlu1 %v1216_v27, %s2249_s14  ;;  %1221 = vrot.lane.b32.xlu0 %v1215_v31, %s2249_s14  ;;  %v1329_v27 = vstv %s2066_s0  ;;  %s2091_s0 = sld [smem:[#allocation3 + $0x36]] }
 0x124   :  { %v2822_v13 = vpop.permute.xlu1 %647  ;;  %v2824_v48 = vpop.permute.xlu0 %645 }
 0x125   :  { %3769 = vst [vmem:[#allocation46_spill] sm:$0xff] %v2824_v48 }
 0x126   :  { %958 = vrot.lane.b32.xlu1 %v952_v35, %s2242_s21  ;;  %1225 = vrot.lane.b32.xlu0 %v1217_v33, %s2249_s14  ;;  %v1331_v35 = vmul.f32 %v1329_v27, %v2861_v21  ;;  %v1330_v33 = vmul.f32 0.0, %v1329_v27 }
 0x128   :  { %v2832_v62 = vpop.permute.xlu1 %666  ;;  %v2834_v26 = vpop.permute.xlu0 %664 }
 0x12a   :  { %962 = vrot.lane.b32.xlu1 %v954_v36, %s2242_s21  ;;  %960 = vrot.lane.b32.xlu0 %v953_v24, %s2242_s21  ;;  %v1035_v36 = vstv %s2094_s27  ;;  %v2873_v24 = vsel %vm2328_vm1, %v2841_v45, 0.0  ;;  %s2055_s27 = sld [smem:[#allocation3 + $0x12]] }
 0x12b   :  { %v1332_v55 = vmul.f32 %v1329_v27, %v2873_v24  ;;  %v1371_v27 = vstv %s2067_s28  ;;  %s2064_s28 = sld [smem:[#allocation3 + $0x1b]] }
 0x12c   :  { %v2843_v22 = vpop.permute.xlu1 %685  ;;  %v2845_v3 = vpop.permute.xlu0 %668 }
 0x12d   :  { %3770 = vst [vmem:[#allocation47_spill] sm:$0xff] %v2843_v22 }
 0x12e   :  { %1296 = vrot.lane.b32.xlu1 %v1289_v61, %s2242_s21  ;;  %1294 = vrot.lane.b32.xlu0 %v1288_v17, %s2242_s21  ;;  %v1036_v17 = vmul.f32 0.0, %v1035_v36 }
 0x130   :  { %v2850_v8 = vpop.permute.xlu1 %689  ;;  %v2852_v54 = vpop.permute.xlu0 %687 }
 0x131   :  { %3771 = vst [vmem:[#allocation48_spill] sm:$0xff] %v2852_v54  ;;  %v1074_v54 = vmul.f32 %v1072_v12, %v2565_v58 }
 0x132   :  { %1000 = vrot.lane.b32.xlu1 %v994_v56, %s2243_s24  ;;  %1298 = vrot.lane.b32.xlu0 %v1290_v28, %s2242_s21 }
 0x134   :  { %v2863_v31 = vpop.permute.xlu1 %706  ;;  %v2865_v4 = vpop.permute.xlu0 %704 }
 0x136   :  { %1004 = vrot.lane.b32.xlu1 %v996_v60, %s2243_s24  ;;  %1002 = vrot.lane.b32.xlu0 %v995_v50, %s2243_s24  ;;  %v1038_v60 = vmul.f32 %v1035_v36, %v2606_v37  ;;  %v1037_v50 = vmul.f32 %v1035_v36, %v2611_v38  ;;  %v2908_v36 = vsel %vm2356_vm3, %v2841_v45, 0.0 }
 0x137   :  { %3775 = vst [vmem:[#allocation52_spill] sm:$0xff] %v2908_v36 }
 0x138   :  { %v2875_v15 = vpop.permute.xlu1 %722  ;;  %v2877_v61 = vpop.permute.xlu0 %720 }
 0x139   :  { %3772 = vst [vmem:[#allocation49_spill] sm:$0xff] %v2877_v61 }
 0x13a   :  { %1338 = vrot.lane.b32.xlu1 %v1331_v35, %s2243_s24  ;;  %1336 = vrot.lane.b32.xlu0 %v1330_v33, %s2243_s24  ;;  %v2895_v35 = vsel %vm2343_vm2, %v2830_v51, 0.0 }
 0x13b   :  { %3773 = vst [vmem:[#allocation50_spill] sm:$0xff] %v2895_v35 }
 0x13c   :  { %v2884_v56 = vpop.permute.xlu1 %740  ;;  %v2886_v28 = vpop.permute.xlu0 %738 }
 0x13e   :  { %1042 = vrot.lane.b32.xlu1 %v1036_v17, %s2244_s1  ;;  %1340 = vrot.lane.b32.xlu0 %v1332_v55, %s2243_s24  ;;  %v1373_v17 = vmul.f32 %v1371_v27, %v2895_v35  ;;  %v1372_v55 = vmul.f32 0.0, %v1371_v27 }
 0x140   :  { %v2897_v33 = vpop.permute.xlu1 %759  ;;  %v2899_v18 = vpop.permute.xlu0 %742 }
 0x141   :  { %3774 = vst [vmem:[#allocation51_spill] sm:$0xff] %v2897_v33  ;;  %v1413_v33 = vstv %s2068_s7  ;;  %s2100_s7 = sld [smem:[#allocation3 + $0x3f]] }
 0x142   :  { %1046 = vrot.lane.b32.xlu1 %v1038_v60, %s2244_s1  ;;  %1044 = vrot.lane.b32.xlu0 %v1037_v50, %s2244_s1  ;;  %v1073_v60 = vmul.f32 %v2555_v49, %v1072_v12  ;;  %v1374_v50 = vmul.f32 %v1371_v27, %v2908_v36  ;;  %v1414_v30 = vmul.f32 %v2830_v51, %v1413_v33 }
 0x144   :  { %v2910_v25 = vpop.permute.xlu1 %763  ;;  %v2912_v10 = vpop.permute.xlu0 %761 }
 0x146   :  { %1380 = vrot.lane.b32.xlu1 %v1373_v17, %s2244_s1  ;;  %1378 = vrot.lane.b32.xlu0 %v1372_v55, %s2244_s1  ;;  %v1109_v17 = vstv %s2096_s8  ;;  %s2109_s8 = sld [smem:[#allocation9 + $0x1]] }
 0x147   :  { %v1110_v27 = vmul.f32 %v1109_v17, %v2578_v6  ;;  %v1112_v12 = vmul.f32 0.0, %v1109_v17  ;;  %v1111_v16 = vmul.f32 %v1109_v17, %v2590_v19  ;;  %v1152_v17 = vmul.f32 %v1151_v11, %v2611_v38 }
 0x148   :  { %v2918_v61 = vpop.permute.xlu1 %782  ;;  %v2920_v22 = vpop.permute.xlu0 %780 }
 0x14a   :  { %1077 = vrot.lane.b32.xlu1 %v1073_v60, %s2245_s29  ;;  %1382 = vrot.lane.b32.xlu0 %v1374_v50, %s2244_s1  ;;  %v1415_v60 = vmul.f32 %v1413_v33, %v2841_v45  ;;  %v1447_v33 = vmul.f32 %v1445_v7, %v2873_v24  ;;  %v1488_v7 = vmul.f32 %v1487_v42, %v2895_v35 }
 0x14c   :  { %v2926_v55 = vpop.permute.xlu1 %822  ;;  %v2928_v46 = vpop.permute.xlu0 %784 }
 0x14e   :  { %1418 = vrot.lane.b32.xlu1 %v1414_v30, %s2245_s29  ;;  %1079 = vrot.lane.b32.xlu0 %v1074_v54, %s2245_s29 }
 0x150   :  { %v2934_v50 = vpop.permute.xlu1 %826  ;;  %v2936_v48 = vpop.permute.xlu0 %824 }
 0x152   :  { %1116 = vrot.lane.b32.xlu1 %v1110_v27, %s2246_s6  ;;  %1420 = vrot.lane.b32.xlu0 %v1415_v60, %s2245_s29 }
 0x154   :  { %v2941_v30 = vpop.permute.xlu1 %866  ;;  %v2943_v54 = vpop.permute.xlu0 %864 }
 0x155   :  { %3776 = vst [vmem:[#allocation53_spill] sm:$0xff] %v2943_v54  ;;  %v3812_v54 = vld [vmem:[#allocation28_spill] sm:$0xff] }
 0x156   :  { %1120 = vrot.lane.b32.xlu1 %v1112_v12, %s2246_s6  ;;  %1118 = vrot.lane.b32.xlu0 %v1111_v16, %s2246_s6 }
 0x158   :  { %v2949_v27 = vpop.permute.xlu1 %937  ;;  %v2951_v60 = vpop.permute.xlu0 %868 }
 0x159   :  { %3777 = vst [vmem:[#allocation54_spill] sm:$0xff] %v2949_v27  ;;  %3778 = vst [vmem:[#allocation55_spill] sm:$0xff] %v2951_v60  ;;  %v3809_v60 = vld [vmem:[#allocation20_spill] sm:$0xff] }
 0x15a   :  { %1454 = vrot.lane.b32.xlu1 %v1447_v33, %s2246_s6  ;;  %1452 = vrot.lane.b32.xlu0 %v1446_v5, %s2246_s6  ;;  %v1489_v5 = vmul.f32 %v1487_v42, %v2908_v36 }
 0x15c   :  { %v2956_v12 = vpop.permute.xlu1 %941  ;;  %v2958_v16 = vpop.permute.xlu0 %939 }
 0x15d   :  { %3779 = vst [vmem:[#allocation56_spill] sm:$0xff] %v2956_v12  ;;  %3780 = vst [vmem:[#allocation57_spill] sm:$0xff] %v2958_v16  ;;  %v1193_v12 = vstv %s2098_s13  ;;  %s2113_s13 = sld [smem:[#allocation9 + $0x5]] }
 0x15e   :  { %1158 = vrot.lane.b32.xlu1 %v1152_v17, %s2247_s9  ;;  %1456 = vrot.lane.b32.xlu0 %v1448_v20, %s2246_s6  ;;  %v1194_v11 = vmul.f32 %v2555_v49, %v1193_v12 }
 0x160   :  { %v2963_v29 = vpop.permute.xlu1 %981  ;;  %v2965_v33 = vpop.permute.xlu0 %979 }
 0x161   :  { %3781 = vst [vmem:[#allocation58_spill] sm:$0xff] %v2963_v29  ;;  %3782 = vst [vmem:[#allocation59_spill] sm:$0xff] %v2965_v33  ;;  %v1490_v33 = vmul.f32 0.0, %v1487_v42  ;;  %v1196_v29 = vmul.f32 0.0, %v1193_v12 }
 0x162   :  { %1162 = vrot.lane.b32.xlu1 %v1154_v43, %s2247_s9  ;;  %1160 = vrot.lane.b32.xlu0 %v1153_v59, %s2247_s9 }
 0x164   :  { %v2971_v17 = vpop.permute.xlu1 %1021  ;;  %v2973_v20 = vpop.permute.xlu0 %983 }
 0x165   :  { %3783 = vst [vmem:[#allocation60_spill] sm:$0xff] %v2971_v17  ;;  %3784 = vst [vmem:[#allocation61_spill] sm:$0xff] %v2973_v20  ;;  %v1195_v17 = vmul.f32 %v1193_v12, %v2565_v58  ;;  %v1529_v20 = vstv %s2071_s15  ;;  %s2114_s15 = sld [smem:[#allocation9 + $0x6]] }
 0x166   :  { %1496 = vrot.lane.b32.xlu1 %v1489_v5, %s2247_s9  ;;  %1494 = vrot.lane.b32.xlu0 %v1488_v7, %s2247_s9  ;;  %v1531_v42 = vmul.f32 %v1529_v20, %v2841_v45  ;;  %v1530_v49 = vmul.f32 %v2830_v51, %v1529_v20  ;;  %v1235_v7 = vstv %s2099_s16  ;;  %v1532_v12 = vmul.f32 0.0, %v1529_v20  ;;  %s2115_s16 = sld [smem:[#allocation9 + $0x7]] }
 0x167   :  { %v1236_v58 = vmul.f32 %v1235_v7, %v2578_v6 }
 0x168   :  { %v2978_v43 = vpop.permute.xlu1 %1025  ;;  %v2980_v59 = vpop.permute.xlu0 %1023 }
 0x169   :  { %3785 = vst [vmem:[#allocation62_spill] sm:$0xff] %v2978_v43  ;;  %3786 = vst [vmem:[#allocation63_spill] sm:$0xff] %v2980_v59  ;;  %v1429_v43 = vstv %s2104_s4  ;;  %s2121_s4 = sld [smem:[#allocation9 + $0xd]] }
 0x16a   :  { %1200 = vrot.lane.b32.xlu1 %v1194_v11, %s2248_s12  ;;  %1498 = vrot.lane.b32.xlu0 %v1490_v33, %s2247_s9 }
 0x16c   :  { %v2985_v27 = vpop.permute.xlu1 %1063  ;;  %v2987_v5 = vpop.permute.xlu0 %1061 }
 0x16d   :  { %3787 = vst [vmem:[#allocation64_spill] sm:$0xff] %v2985_v27  ;;  %3788 = vst [vmem:[#allocation65_spill] sm:$0xff] %v2987_v5  ;;  %v1238_v5 = vmul.f32 0.0, %v1235_v7 }
 0x16e   :  { %1204 = vrot.lane.b32.xlu1 %v1196_v29, %s2248_s12  ;;  %1202 = vrot.lane.b32.xlu0 %v1195_v17, %s2248_s12 }
 0x170   :  { %v2993_v11 = vpop.permute.xlu1 %1097  ;;  %v2995_v33 = vpop.permute.xlu0 %1095 }
 0x171   :  { %3789 = vst [vmem:[#allocation66_spill] sm:$0xff] %v2993_v11  ;;  %3790 = vst [vmem:[#allocation67_spill] sm:$0xff] %v2995_v33  ;;  %v1237_v11 = vmul.f32 %v1235_v7, %v2590_v19  ;;  %v1571_v33 = vstv %s2072_s17  ;;  %s2116_s17 = sld [smem:[#allocation9 + $0x8]] }
 0x172   :  { %1538 = vrot.lane.b32.xlu1 %v1531_v42, %s2248_s12  ;;  %1536 = vrot.lane.b32.xlu0 %v1530_v49, %s2248_s12  ;;  %v1573_v6 = vmul.f32 %v1571_v33, %v2873_v24  ;;  %v1572_v20 = vmul.f32 %v1571_v33, %v2861_v21  ;;  %v1308_v49 = vstv %s2101_s18  ;;  %v1574_v7 = vmul.f32 0.0, %v1571_v33  ;;  %s2118_s18 = sld [smem:[#allocation9 + $0xa]] }
 0x173   :  { %v1309_v19 = vmul.f32 0.0, %v1308_v49 }
 0x174   :  { %v3000_v29 = vpop.permute.xlu1 %801  ;;  %v3002_v17 = vpop.permute.xlu0 %1099 }
 0x175   :  { %3791 = vst [vmem:[#allocation68_spill] sm:$0xff] %v3000_v29  ;;  %3792 = vst [vmem:[#allocation69_spill] sm:$0xff] %v3002_v17  ;;  %v1311_v29 = vmul.f32 %v1308_v49, %v2841_v45  ;;  %v1310_v17 = vmul.f32 %v2830_v51, %v1308_v49 }
 0x176   :  { %1242 = vrot.lane.b32.xlu1 %v1236_v58, %s2249_s14  ;;  %1540 = vrot.lane.b32.xlu0 %v1532_v12, %s2248_s12 }
 0x178   :  { %v3007_v27 = vpop.permute.xlu1 %805  ;;  %v3009_v42 = vpop.permute.xlu0 %803 }
 0x17a   :  { %1246 = vrot.lane.b32.xlu1 %v1238_v5, %s2249_s14  ;;  %1244 = vrot.lane.b32.xlu0 %v1237_v11, %s2249_s14 }
 0x17c   :  { %v3015_v58 = vpop.permute.xlu1 %1139  ;;  %v3017_v12 = vpop.permute.xlu0 %1137 }
 0x17d   :  { %3793 = vst [vmem:[#allocation70_spill] sm:$0xff] %v3015_v58  ;;  %3794 = vst [vmem:[#allocation71_spill] sm:$0xff] %v3017_v12  ;;  %v1350_v12 = vstv %s2102_s19  ;;  %s2119_s19 = sld [smem:[#allocation9 + $0xb]] }
 0x17e   :  { %1580 = vrot.lane.b32.xlu1 %v1573_v6, %s2249_s14  ;;  %1578 = vrot.lane.b32.xlu0 %v1572_v20, %s2249_s14  ;;  %v1352_v33 = vmul.f32 %v1350_v12, %v2861_v21  ;;  %v1351_v20 = vmul.f32 0.0, %v1350_v12 }
 0x180   :  { %v3021_v5 = vpop.permute.xlu1 %843  ;;  %v3023_v11 = vpop.permute.xlu0 %1141 }
 0x181   :  { %3795 = vst [vmem:[#allocation72_spill] sm:$0xff] %v3021_v5  ;;  %3796 = vst [vmem:[#allocation73_spill] sm:$0xff] %v3023_v11  ;;  %v1392_v5 = vstv %s2103_s20  ;;  %v1353_v11 = vmul.f32 %v1350_v12, %v2873_v24  ;;  %v1431_v12 = vmul.f32 %v1429_v43, %v2841_v45  ;;  %s2120_s20 = sld [smem:[#allocation9 + $0xc]] }
 0x182   :  { %1315 = vrot.lane.b32.xlu1 %v1309_v19, %s2242_s21  ;;  %1582 = vrot.lane.b32.xlu0 %v1574_v7, %s2249_s14  ;;  %v1393_v49 = vmul.f32 0.0, %v1392_v5 }
 0x184   :  { %v3029_v58 = vpop.permute.xlu1 %847  ;;  %v3031_v6 = vpop.permute.xlu0 %845 }
 0x186   :  { %1319 = vrot.lane.b32.xlu1 %v1311_v29, %s2242_s21  ;;  %1317 = vrot.lane.b32.xlu0 %v1310_v17, %s2242_s21 }
 0x188   :  { %v3036_v19 = vpop.permute.xlu1 %1181  ;;  %v3038_v7 = vpop.permute.xlu0 %1179 }
 0x189   :  { %3797 = vst [vmem:[#allocation74_spill] sm:$0xff] %v3036_v19  ;;  %3798 = vst [vmem:[#allocation75_spill] sm:$0xff] %v3038_v7  ;;  %v1395_v19 = vmul.f32 %v1392_v5, %v2908_v36  ;;  %v1394_v7 = vmul.f32 %v1392_v5, %v2895_v35 }
 0x18a   :  { %1359 = vrot.lane.b32.xlu1 %v1352_v33, %s2243_s24  ;;  %1357 = vrot.lane.b32.xlu0 %v1351_v20, %s2243_s24 }
 0x18c   :  { %v3043_v29 = vpop.permute.xlu1 %885  ;;  %v3045_v17 = vpop.permute.xlu0 %1183 }
 0x18d   :  { %3799 = vst [vmem:[#allocation76_spill] sm:$0xff] %v3043_v29  ;;  %3800 = vst [vmem:[#allocation77_spill] sm:$0xff] %v3045_v17  ;;  %v1466_v29 = vstv %s2105_s22  ;;  %s2123_s22 = sld [smem:[#allocation9 + $0xf]] }
 0x18e   :  { %1399 = vrot.lane.b32.xlu1 %v1393_v49, %s2244_s1  ;;  %1361 = vrot.lane.b32.xlu0 %v1353_v11, %s2243_s24  ;;  %v1430_v49 = vmul.f32 %v2830_v51, %v1429_v43  ;;  %v1468_v5 = vmul.f32 %v1466_v29, %v2873_v24  ;;  %v1467_v59 = vmul.f32 %v1466_v29, %v2861_v21 }
 0x190   :  { %v3051_v33 = vpop.permute.xlu1 %889  ;;  %v3053_v20 = vpop.permute.xlu0 %887 }
 0x192   :  { %1403 = vrot.lane.b32.xlu1 %v1395_v19, %s2244_s1  ;;  %1401 = vrot.lane.b32.xlu0 %v1394_v7, %s2244_s1  ;;  %v1508_v19 = vstv %s2106_s23  ;;  %s2125_s23 = sld [smem:[#allocation9 + $0x11]] }
 0x193   :  { %v1509_v43 = vmul.f32 %v1508_v19, %v2895_v35  ;;  %v3808_v35 = vld [vmem:[#allocation22_spill] sm:$0xff] }
 0x194   :  { %v3059_v11 = vpop.permute.xlu1 %1223  ;;  %v3061_v17 = vpop.permute.xlu0 %1221 }
 0x195   :  { %3801 = vst [vmem:[#allocation78_spill] sm:$0xff] %v3059_v11  ;;  %3802 = vst [vmem:[#allocation79_spill] sm:$0xff] %v3061_v17  ;;  %v1469_v17 = vmul.f32 0.0, %v1466_v29  ;;  %v195_v11 = vmul.f32 0.0, %v2601_v32 }
 0x196   :  { %1436 = vrot.lane.b32.xlu1 %v1431_v12, %s2245_s29  ;;  %1434 = vrot.lane.b32.xlu0 %v1430_v49, %s2245_s29 }
 0x197   :  { %v198_v29 = vadd.f32 %v195_v11, %v2627_v63 }
 0x198   :  { %v3067_v7 = vpop.permute.xlu1 %958  ;;  %v3069_v16 = vpop.permute.xlu0 %1225 }
 0x199   :  { %3803 = vst [vmem:[#allocation80_spill] sm:$0xff] %v3067_v7  ;;  %3804 = vst [vmem:[#allocation81_spill] sm:$0xff] %v3069_v16  ;;  %v1511_v7 = vmul.f32 0.0, %v1508_v19  ;;  %v1510_v16 = vmul.f32 %v1508_v19, %v2908_v36  ;;  %v1592_v19 = vstv %s2108_s26  ;;  %v3811_v36 = vld [vmem:[#allocation25_spill] sm:$0xff] }
 0x19a   :  { %1475 = vrot.lane.b32.xlu1 %v1468_v5, %s2246_s6  ;;  %1473 = vrot.lane.b32.xlu0 %v1467_v59, %s2246_s6  ;;  %v1550_v5 = vstv %s2107_s25 }
 0x19b   :  { %v1552_v32 = vmul.f32 %v1550_v5, %v2841_v45  ;;  %v1553_v45 = vmul.f32 0.0, %v1550_v5 }
 0x19c   :  { %v3074_v12 = vpop.permute.xlu1 %962  ;;  %v3076_v49 = vpop.permute.xlu0 %960 }
 0x19d   :  { %3805 = vst [vmem:[#allocation82_spill] sm:$0xff] %v3076_v49  ;;  %v222_v49 = vsel %vm221_vm4, %v3809_v60, %v3808_v35  ;;  %v3813_v35 = vld [vmem:[#allocation29_spill] sm:$0xff] }
 0x19e   :  { %1515 = vrot.lane.b32.xlu1 %v1509_v43, %s2247_s9  ;;  %1477 = vrot.lane.b32.xlu0 %v1469_v17, %s2246_s6  ;;  %v1551_v17 = vmul.f32 %v2830_v51, %v1550_v5  ;;  %v3810_v43 = vld [vmem:[#allocation24_spill] sm:$0xff]  ;;  %v227_v11 = vadd.f32 %v222_v49, %v198_v29  ;;  %v308_v60 = vsel %vm307_vm6, %v3813_v35, %v3812_v54  ;;  %v1595_v49 = vmul.f32 0.0, %v1592_v19 }
 0x19f   :  { %v1593_v51 = vmul.f32 %v1592_v19, %v2861_v21  ;;  %v1594_v54 = vmul.f32 %v1592_v19, %v2873_v24  ;;  %v3814_v29 = vld [vmem:[#allocation32_spill] sm:$0xff]  ;;  %v614_v21 = vadd.f32 %v2801_v39, %v2786_v40  ;;  %v560_v40 = vmul.f32 0.0, %v2682_v47 }
 0x1a0   :  { %v3082_v38 = vpop.permute.xlu1 %1296  ;;  %v3084_v59 = vpop.permute.xlu0 %1294 }
 0x1a1   :  { %3806 = vst [vmem:[#allocation83_spill] sm:$0xff] %v3082_v38  ;;  %3807 = vst [vmem:[#allocation84_spill] sm:$0xff] %v3084_v59  ;;  %v265_v38 = vsel %vm264_vm5, %v3811_v36, %v3810_v43 }
 0x1a2   :  { %1519 = vrot.lane.b32.xlu1 %v1511_v7, %s2247_s9  ;;  %1517 = vrot.lane.b32.xlu0 %v1510_v16, %s2247_s9  ;;  %v270_v16 = vadd.f32 %v265_v38, %v227_v11  ;;  %v656_v11 = vadd.f32 %v2822_v13, %v614_v21  ;;  %v892_v21 = vsel %vm512_vm11, %v3053_v20, %v3051_v33 }
 0x1a4   :  { %v3097_v59 = vpop.permute.xlu1 %1000  ;;  %v3099_v63 = vpop.permute.xlu0 %1298  ;;  %v313_v43 = vadd.f32 %v308_v60, %v270_v16 }
 0x1a6   :  { %1559 = vrot.lane.b32.xlu1 %v1552_v32, %s2248_s12  ;;  %1557 = vrot.lane.b32.xlu0 %v1551_v17, %s2248_s12  ;;  %v351_v32 = vadd.f32 %v3814_v29, %v313_v43 }
 0x1a8   :  { %v3107_v7 = vpop.permute.xlu1 %1004  ;;  %v3109_v36 = vpop.permute.xlu0 %1002  ;;  %v389_v38 = vadd.f32 %v2559_v53, %v351_v32 }
 0x1aa   :  { %1599 = vrot.lane.b32.xlu1 %v1593_v51, %s2249_s14  ;;  %1561 = vrot.lane.b32.xlu0 %v1553_v45, %s2248_s12  ;;  %v432_v5 = vadd.f32 %v2596_v23, %v389_v38  ;;  %v698_v51 = vadd.f32 %v2850_v8, %v656_v11  ;;  %v766_v45 = vsel %vm383_vm8, %v2912_v10, %v2910_v25 }
 0x1ab   :  { %v850_v25 = vsel %vm469_vm10, %v3031_v6, %v3029_v58  ;;  %v670_v58 = vsel %vm307_vm6, %v2834_v26, %v2832_v62  ;;  %v629_v11 = vsel %vm264_vm5, %v2808_v1, %v2818_v52 }
 0x1ac   :  { %v3115_v35 = vpop.permute.xlu1 %1338  ;;  %v3117_v17 = vpop.permute.xlu0 %1336  ;;  %v475_v60 = vadd.f32 %v2658_v57, %v432_v5  ;;  %v730_v23 = vadd.f32 %v2875_v15, %v698_v51  ;;  %v808_v57 = vsel %vm426_vm9, %v3009_v42, %v3007_v27 }
 0x1ae   :  { %1603 = vrot.lane.b32.xlu1 %v1595_v49, %s2249_s14  ;;  %1601 = vrot.lane.b32.xlu0 %v1594_v54, %s2249_s14  ;;  %v518_v53 = vadd.f32 %v2730_v34, %v475_v60  ;;  %v586_v34 = vsel %vm221_vm4, %v2784_v41, %v2782_v44  ;;  %v772_v47 = vadd.f32 %v766_v45, %v730_v23  ;;  %v3170_v60 = vstv %s2091_s0 }
 0x1af   :  { %v628_v54 = vsel %vm264_vm5, %v2810_v14, %v2808_v1  ;;  %v587_v41 = vsel %vm221_vm4, %v2782_v44, %v2796_v2  ;;  %v671_v45 = vsel %vm307_vm6, %v2832_v62, %v2845_v3  ;;  %v593_v1 = vadd.f32 %v2796_v2, %v2771_v0 }
 0x1b0   :  { %v3126_v24 = vpop.permute.xlu1 %1042  ;;  %v3128_v19 = vpop.permute.xlu0 %1340  ;;  %v563_v49 = vadd.f32 %v560_v40, %v518_v53  ;;  %v814_v29 = vadd.f32 %v808_v57, %v772_v47  ;;  %v592_v51 = vadd.f32 %v587_v41, %v2760_v9  ;;  %v926_v53 = vmul.f32 %v3170_v60, %v2606_v37 }
 0x1b1   :  { %v708_v9 = vsel %vm346_vm7, %v2865_v4, %v2863_v31  ;;  %v744_v62 = vsel %vm383_vm8, %v2886_v28, %v2884_v56 }
 0x1b2   :  { %v591_v27 = vadd.f32 %v586_v34, %v563_v49  ;;  %v856_v5 = vadd.f32 %v850_v25, %v814_v29  ;;  %v634_v23 = vadd.f32 %v629_v11, %v592_v51  ;;  %v635_v34 = vadd.f32 %v2818_v52, %v593_v1 }
 0x1b3   :  { %v745_v52 = vsel %vm383_vm8, %v2884_v56, %v2899_v18  ;;  %v787_v18 = vsel %vm426_vm9, %v2918_v61, %v2928_v46 }
 0x1b4   :  { %v3138_v16 = vpop.permute.xlu1 %1046  ;;  %v3140_v43 = vpop.permute.xlu0 %1044  ;;  %v633_v14 = vadd.f32 %v628_v54, %v591_v27  ;;  %v898_v44 = vadd.f32 %v892_v21, %v856_v5  ;;  %v676_v47 = vadd.f32 %v671_v45, %v634_v23  ;;  %v677_v2 = vadd.f32 %v2845_v3, %v635_v34 }
 0x1b5   :  { %v916_v5 = vstv %s2055_s27 }
 0x1b6   :  { %v675_v26 = vadd.f32 %v670_v58, %v633_v14  ;;  %v929_v49 = vadd.f32 %v926_v53, %v898_v44  ;;  %v713_v29 = vadd.f32 %v708_v9, %v676_v47  ;;  %v714_v21 = vadd.f32 %v2863_v31, %v677_v2  ;;  %v3817_v47 = vld [vmem:[#allocation55_spill] sm:$0xff] }
 0x1b7   :  { %v829_v44 = vsel %vm469_vm10, %v2936_v48, %v2934_v50  ;;  %v917_v53 = vmul.f32 0.0, %v916_v5  ;;  %v3818_v50 = vld [vmem:[#allocation35_spill] sm:$0xff] }
 0x1b8   :  { %v3154_v32 = vpop.permute.xlu1 %1380  ;;  %v3156_v38 = vpop.permute.xlu0 %1378  ;;  %v712_v57 = vadd.f32 %v2865_v4, %v675_v26  ;;  %v971_v27 = vadd.f32 %v3074_v12, %v929_v49  ;;  %v786_v4 = vsel %vm426_vm9, %v2920_v22, %v2918_v61  ;;  %v750_v58 = vadd.f32 %v744_v62, %v713_v29  ;;  %v3815_v26 = vld [vmem:[#allocation53_spill] sm:$0xff] }
 0x1b9   :  { %v751_v56 = vadd.f32 %v745_v52, %v714_v21  ;;  %v870_v45 = vsel %vm512_vm11, %v3815_v26, %v2941_v30  ;;  %v918_v49 = vmul.f32 %v916_v5, %v3818_v50  ;;  %v3819_v29 = vld [vmem:[#allocation57_spill] sm:$0xff]  ;;  %v919_v21 = vmul.f32 %v916_v5, %v2606_v37 }
 0x1ba   :  { %v749_v0 = vadd.f32 %v2886_v28, %v712_v57  ;;  %v1013_v28 = vadd.f32 %v3107_v7, %v971_v27  ;;  %v792_v31 = vadd.f32 %v786_v4, %v750_v58  ;;  %v3816_v57 = vld [vmem:[#allocation37_spill] sm:$0xff]  ;;  %v3820_v27 = vld [vmem:[#allocation54_spill] sm:$0xff] }
 0x1bb   :  { %v793_v46 = vadd.f32 %v787_v18, %v751_v56  ;;  %v202_v34 = vmul.f32 0.0, %v3816_v57  ;;  %v943_v52 = vsel %vm221_vm4, %v3820_v27, %v3819_v29  ;;  %v3824_v56 = vld [vmem:[#allocation38_spill] sm:$0xff] }
 0x1bc   :  { %v3175_v33 = vpop.permute.xlu1 %1077  ;;  %v3177_v40 = vpop.permute.xlu0 %1382  ;;  %v791_v41 = vadd.f32 %v2920_v22, %v749_v0  ;;  %v828_v22 = vsel %vm469_vm10, %v2926_v55, %v2936_v48  ;;  %v1055_v51 = vadd.f32 %v3138_v16, %v1013_v28  ;;  %v871_v48 = vsel %vm512_vm11, %v2941_v30, %v3817_v47  ;;  %v3822_v28 = vld [vmem:[#allocation58_spill] sm:$0xff] }
 0x1bd   :  { %v834_v61 = vadd.f32 %v828_v22, %v792_v31  ;;  %v835_v0 = vadd.f32 %v829_v44, %v793_v46  ;;  %v205_v31 = vadd.f32 %v202_v34, %v3824_v56  ;;  %v3829_v46 = vld [vmem:[#allocation60_spill] sm:$0xff]  ;;  %v3831_v34 = vld [vmem:[#allocation27_spill] sm:$0xff]  ;;  %v3832_v47 = vld [vmem:[#allocation26_spill] sm:$0xff] }
 0x1be   :  { %v833_v11 = vadd.f32 %v2926_v55, %v791_v41 }
 0x1bf   :  { %v876_v2 = vadd.f32 %v870_v45, %v834_v61  ;;  %v877_v58 = vadd.f32 %v871_v48, %v835_v0  ;;  %v3826_v45 = vld [vmem:[#allocation23_spill] sm:$0xff]  ;;  %v286_v48 = vsel %vm264_vm5, %v3832_v47, %v3831_v34  ;;  %v3842_v47 = vld [vmem:[#allocation33_spill] sm:$0xff] }
 0x1c0   :  { %v3189_v25 = vpop.permute.xlu1 %1418  ;;  %v3191_v54 = vpop.permute.xlu0 %1079  ;;  %v875_v1 = vadd.f32 %v3815_v26, %v833_v11  ;;  %v3823_v11 = vld [vmem:[#allocation59_spill] sm:$0xff] }
 0x1c1   :  { %v1087_v23 = vadd.f32 %v3191_v54, %v1055_v51  ;;  %v985_v30 = vsel %vm264_vm5, %v3823_v11, %v3822_v28  ;;  %v3825_v51 = vld [vmem:[#allocation56_spill] sm:$0xff]  ;;  %v921_v5 = vadd.f32 %v918_v49, %v876_v2  ;;  %v3833_v2 = vld [vmem:[#allocation62_spill] sm:$0xff]  ;;  %v3834_v11 = vld [vmem:[#allocation31_spill] sm:$0xff] }
 0x1c2   :  { %v920_v41 = vadd.f32 %v917_v53, %v875_v1  ;;  %v944_v44 = vsel %vm221_vm4, %v3819_v29, %v3825_v51  ;;  %v3827_v53 = vld [vmem:[#allocation21_spill] sm:$0xff]  ;;  %v3828_v1 = vld [vmem:[#allocation63_spill] sm:$0xff] }
 0x1c3   :  { %v243_v37 = vsel %vm221_vm4, %v3827_v53, %v3826_v45  ;;  %v1027_v61 = vsel %vm307_vm6, %v3829_v46, %v3828_v1  ;;  %v949_v0 = vadd.f32 %v944_v44, %v921_v5  ;;  %v3836_v45 = vld [vmem:[#allocation64_spill] sm:$0xff]  ;;  %v3840_v46 = vld [vmem:[#allocation66_spill] sm:$0xff] }
 0x1c4   :  { %v3208_v3 = vpop.permute.xlu1 %1116  ;;  %v3210_v14 = vpop.permute.xlu0 %1420  ;;  %v948_v26 = vadd.f32 %v943_v52, %v920_v41  ;;  %v248_v49 = vadd.f32 %v243_v37, %v205_v31  ;;  %v1028_v52 = vsel %vm307_vm6, %v3828_v1, %v3833_v2 }
 0x1c8   :  { %v1121_v55 = vpop.permute.xlu1 %1120  ;;  %v3228_v9 = vpop.permute.xlu0 %1118 }
 0x1c9   :  { %v1123_v62 = vsel %vm383_vm8, %v3228_v9, %v1121_v55  ;;  %v3830_v55 = vld [vmem:[#allocation61_spill] sm:$0xff] }
 0x1ca   :  { %v3240_v4 = vadd.f32 %v1123_v62, %v1087_v23  ;;  %v990_v23 = vadd.f32 %v985_v30, %v948_v26  ;;  %v986_v57 = vsel %vm264_vm5, %v3822_v28, %v3830_v55  ;;  %v922_v62 = vadd.f32 %v919_v21, %v877_v58  ;;  %v3835_v30 = vld [vmem:[#allocation30_spill] sm:$0xff]  ;;  %v3837_v21 = vld [vmem:[#allocation65_spill] sm:$0xff] }
 0x1cb   :  { %v329_v28 = vsel %vm307_vm6, %v3835_v30, %v3834_v11  ;;  %v991_v56 = vadd.f32 %v986_v57, %v949_v0  ;;  %v291_v26 = vadd.f32 %v286_v48, %v248_v49  ;;  %v1065_v58 = vsel %vm346_vm7, %v3837_v21, %v3836_v45 }
 0x1cc   :  { %3821 = vst [vmem:[#allocation22_spill] sm:$0xff] %v3240_v4  ;;  %v3246_v18 = vpop.permute.xlu1 %1454  ;;  %v3248_v22 = vpop.permute.xlu0 %1452  ;;  %v1032_v41 = vadd.f32 %v1027_v61, %v990_v23  ;;  %v950_v44 = vadd.f32 %v3825_v51, %v922_v62  ;;  %v3841_v61 = vld [vmem:[#allocation67_spill] sm:$0xff]  ;;  %v3843_v51 = vld [vmem:[#allocation70_spill] sm:$0xff] }
 0x1cd   :  { %v1033_v53 = vadd.f32 %v1028_v52, %v991_v56  ;;  %v334_v5 = vadd.f32 %v329_v28, %v291_v26  ;;  %v1101_v23 = vsel %vm383_vm8, %v3841_v61, %v3840_v46  ;;  %v3844_v62 = vld [vmem:[#allocation71_spill] sm:$0xff]  ;;  %v3845_v28 = vld [vmem:[#allocation34_spill] sm:$0xff]  ;;  %v3846_v26 = vld [vmem:[#allocation69_spill] sm:$0xff] }
 0x1ce   :  { %v1069_v1 = vadd.f32 %v3837_v21, %v1032_v41  ;;  %v992_v57 = vadd.f32 %v3830_v55, %v950_v44  ;;  %v1143_v49 = vsel %vm426_vm9, %v3844_v62, %v3843_v51  ;;  %v1102_v55 = vsel %vm383_vm8, %v3840_v46, %v3846_v26  ;;  %v3848_v44 = vld [vmem:[#allocation75_spill] sm:$0xff] }
 0x1cf   :  { %v1070_v34 = vadd.f32 %v1065_v58, %v1033_v53  ;;  %v367_v48 = vadd.f32 %v3842_v47, %v334_v5  ;;  %v3847_v58 = vld [vmem:[#allocation74_spill] sm:$0xff]  ;;  %v3852_v46 = vld [vmem:[#allocation79_spill] sm:$0xff] }
 0x1d0   :  { %v3266_v29 = vpop.permute.xlu1 %1158  ;;  %v3268_v27 = vpop.permute.xlu0 %1456  ;;  %v1106_v0 = vadd.f32 %v3841_v61, %v1069_v1  ;;  %v1034_v52 = vadd.f32 %v3833_v2, %v992_v57  ;;  %v1185_v53 = vsel %vm469_vm10, %v3848_v44, %v3847_v58  ;;  %v1273_v1 = vstv %s2064_s28  ;;  %v3849_v61 = vld [vmem:[#allocation36_spill] sm:$0xff]  ;;  %v3850_v57 = vld [vmem:[#allocation73_spill] sm:$0xff] }
 0x1d1   :  { %v1107_v11 = vadd.f32 %v1101_v23, %v1070_v34  ;;  %v410_v56 = vadd.f32 %v3845_v28, %v367_v48  ;;  %v1144_v34 = vsel %vm426_vm9, %v3843_v51, %v3850_v57  ;;  %v3851_v48 = vld [vmem:[#allocation78_spill] sm:$0xff] }
 0x1d2   :  { %v1148_v21 = vadd.f32 %v3844_v62, %v1106_v0  ;;  %v1071_v5 = vadd.f32 %v3836_v45, %v1034_v52  ;;  %v1227_v0 = vsel %vm512_vm11, %v3852_v46, %v3851_v48  ;;  %v3854_v45 = vld [vmem:[#allocation39_spill] sm:$0xff]  ;;  %v3855_v52 = vld [vmem:[#allocation77_spill] sm:$0xff] }
 0x1d3   :  { %v1149_v2 = vadd.f32 %v1143_v49, %v1107_v11  ;;  %v453_v23 = vadd.f32 %v3849_v61, %v410_v56  ;;  %v1186_v11 = vsel %vm469_vm10, %v3847_v58, %v3855_v52  ;;  %v1274_v56 = vmul.f32 0.0, %v1273_v1  ;;  %v3856_v61 = vld [vmem:[#allocation50_spill] sm:$0xff] }
 0x1d4   :  { %v3280_v31 = vpop.permute.xlu1 %1162  ;;  %v3282_v37 = vpop.permute.xlu0 %1160  ;;  %v1190_v47 = vadd.f32 %v3848_v44, %v1148_v21  ;;  %v1108_v62 = vadd.f32 %v1102_v55, %v1071_v5  ;;  %v1275_v57 = vmul.f32 %v1273_v1, %v3856_v61 }
 0x1d5   :  { %3838 = vst [vmem:[#allocation20_spill] sm:$0xff] %v3280_v31  ;;  %3839 = vst [vmem:[#allocation24_spill] sm:$0xff] %v3282_v37  ;;  %v1191_v28 = vadd.f32 %v1185_v53, %v1149_v2  ;;  %v496_v49 = vadd.f32 %v3854_v45, %v453_v23  ;;  %v3857_v31 = vld [vmem:[#allocation40_spill] sm:$0xff]  ;;  %v3858_v53 = vld [vmem:[#allocation41_spill] sm:$0xff] }
 0x1d6   :  { %v1232_v51 = vadd.f32 %v3852_v46, %v1190_v47  ;;  %v1150_v21 = vadd.f32 %v1144_v34, %v1108_v62  ;;  %v567_v55 = vmul.f32 0.0, %v3857_v31  ;;  %v3859_v2 = vld [vmem:[#allocation81_spill] sm:$0xff]  ;;  %v3860_v45 = vld [vmem:[#allocation83_spill] sm:$0xff]  ;;  %v3862_v34 = vld [vmem:[#allocation52_spill] sm:$0xff] }
 0x1d7   :  { %v1233_v44 = vadd.f32 %v1227_v0, %v1191_v28  ;;  %v539_v5 = vadd.f32 %v3858_v53, %v496_v49  ;;  %v1228_v37 = vsel %vm512_vm11, %v3851_v48, %v3859_v2  ;;  %v1276_v46 = vmul.f32 %v1273_v1, %v3862_v34  ;;  %v3863_v62 = vld [vmem:[#allocation44_spill] sm:$0xff]  ;;  %v3864_v28 = vld [vmem:[#allocation43_spill] sm:$0xff] }
 0x1d8   :  { %v3295_v30 = vpop.permute.xlu1 %1496  ;;  %v3297_v41 = vpop.permute.xlu0 %1494  ;;  %v1192_v23 = vadd.f32 %v1186_v11, %v1150_v21  ;;  %v1277_v0 = vadd.f32 %v1274_v56, %v1232_v51  ;;  %v1301_v31 = vsel %vm221_vm4, %v3860_v45, %v3099_v63  ;;  %v607_v48 = vsel %vm221_vm4, %v3864_v28, %v3863_v62  ;;  %v3865_v51 = vld [vmem:[#allocation46_spill] sm:$0xff]  ;;  %v3866_v56 = vld [vmem:[#allocation45_spill] sm:$0xff] }
 0x1d9   :  { %v1278_v11 = vadd.f32 %v1275_v57, %v1233_v44  ;;  %v570_v21 = vadd.f32 %v567_v55, %v539_v5  ;;  %v1343_v1 = vsel %vm264_vm5, %v3115_v35, %v3128_v19  ;;  %v649_v2 = vsel %vm264_vm5, %v3866_v56, %v3865_v51  ;;  %v3867_v55 = vld [vmem:[#allocation48_spill] sm:$0xff]  ;;  %v3868_v5 = vld [vmem:[#allocation47_spill] sm:$0xff] }
 0x1da   :  { %v1234_v49 = vadd.f32 %v1228_v37, %v1192_v23  ;;  %v1384_v37 = vsel %vm307_vm6, %v3156_v38, %v3154_v32  ;;  %v1422_v38 = vsel %vm346_vm7, %v3189_v25, %v3210_v14 }
 0x1db   :  { %v612_v23 = vadd.f32 %v607_v48, %v570_v21 }
 0x1dc   :  { %v3316_v26 = vpop.permute.xlu1 %1200  ;;  %v3318_v4 = vpop.permute.xlu0 %1498 }
 0x1dd   :  { %3853 = vst [vmem:[#allocation25_spill] sm:$0xff] %v3316_v26  ;;  %v3861_v26 = vld [vmem:[#allocation84_spill] sm:$0xff]  ;;  %v654_v56 = vadd.f32 %v649_v2, %v612_v23 }
 0x1de   :  { %v1300_v58 = vsel %vm221_vm4, %v3861_v26, %v3860_v45  ;;  %v1342_v26 = vsel %vm264_vm5, %v3117_v17, %v3115_v35  ;;  %v1306_v45 = vadd.f32 %v1301_v31, %v1278_v11  ;;  %v1385_v17 = vsel %vm307_vm6, %v3154_v32, %v3177_v40 }
 0x1df   :  { %v1305_v53 = vadd.f32 %v1300_v58, %v1277_v0  ;;  %v691_v35 = vsel %vm307_vm6, %v3868_v5, %v3867_v55  ;;  %v1279_v58 = vadd.f32 %v1276_v46, %v1234_v49  ;;  %v608_v32 = vsel %vm221_vm4, %v3863_v62, %v2801_v39 }
 0x1e0   :  { %v3334_v52 = vpop.permute.xlu1 %1204  ;;  %v3336_v47 = vpop.permute.xlu0 %1202  ;;  %v1348_v0 = vadd.f32 %v1343_v1, %v1306_v45  ;;  %v1458_v49 = vsel %vm383_vm8, %v3248_v22, %v3246_v18  ;;  %v3869_v45 = vld [vmem:[#allocation49_spill] sm:$0xff]  ;;  %v1500_v39 = vsel %vm426_vm9, %v3297_v41, %v3295_v30 }
 0x1e1   :  { %v1347_v28 = vadd.f32 %v1342_v26, %v1305_v53  ;;  %v1307_v11 = vadd.f32 %v3099_v63, %v1279_v58  ;;  %v696_v53 = vadd.f32 %v691_v35, %v654_v56  ;;  %v650_v63 = vsel %vm264_vm5, %v3865_v51, %v2822_v13  ;;  %v3871_v51 = vld [vmem:[#allocation51_spill] sm:$0xff] }
 0x1e2   :  { %v1390_v48 = vadd.f32 %v1385_v17, %v1348_v0 }
 0x1e3   :  { %v1389_v31 = vadd.f32 %v1384_v37, %v1347_v28  ;;  %v1349_v1 = vadd.f32 %v3128_v19, %v1307_v11  ;;  %v728_v37 = vadd.f32 %v3869_v45, %v696_v53  ;;  %v692_v28 = vsel %vm307_vm6, %v3867_v55, %v2850_v8 }
 0x1e4   :  { %v1539_v44 = vpop.permute.xlu1 %1538  ;;  %v1537_v57 = vpop.permute.xlu0 %1536  ;;  %v1427_v2 = vadd.f32 %v1422_v38, %v1390_v48  ;;  %v1501_v11 = vsel %vm426_vm9, %v3295_v30, %v3318_v4 }
 0x1e5   :  { %v1426_v46 = vadd.f32 %v3189_v25, %v1389_v31  ;;  %v3870_v25 = vld [vmem:[#allocation42_spill] sm:$0xff]  ;;  %v1391_v19 = vadd.f32 %v3177_v40, %v1349_v1  ;;  %v770_v35 = vadd.f32 %v3871_v51, %v728_v37  ;;  %v1542_v0 = vsel %vm469_vm10, %v1537_v57, %v1539_v44  ;;  %v3872_v31 = vld [vmem:[#allocation68_spill] sm:$0xff] }
 0x1e6   :  { %v613_v62 = vadd.f32 %v608_v32, %v3870_v25  ;;  %v1464_v17 = vadd.f32 %v1458_v49, %v1427_v2  ;;  %v724_v40 = vsel %vm346_vm7, %v3869_v45, %v2875_v15  ;;  %v807_v30 = vsel %vm426_vm9, %v3872_v31, %v3009_v42 }
 0x1e7   :  { %v1463_v23 = vadd.f32 %v3248_v22, %v1426_v46  ;;  %v1459_v22 = vsel %vm383_vm8, %v3246_v18, %v3268_v27  ;;  %v1428_v8 = vadd.f32 %v3210_v14, %v1391_v19  ;;  %v812_v38 = vadd.f32 %v3872_v31, %v770_v35  ;;  %v3873_v46 = vld [vmem:[#allocation72_spill] sm:$0xff] }
 0x1e8   :  { %v3367_v26 = vpop.permute.xlu1 %1242  ;;  %v1541_v21 = vpop.permute.xlu0 %1540  ;;  %v655_v56 = vadd.f32 %v650_v63, %v613_v62  ;;  %v1506_v55 = vadd.f32 %v1500_v39, %v1464_v17  ;;  %v765_v27 = vsel %vm383_vm8, %v3871_v51, %v2912_v10  ;;  %v924_v10 = vmul.f32 0.0, %v3170_v60  ;;  %v3875_v17 = vld [vmem:[#allocation82_spill] sm:$0xff]  ;;  %v3876_v51 = vld [vmem:[#allocation80_spill] sm:$0xff] }
 0x1e9   :  { %v1505_v58 = vadd.f32 %v3297_v41, %v1463_v23  ;;  %v1465_v41 = vadd.f32 %v1459_v22, %v1428_v8  ;;  %v854_v49 = vadd.f32 %v3873_v46, %v812_v38  ;;  %v1543_v15 = vsel %vm469_vm10, %v1539_v44, %v1541_v21 }
 0x1ea   :  { %v697_v18 = vadd.f32 %v692_v28, %v655_v56  ;;  %v1548_v32 = vadd.f32 %v1542_v0, %v1506_v55  ;;  %v849_v21 = vsel %vm469_vm10, %v3873_v46, %v3031_v6  ;;  %v964_v35 = vsel %vm221_vm4, %v3876_v51, %v3875_v17 }
 0x1eb   :  { %v1547_v48 = vadd.f32 %v1537_v57, %v1505_v58  ;;  %v1507_v45 = vadd.f32 %v1501_v11, %v1465_v41  ;;  %v3874_v57 = vld [vmem:[#allocation76_spill] sm:$0xff]  ;;  %v1006_v6 = vsel %vm264_vm5, %v3097_v59, %v3109_v36  ;;  %v925_v11 = vmul.f32 %v3170_v60, %v3818_v50 }
 0x1ec   :  { %v3390_v5 = vpop.permute.xlu1 %1246  ;;  %v3392_v13 = vpop.permute.xlu0 %1244  ;;  %v729_v63 = vadd.f32 %v724_v40, %v697_v18  ;;  %v896_v37 = vadd.f32 %v3874_v57, %v854_v49  ;;  %v891_v0 = vsel %vm512_vm11, %v3874_v57, %v3053_v20  ;;  %v965_v59 = vsel %vm221_vm4, %v3875_v17, %v3074_v12  ;;  %v3879_v57 = vld [vmem:[#allocation20_spill] sm:$0xff] }
 0x1ed   :  { %v1549_v25 = vadd.f32 %v1543_v15, %v1507_v45  ;;  %v1007_v60 = vsel %vm264_vm5, %v3109_v36, %v3107_v7  ;;  %v1049_v46 = vsel %vm307_vm6, %v3140_v43, %v3138_v16  ;;  %v1081_v12 = vsel %vm346_vm7, %v3175_v33, %v3191_v54 }
 0x1ee   :  { %v771_v39 = vadd.f32 %v765_v27, %v729_v63  ;;  %v927_v58 = vadd.f32 %v924_v10, %v896_v37  ;;  %v1280_v7 = vstv %s2100_s7  ;;  %v1122_v45 = vsel %vm383_vm8, %v3208_v3, %v3228_v9 }
 0x1ef   :  { %v1281_v54 = vmul.f32 0.0, %v1280_v7  ;;  %v1207_v9 = vsel %vm469_vm10, %v3336_v47, %v3334_v52  ;;  %v1249_v17 = vsel %vm512_vm11, %v3392_v13, %v3390_v5 }
 0x1f0   :  { %v1581_v14 = vpop.permute.xlu1 %1580  ;;  %v1579_v53 = vpop.permute.xlu0 %1578  ;;  %v813_v42 = vadd.f32 %v807_v30, %v771_v39  ;;  %v969_v31 = vadd.f32 %v964_v35, %v927_v58 }
 0x1f1   :  { %v1584_v1 = vsel %vm512_vm11, %v1579_v53, %v1581_v14  ;;  %v1589_v2 = vadd.f32 %v1579_v53, %v1547_v48  ;;  %v1048_v48 = vsel %vm307_vm6, %v3126_v24, %v3140_v43  ;;  %v3878_v43 = vld [vmem:[#allocation24_spill] sm:$0xff] }
 0x1f2   :  { %v1590_v4 = vadd.f32 %v1584_v1, %v1548_v32  ;;  %v855_v56 = vadd.f32 %v849_v21, %v813_v42  ;;  %v1011_v20 = vadd.f32 %v1006_v6, %v969_v31  ;;  %v1164_v10 = vsel %vm426_vm9, %v3266_v29, %v3878_v43 }
 0x1f3   :  { %v1615_v23 = vmax.f32 %v1589_v2, 0.0  ;;  %v1248_v42 = vsel %vm512_vm11, %v3367_v26, %v3392_v13  ;;  %v1282_v6 = vmul.f32 %v1280_v7, %v3856_v61 }
 0x1f4   :  { %v1616_v62 = vmax.f32 %v1590_v4, 0.0  ;;  %v1316_v28 = vpop.permute.xlu1 %1315  ;;  %v1583_v44 = vpop.permute.xlu0 %1582  ;;  %v897_v38 = vadd.f32 %v891_v0, %v855_v56  ;;  %v1053_v41 = vadd.f32 %v1048_v48, %v1011_v20  ;;  %v3877_v4 = vld [vmem:[#allocation25_spill] sm:$0xff] }
 0x1f5   :  { %v1585_v19 = vsel %vm512_vm11, %v1581_v14, %v1583_v44  ;;  %1621 = vrot.lane.b32.xlu0 %v1615_v23, %s2250_s30 }
 0x1f6   :  { %v1591_v22 = vadd.f32 %v1585_v19, %v1549_v25  ;;  %1623 = vrot.lane.b32.xlu1 %v1616_v62, %s2250_s30  ;;  %v928_v32 = vadd.f32 %v925_v11, %v897_v38  ;;  %v1085_v50 = vadd.f32 %v3175_v33, %v1053_v41  ;;  %v1165_v33 = vsel %vm426_vm9, %v3878_v43, %v3879_v57 }
 0x1f8   :  { %v1617_v8 = vmax.f32 %v1591_v22, 0.0  ;;  %v3434_v55 = vpop.permute.xlu1 %1319  ;;  %v1318_v40 = vpop.permute.xlu0 %1317  ;;  %v970_v14 = vadd.f32 %v965_v59, %v928_v32  ;;  %v1127_v49 = vadd.f32 %v3208_v3, %v1085_v50  ;;  %v1206_v3 = vsel %vm469_vm10, %v3877_v4, %v3336_v47 }
 0x1f9   :  { %v1321_v21 = vsel %vm221_vm4, %v1316_v28, %v1318_v40  ;;  %v1283_v47 = vmul.f32 %v1280_v7, %v3862_v34  ;;  %v1322_v5 = vsel %vm221_vm4, %v1318_v40, %v3434_v55 }
 0x1fa   :  { %1625 = vrot.lane.b32.xlu0 %v1617_v8, %s2250_s30  ;;  %v1012_v15 = vadd.f32 %v1007_v60, %v970_v14  ;;  %v1169_v1 = vadd.f32 %v3266_v29, %v1127_v49  ;;  %v3880_v29 = vld [vmem:[#allocation22_spill] sm:$0xff] }
 0x1fb   :  { %v1171_v44 = vadd.f32 %v1165_v33, %v3880_v29 }
 0x1fc   :  { %v1360_v18 = vpop.permute.xlu1 %1359  ;;  %v1358_v27 = vpop.permute.xlu0 %1357  ;;  %v1054_v2 = vadd.f32 %v1049_v46, %v1012_v15  ;;  %v1211_v30 = vadd.f32 %v3877_v4, %v1169_v1 }
 0x1fd   :  { %v1213_v35 = vadd.f32 %v1207_v9, %v1171_v44  ;;  %v1363_v22 = vsel %vm264_vm5, %v1358_v27, %v1360_v18  ;;  %v1643_v44 = vstv %s2109_s8 }
 0x1fe   :  { %v1086_v16 = vadd.f32 %v1081_v12, %v1054_v2  ;;  %v1253_v37 = vadd.f32 %v3367_v26, %v1211_v30 }
 0x1ff   :  { %v1255_v28 = vadd.f32 %v1249_v17, %v1213_v35 }
 0x200   :  { %v1400_v24 = vpop.permute.xlu1 %1399  ;;  %v1362_v53 = vpop.permute.xlu0 %1361  ;;  %v1128_v23 = vadd.f32 %v1122_v45, %v1086_v16  ;;  %v1284_v19 = vadd.f32 %v1281_v54, %v1253_v37 }
 0x201   :  { %v1286_v11 = vadd.f32 %v1283_v47, %v1255_v28  ;;  %v1364_v20 = vsel %vm264_vm5, %v1360_v18, %v1362_v53 }
 0x202   :  { %v1170_v62 = vadd.f32 %v1164_v10, %v1128_v23  ;;  %v1326_v0 = vadd.f32 %v1321_v21, %v1284_v19 }
 0x203   :  { %v1328_v34 = vadd.f32 %v3434_v55, %v1286_v11  ;;  %v1685_v11 = vstv %s2111_s11 }
 0x204   :  { %v1404_v36 = vpop.permute.xlu1 %1403  ;;  %v1402_v63 = vpop.permute.xlu0 %1401  ;;  %v1212_v51 = vadd.f32 %v1206_v3, %v1170_v62  ;;  %v1368_v26 = vadd.f32 %v1363_v22, %v1326_v0 }
 0x205   :  { %v1405_v8 = vsel %vm307_vm6, %v1400_v24, %v1402_v63  ;;  %v1406_v61 = vsel %vm307_vm6, %v1402_v63, %v1404_v36  ;;  %v1370_v50 = vadd.f32 %v1362_v53, %v1328_v34 }
 0x206   :  { %v1254_v56 = vadd.f32 %v1248_v42, %v1212_v51  ;;  %v1410_v13 = vadd.f32 %v1405_v8, %v1368_v26  ;;  %v1644_v42 = vmul.f32 0.0, %v1643_v44 }
 0x207   :  { %v1412_v46 = vadd.f32 %v1404_v36, %v1370_v50 }
 0x208   :  { %v1437_v39 = vpop.permute.xlu1 %1436  ;;  %v1435_v25 = vpop.permute.xlu0 %1434  ;;  %v1285_v48 = vadd.f32 %v1282_v6, %v1254_v56 }
 0x209   :  { %v1442_v32 = vadd.f32 %v1435_v25, %v1410_v13  ;;  %v1438_v14 = vsel %vm346_vm7, %v1435_v25, %v1437_v39  ;;  %v1444_v1 = vadd.f32 %v1437_v39, %v1412_v46  ;;  %v1743_v46 = vstv %s2114_s15 }
 0x20a   :  { %v1327_v27 = vadd.f32 %v1322_v5, %v1285_v48  ;;  %v1686_v48 = vmul.f32 0.0, %v1685_v11 }
 0x20c   :  { %v1476_v58 = vpop.permute.xlu1 %1475  ;;  %v1474_v52 = vpop.permute.xlu0 %1473  ;;  %v1369_v60 = vadd.f32 %v1364_v20, %v1327_v27 }
 0x20d   :  { %v1484_v24 = vadd.f32 %v1474_v52, %v1442_v32  ;;  %v1479_v12 = vsel %vm383_vm8, %v1474_v52, %v1476_v58  ;;  %v1722_v32 = vstv %s2113_s13 }
 0x20e   :  { %v1411_v40 = vadd.f32 %v1406_v61, %v1369_v60 }
 0x210   :  { %v1516_v31 = vpop.permute.xlu1 %1515  ;;  %v1478_v38 = vpop.permute.xlu0 %1477  ;;  %v1443_v2 = vadd.f32 %v1438_v14, %v1411_v40  ;;  %v1725_v14 = vmul.f32 0.0, %v1722_v32 }
 0x211   :  { %v1526_v18 = vadd.f32 %v1516_v31, %v1484_v24  ;;  %v1480_v55 = vsel %vm383_vm8, %v1476_v58, %v1478_v38  ;;  %v1664_v58 = vstv %s2110_s10 }
 0x212   :  { %v1485_v53 = vadd.f32 %v1479_v12, %v1443_v2  ;;  %v1486_v4 = vadd.f32 %v1480_v55, %v1444_v1  ;;  %v1665_v47 = vmul.f32 0.0, %v1664_v58  ;;  %v1746_v12 = vmul.f32 0.0, %v1743_v46 }
 0x213   :  { %v1785_v2 = vstv %s2116_s17 }
 0x214   :  { %v1520_v59 = vpop.permute.xlu1 %1519  ;;  %v1518_v41 = vpop.permute.xlu0 %1517 }
 0x215   :  { %v1521_v7 = vsel %vm426_vm9, %v1516_v31, %v1518_v41  ;;  %v1522_v63 = vsel %vm426_vm9, %v1518_v41, %v1520_v59  ;;  %v1706_v59 = vstv %s2112_s2 }
 0x216   :  { %v1527_v57 = vadd.f32 %v1521_v7, %v1485_v53  ;;  %v1528_v33 = vadd.f32 %v1522_v63, %v1486_v4  ;;  %v1833_v7 = vstv %s2118_s18 }
 0x217   :  { %v1834_v4 = vmul.f32 0.0, %v1833_v7 }
 0x218   :  { %v1560_v49 = vpop.permute.xlu1 %1559  ;;  %v1558_v15 = vpop.permute.xlu0 %1557 }
 0x219   :  { %v1568_v45 = vadd.f32 %v1558_v15, %v1526_v18  ;;  %v1563_v16 = vsel %vm469_vm10, %v1558_v15, %v1560_v49  ;;  %v1764_v15 = vstv %s2115_s16 }
 0x21a   :  { %v1569_v37 = vadd.f32 %v1563_v16, %v1527_v57  ;;  %v1767_v55 = vmul.f32 0.0, %v1764_v15 }
 0x21c   :  { %v1600_v30 = vpop.permute.xlu1 %1599  ;;  %v1562_v36 = vpop.permute.xlu0 %1561 }
 0x21d   :  { %v1610_v43 = vadd.f32 %v1600_v30, %v1568_v45  ;;  %v1564_v10 = vsel %vm469_vm10, %v1560_v49, %v1562_v36 }
 0x21e   :  { %v1570_v23 = vadd.f32 %v1564_v10, %v1528_v33 }
 0x21f   :  { %v1806_v54 = vmax.f32 %v1610_v43, 0.0 }
 0x220   :  { %v1604_v39 = vpop.permute.xlu1 %1603  ;;  %v1602_v25 = vpop.permute.xlu0 %1601 }
 0x221   :  { %v1605_v3 = vsel %vm512_vm11, %v1600_v30, %v1602_v25  ;;  %v1606_v9 = vsel %vm512_vm11, %v1602_v25, %v1604_v39  ;;  %1812 = vrot.lane.b32.xlu1 %v1806_v54, %s2250_s30  ;;  %v1788_v30 = vmul.f32 0.0, %v1785_v2 }
 0x222   :  { %v1611_v62 = vadd.f32 %v1605_v3, %v1569_v37  ;;  %v1612_v29 = vadd.f32 %v1606_v9, %v1570_v23  ;;  %v1854_v37 = vstv %s2119_s19  ;;  %v1875_v3 = vstv %s2120_s20 }
 0x223   :  { %v1855_v23 = vmul.f32 0.0, %v1854_v37  ;;  %v1876_v9 = vmul.f32 0.0, %v1875_v3 }
 0x224   :  { %v1807_v21 = vmax.f32 %v1611_v62, 0.0  ;;  %v1808_v19 = vmax.f32 %v1612_v29, 0.0 }
 0x226   :  { %1816 = vrot.lane.b32.xlu1 %v1808_v19, %s2250_s30  ;;  %1814 = vrot.lane.b32.xlu0 %v1807_v21, %s2250_s30 }
 0x22a   :  { %1650 = vrot.lane.b32.xlu0 %v1644_v42, %s2242_s21  ;;  %v1896_v42 = vstv %s2121_s4 }
 0x267   :  { %v1622_v17 = vpop.permute.xlu0 %1621 }
 0x268   :  { %v1624_v51 = vpop.permute.xlu1 %1623 }
 0x269   :  { %v1628_v35 = vsel %vm1627_vm12, %v1622_v17, %v1624_v51 }
 0x26a   :  { %v1645_v22 = vmul.f32 %v1643_v44, %v1628_v35  ;;  %v1634_v6 = vsel %vm2315_vm0, %v1628_v35, 0.0  ;;  %v3515_v13 = vsel %vm2343_vm2, %v1628_v35, 0.0  ;;  %v1707_v41 = vmul.f32 %v1706_v59, %v1628_v35 }
 0x26b   :  { %v1666_v31 = vmul.f32 %v1664_v58, %v1634_v6  ;;  %v1687_v20 = vmul.f32 %v1685_v11, %v3515_v13  ;;  %v1723_v60 = vmul.f32 %v1722_v32, %v1634_v6  ;;  %v1744_v49 = vmul.f32 %v1743_v46, %v3515_v13 }
 0x26c   :  { %1652 = vrot.lane.b32.xlu1 %v1645_v22, %s2242_s21  ;;  %v1626_v52 = vpop.permute.xlu0 %1625  ;;  %v1765_v18 = vmul.f32 %v1764_v15, %v1628_v35  ;;  %v1786_v45 = vmul.f32 %v1785_v2, %v1634_v6 }
 0x26d   :  { %v1629_v0 = vsel %vm1627_vm12, %v1624_v51, %v1626_v52  ;;  %v1933_v52 = vstv %s2123_s22 }
 0x26e   :  { %v1646_v56 = vmul.f32 %v1643_v44, %v1629_v0  ;;  %v1635_v26 = vsel %vm2328_vm1, %v1629_v0, 0.0  ;;  %v3522_v27 = vsel %vm2356_vm3, %v1629_v0, 0.0  ;;  %v1708_v50 = vmul.f32 %v1706_v59, %v1629_v0 }
 0x26f   :  { %v1667_v38 = vmul.f32 %v1664_v58, %v1635_v26  ;;  %v1688_v61 = vmul.f32 %v1685_v11, %v3522_v27  ;;  %v1724_v24 = vmul.f32 %v1722_v32, %v1635_v26  ;;  %v1745_v40 = vmul.f32 %v1743_v46, %v3522_v27 }
 0x270   :  { %1671 = vrot.lane.b32.xlu1 %v1665_v47, %s2243_s24  ;;  %1654 = vrot.lane.b32.xlu0 %v1646_v56, %s2242_s21  ;;  %v1766_v1 = vmul.f32 %v1764_v15, %v1629_v0  ;;  %v1787_v63 = vmul.f32 %v1785_v2, %v1635_v26  ;;  %v1936_v56 = vmul.f32 0.0, %v1933_v52 }
 0x274   :  { %1673 = vrot.lane.b32.xlu0 %v1666_v31, %s2243_s24  ;;  %1675 = vrot.lane.b32.xlu1 %v1667_v38, %s2243_s24  ;;  %v1975_v31 = vstv %s2125_s23 }
 0x275   :  { %v1978_v11 = vmul.f32 0.0, %v1975_v31 }
 0x278   :  { %1692 = vrot.lane.b32.xlu0 %v1686_v48, %s2244_s1  ;;  %1694 = vrot.lane.b32.xlu1 %v1687_v20, %s2244_s1 }
 0x27c   :  { %1711 = vrot.lane.b32.xlu1 %v1707_v41, %s2245_s29  ;;  %1696 = vrot.lane.b32.xlu0 %v1688_v61, %s2244_s1 }
 0x280   :  { %1729 = vrot.lane.b32.xlu1 %v1723_v60, %s2246_s6  ;;  %1713 = vrot.lane.b32.xlu0 %v1708_v50, %s2245_s29 }
 0x284   :  { %1733 = vrot.lane.b32.xlu1 %v1725_v14, %s2246_s6  ;;  %1731 = vrot.lane.b32.xlu0 %v1724_v24, %s2246_s6 }
 0x288   :  { %1752 = vrot.lane.b32.xlu1 %v1745_v40, %s2247_s9  ;;  %1750 = vrot.lane.b32.xlu0 %v1744_v49, %s2247_s9 }
 0x28c   :  { %1771 = vrot.lane.b32.xlu1 %v1765_v18, %s2248_s12  ;;  %1754 = vrot.lane.b32.xlu0 %v1746_v12, %s2247_s9  ;;  %v1613_v12 = vstv %s3669_s3  ;;  %s2117_s3 = sld [smem:[#allocation9 + $0x9]] }
 0x290   :  { %1775 = vrot.lane.b32.xlu1 %v1767_v55, %s2248_s12  ;;  %1773 = vrot.lane.b32.xlu0 %v1766_v1, %s2248_s12 }
 0x293   :  { %v1813_v53 = vpop.permute.xlu1 %1812 }
 0x294   :  { %1794 = vrot.lane.b32.xlu1 %v1787_v63, %s2249_s14  ;;  %1792 = vrot.lane.b32.xlu0 %v1786_v45, %s2249_s14 }
 0x298   :  { %v1817_v36 = vpop.permute.xlu1 %1816  ;;  %1840 = vrot.lane.b32.xlu1 %v1834_v4, %s2242_s21  ;;  %1796 = vrot.lane.b32.xlu0 %v1788_v30, %s2249_s14  ;;  %v1815_v16 = vpop.permute.xlu0 %1814 }
 0x299   :  { %v1818_v43 = vsel %vm1627_vm12, %v1813_v53, %v1815_v16  ;;  %v1819_v10 = vsel %vm1627_vm12, %v1815_v16, %v1817_v36 }
 0x29a   :  { %v1836_v57 = vmul.f32 %v1833_v7, %v1819_v10  ;;  %v1835_v33 = vmul.f32 %v1833_v7, %v1818_v43  ;;  %v1824_v54 = vsel %vm2315_vm0, %v1818_v43, 0.0  ;;  %v1825_v25 = vsel %vm2328_vm1, %v1819_v10, 0.0 }
 0x29b   :  { %v1856_v39 = vmul.f32 %v1854_v37, %v1824_v54  ;;  %v1857_v62 = vmul.f32 %v1854_v37, %v1825_v25  ;;  %v3557_v29 = vsel %vm2343_vm2, %v1818_v43, 0.0  ;;  %v3561_v44 = vsel %vm2356_vm3, %v1819_v10, 0.0 }
 0x29c   :  { %1844 = vrot.lane.b32.xlu1 %v1836_v57, %s2242_s21  ;;  %1842 = vrot.lane.b32.xlu0 %v1835_v33, %s2242_s21  ;;  %s2122_s21 = sld [smem:[#allocation9 + $0xe]]  ;;  %v1878_v21 = vmul.f32 %v1875_v3, %v3561_v44  ;;  %v1877_v19 = vmul.f32 %v1875_v3, %v3557_v29  ;;  %v1898_v17 = vmul.f32 %v1896_v42, %v1819_v10  ;;  %v3585_v20 = vpop.permute.xlu0 %1650 }
 0x29d   :  { %v1897_v51 = vmul.f32 %v1896_v42, %v1818_v43  ;;  %v1934_v0 = vmul.f32 %v1933_v52, %v3557_v29  ;;  %v1935_v28 = vmul.f32 %v1933_v52, %v3561_v44  ;;  %v1976_v5 = vmul.f32 %v1975_v31, %v1824_v54 }
 0x29e   :  { %v1977_v48 = vmul.f32 %v1975_v31, %v1825_v25 }
 0x2a0   :  { %1861 = vrot.lane.b32.xlu0 %v1855_v23, %s2243_s24  ;;  %1863 = vrot.lane.b32.xlu1 %v1856_v39, %s2243_s24 }
 0x2a2   :  { %v1912_v35 = vstv %s2122_s21 }
 0x2a3   :  { %v1914_v22 = vmul.f32 %v1912_v35, %v1825_v25  ;;  %v1913_v58 = vmul.f32 %v1912_v35, %v1824_v54  ;;  %v1915_v47 = vmul.f32 0.0, %v1912_v35 }
 0x2a4   :  { %1865 = vrot.lane.b32.xlu0 %v1857_v62, %s2243_s24  ;;  %1882 = vrot.lane.b32.xlu1 %v1876_v9, %s2244_s1  ;;  %s2124_s24 = sld [smem:[#allocation9 + $0x10]] }
 0x2a8   :  { %1886 = vrot.lane.b32.xlu1 %v1878_v21, %s2244_s1  ;;  %1884 = vrot.lane.b32.xlu0 %v1877_v19, %s2244_s1  ;;  %s144_s1 = sld [smem:[#allocation9]] }
 0x2aa   :  { %v1954_v6 = vstv %s2124_s24 }
 0x2ab   :  { %v1956_v8 = vmul.f32 %v1954_v6, %v1819_v10  ;;  %v1955_v26 = vmul.f32 %v1954_v6, %v1818_v43  ;;  %v1957_v38 = vmul.f32 0.0, %v1954_v6 }
 0x2ac   :  { %1903 = vrot.lane.b32.xlu1 %v1898_v17, %s2245_s29  ;;  %1901 = vrot.lane.b32.xlu0 %v1897_v51, %s2245_s29  ;;  %v1826_v51 = vstv %s2117_s3 }
 0x2ad   :  { %v1828_v6 = vmul.f32 %v1826_v51, %v3557_v29 }
 0x2ae   :  { %v1636_v46 = vstv %s144_s1 }
 0x2af   :  { %v1638_v15 = vmul.f32 %v1636_v46, %v3515_v13  ;;  %v1639_v2 = vmul.f32 %v1636_v46, %v3522_v27 }
 0x2b0   :  { %1921 = vrot.lane.b32.xlu1 %v1914_v22, %s2246_s6  ;;  %1919 = vrot.lane.b32.xlu0 %v1913_v58, %s2246_s6 }
 0x2b1   :  { %v1641_v7 = vadd.f32 %v1638_v15, %v1613_v12  ;;  %v1642_v30 = vadd.f32 %v1639_v2, %v1613_v12 }
 0x2b4   :  { %1940 = vrot.lane.b32.xlu1 %v1934_v0, %s2247_s9  ;;  %1923 = vrot.lane.b32.xlu0 %v1915_v47, %s2246_s6 }
 0x2b8   :  { %1944 = vrot.lane.b32.xlu1 %v1936_v56, %s2247_s9  ;;  %1942 = vrot.lane.b32.xlu0 %v1935_v28, %s2247_s9  ;;  %s2252_s9 = smov [#allocation11]  }
 0x2bc   :  { %1963 = vrot.lane.b32.xlu1 %v1956_v8, %s2248_s12  ;;  %1961 = vrot.lane.b32.xlu0 %v1955_v26, %s2248_s12 }
 0x2c0   :  { %1982 = vrot.lane.b32.xlu1 %v1976_v5, %s2249_s14  ;;  %1965 = vrot.lane.b32.xlu0 %v1957_v38, %s2248_s12  ;;  %v1637_v5 = vmul.f32 0.0, %v1636_v46  ;;  %s2027_s12 = sshll.u32 %s2252_s9, 4  ;;  %s2028_s12 = int_to_ptr.vmem [resolvable:$true] %s2027_s12 }
 0x2c1   :  { %p2211_p10 = scmp.lt.s32.totalorder %s2028_s12, %s2028_s12 }
 0x2c4   :  { %1986 = vrot.lane.b32.xlu1 %v1978_v11, %s2249_s14  ;;  %1984 = vrot.lane.b32.xlu0 %v1977_v48, %s2249_s14  ;;  %s2206_s14 = scalar_lea.vmem %s2028_s12, 64 }
 0x2c5   :  { %p2207_p9 = scmp.ne.s32.totalorder %s2028_s12, %s2206_s14  ;;  %p2212_p11 = scmp.lt.s32.totalorder %s2206_s14, %s2206_s14 }
 0x2c7   :  { %p2213_p12 = por %p2212_p11, %p2211_p10 }
 0x2c9   :  { %p2214_p13 = pnand %p2213_p12, %p2207_p9 }
 0x2de   :  { %v3587_v34 = vpop.permute.xlu1 %1652 }
 0x2e2   :  { %v3589_v59 = vpop.permute.xlu1 %1671  ;;  %v1655_v41 = vpop.permute.xlu0 %1654 }
 0x2e3   :  { %v1657_v1 = vsel %vm221_vm4, %v3587_v34, %v1655_v41  ;;  %v1663_v43 = vadd.f32 %v1655_v41, %v1642_v30  ;;  %v1829_v41 = vmul.f32 %v1826_v51, %v3561_v44 }
 0x2e4   :  { %v1662_v45 = vadd.f32 %v1657_v1, %v1641_v7 }
 0x2e6   :  { %v1676_v61 = vpop.permute.xlu1 %1675  ;;  %v3591_v32 = vpop.permute.xlu0 %1673 }
 0x2e7   :  { %v1678_v63 = vsel %vm264_vm5, %v3591_v32, %v1676_v61  ;;  %v1684_v54 = vadd.f32 %v1676_v61, %v1663_v43  ;;  %v1677_v29 = vsel %vm264_vm5, %v3589_v59, %v3591_v32 }
 0x2e8   :  { %v1683_v36 = vadd.f32 %v1678_v63, %v1662_v45 }
 0x2ea   :  { %v3593_v60 = vpop.permute.xlu1 %1694  ;;  %v3595_v50 = vpop.permute.xlu0 %1692 }
 0x2eb   :  { %v1698_v2 = vsel %vm307_vm6, %v3595_v50, %v3593_v60 }
 0x2ee   :  { %v3597_v14 = vpop.permute.xlu1 %1711  ;;  %v1697_v24 = vpop.permute.xlu0 %1696 }
 0x2ef   :  { %v1699_v13 = vsel %vm307_vm6, %v3593_v60, %v1697_v24  ;;  %v1705_v39 = vadd.f32 %v1697_v24, %v1684_v54  ;;  %v1640_v24 = vadd.f32 %v1637_v5, %v1613_v12 }
 0x2f0   :  { %v1704_v10 = vadd.f32 %v1699_v13, %v1683_v36  ;;  %v1827_v36 = vmul.f32 0.0, %v1826_v51 }
 0x2f2   :  { %v3599_v40 = vpop.permute.xlu1 %1729  ;;  %v1714_v49 = vpop.permute.xlu0 %1713 }
 0x2f3   :  { %v1715_v16 = vsel %vm346_vm7, %v3597_v14, %v1714_v49  ;;  %v1721_v19 = vadd.f32 %v1714_v49, %v1705_v39 }
 0x2f4   :  { %v1720_v37 = vadd.f32 %v1715_v16, %v1704_v10 }
 0x2f6   :  { %v1734_v18 = vpop.permute.xlu1 %1733  ;;  %v1732_v55 = vpop.permute.xlu0 %1731 }
 0x2f7   :  { %v1735_v33 = vsel %vm383_vm8, %v3599_v40, %v1732_v55  ;;  %v1736_v62 = vsel %vm383_vm8, %v1732_v55, %v1734_v18  ;;  %v1656_v18 = vsel %vm221_vm4, %v3585_v20, %v3587_v34 }
 0x2f8   :  { %v1741_v25 = vadd.f32 %v1735_v33, %v1720_v37  ;;  %v1742_v35 = vadd.f32 %v1736_v62, %v1721_v19  ;;  %v1661_v55 = vadd.f32 %v1656_v18, %v1640_v24  ;;  %v3885_v24 = vlaneseq }
 0x2fa   :  { %v1753_v53 = vpop.permute.xlu1 %1752  ;;  %v1751_v4 = vpop.permute.xlu0 %1750  ;;  %v1682_v44 = vadd.f32 %v1677_v29, %v1661_v55 }
 0x2fb   :  { %v1756_v23 = vsel %vm426_vm9, %v1751_v4, %v1753_v53 }
 0x2fc   :  { %v1762_v42 = vadd.f32 %v1756_v23, %v1741_v25  ;;  %v1703_v7 = vadd.f32 %v1698_v2, %v1682_v44 }
 0x2fe   :  { %v1772_v57 = vpop.permute.xlu1 %1771  ;;  %v1755_v27 = vpop.permute.xlu0 %1754  ;;  %v1719_v45 = vadd.f32 %v3597_v14, %v1703_v7 }
 0x2ff   :  { %v1757_v17 = vsel %vm426_vm9, %v1753_v53, %v1755_v27 }
 0x300   :  { %v1763_v56 = vadd.f32 %v1757_v17, %v1742_v35  ;;  %v1740_v20 = vadd.f32 %v3599_v40, %v1719_v45 }
 0x302   :  { %v1776_v3 = vpop.permute.xlu1 %1775  ;;  %v1774_v9 = vpop.permute.xlu0 %1773  ;;  %v1761_v34 = vadd.f32 %v1751_v4, %v1740_v20 }
 0x303   :  { %v1777_v21 = vsel %vm469_vm10, %v1772_v57, %v1774_v9  ;;  %v1778_v47 = vsel %vm469_vm10, %v1774_v9, %v1776_v3 }
 0x304   :  { %v1783_v22 = vadd.f32 %v1777_v21, %v1762_v42  ;;  %v1784_v8 = vadd.f32 %v1778_v47, %v1763_v56  ;;  %v1782_v32 = vadd.f32 %v1772_v57, %v1761_v34 }
 0x306   :  { %v1795_v58 = vpop.permute.xlu1 %1794  ;;  %v1793_v52 = vpop.permute.xlu0 %1792 }
 0x307   :  { %v1798_v0 = vsel %vm512_vm11, %v1793_v52, %v1795_v58  ;;  %v1803_v16 = vadd.f32 %v1793_v52, %v1782_v32 }
 0x308   :  { %v1804_v28 = vadd.f32 %v1798_v0, %v1783_v22 }
 0x309   :  { %v1830_v50 = vadd.f32 %v1827_v36, %v1803_v16 }
 0x30a   :  { %v1841_v26 = vpop.permute.xlu1 %1840  ;;  %v1797_v31 = vpop.permute.xlu0 %1796  ;;  %v1831_v38 = vadd.f32 %v1828_v6, %v1804_v28  ;;  %v2251_v28 = vmov 1983009808  }
 0x30b   :  { %v1799_v11 = vsel %vm512_vm11, %v1795_v58, %v1797_v31  ;;  %v2001_v6 = vunpack.c.l.s4 %v2251_v28 }
 0x30c   :  { %v1805_v48 = vadd.f32 %v1799_v11, %v1784_v8 }
 0x30d   :  { %v2002_v55 = vunpack.c.0.s8 %v2001_v6 }
 0x30e   :  { %v1832_v61 = vadd.f32 %v1829_v41, %v1805_v48  ;;  %v1845_v49 = vpop.permute.xlu1 %1844  ;;  %v1843_v15 = vpop.permute.xlu0 %1842 }
 0x30f   :  { %v1846_v60 = vsel %vm221_vm4, %v1841_v26, %v1843_v15  ;;  %v1847_v54 = vsel %vm221_vm4, %v1843_v15, %v1845_v49 }
 0x310   :  { %v1851_v37 = vadd.f32 %v1846_v60, %v1830_v50  ;;  %v1853_v23 = vadd.f32 %v1845_v49, %v1832_v61  ;;  %v1852_v57 = vadd.f32 %v1847_v54, %v1831_v38  ;;  %v2004_v49 = vshrl.u32 %v3885_v24, 7 }
 0x312   :  { %v1864_v1 = vpop.permute.xlu1 %1863  ;;  %v1862_v46 = vpop.permute.xlu0 %1861 }
 0x313   :  { %v1867_v14 = vsel %vm264_vm5, %v1862_v46, %v1864_v1 }
 0x314   :  { %v1872_v39 = vadd.f32 %v1867_v14, %v1851_v37 }
 0x316   :  { %v1883_v12 = vpop.permute.xlu1 %1882  ;;  %v1866_v63 = vpop.permute.xlu0 %1865 }
 0x317   :  { %v1868_v40 = vsel %vm264_vm5, %v1864_v1, %v1866_v63  ;;  %v1874_v21 = vadd.f32 %v1866_v63, %v1853_v23 }
 0x318   :  { %v1873_v62 = vadd.f32 %v1868_v40, %v1852_v57 }
 0x31a   :  { %v1887_v53 = vpop.permute.xlu1 %1886  ;;  %v1885_v13 = vpop.permute.xlu0 %1884 }
 0x31b   :  { %v1888_v4 = vsel %vm307_vm6, %v1883_v12, %v1885_v13  ;;  %v1889_v9 = vsel %vm307_vm6, %v1885_v13, %v1887_v53  ;;  %v1895_v17 = vadd.f32 %v1887_v53, %v1874_v21  ;;  %v2005_v53 = vsub.s32 %v2002_v55, %v2004_v49 }
 0x31c   :  { %v1893_v19 = vadd.f32 %v1888_v4, %v1872_v39  ;;  %v1894_v51 = vadd.f32 %v1889_v9, %v1873_v62 }
 0x31e   :  { %v1904_v30 = vpop.permute.xlu1 %1903  ;;  %v1902_v59 = vpop.permute.xlu0 %1901 }
 0x31f   :  { %v1905_v42 = vsel %vm346_vm7, %v1902_v59, %v1904_v30  ;;  %v1911_v47 = vadd.f32 %v1904_v30, %v1895_v17  ;;  %v1909_v0 = vadd.f32 %v1902_v59, %v1893_v19 }
 0x320   :  { %v1910_v56 = vadd.f32 %v1905_v42, %v1894_v51 }
 0x322   :  { %v1922_v43 = vpop.permute.xlu1 %1921  ;;  %v1920_v10 = vpop.permute.xlu0 %1919 }
 0x323   :  { %v1925_v58 = vsel %vm383_vm8, %v1920_v10, %v1922_v43  ;;  %v1930_v31 = vadd.f32 %v1920_v10, %v1909_v0 }
 0x324   :  { %v1931_v38 = vadd.f32 %v1925_v58, %v1910_v56 }
 0x326   :  { %v1941_v27 = vpop.permute.xlu1 %1940  ;;  %v1924_v33 = vpop.permute.xlu0 %1923 }
 0x327   :  { %v1926_v52 = vsel %vm383_vm8, %v1922_v43, %v1924_v33  ;;  %v1951_v15 = vadd.f32 %v1941_v27, %v1930_v31 }
 0x328   :  { %v1932_v5 = vadd.f32 %v1926_v52, %v1911_v47 }
 0x32a   :  { %v1945_v25 = vpop.permute.xlu1 %1944  ;;  %v1943_v3 = vpop.permute.xlu0 %1942 }
 0x32b   :  { %v1946_v8 = vsel %vm426_vm9, %v1941_v27, %v1943_v3  ;;  %v1947_v26 = vsel %vm426_vm9, %v1943_v3, %v1945_v25 }
 0x32c   :  { %v1952_v18 = vadd.f32 %v1946_v8, %v1931_v38  ;;  %v1953_v29 = vadd.f32 %v1947_v26, %v1932_v5 }
 0x32e   :  { %v1964_v35 = vpop.permute.xlu1 %1963  ;;  %v1962_v22 = vpop.permute.xlu0 %1961 }
 0x32f   :  { %v1967_v41 = vsel %vm469_vm10, %v1962_v22, %v1964_v35  ;;  %v1972_v1 = vadd.f32 %v1962_v22, %v1951_v15 }
 0x330   :  { %v1973_v46 = vadd.f32 %v1967_v41, %v1952_v18 }
 0x332   :  { %v1983_v11 = vpop.permute.xlu1 %1982  ;;  %v1966_v48 = vpop.permute.xlu0 %1965 }
 0x333   :  { %v1968_v61 = vsel %vm469_vm10, %v1964_v35, %v1966_v48  ;;  %v1993_v45 = vadd.f32 %v1983_v11, %v1972_v1 }
 0x334   :  { %v1974_v2 = vadd.f32 %v1968_v61, %v1953_v29 }
 0x336   :  { %v1987_v44 = vpop.permute.xlu1 %1986  ;;  %v1985_v7 = vpop.permute.xlu0 %1984 }
 0x337   :  { %v1988_v12 = vsel %vm512_vm11, %v1983_v11, %v1985_v7  ;;  %v1989_v63 = vsel %vm512_vm11, %v1985_v7, %v1987_v44 }
 0x338   :  { %v1994_v13 = vadd.f32 %v1988_v12, %v1973_v46  ;;  %v1995_v20 = vadd.f32 %v1989_v63, %v1974_v2 }
 0x33a   :  { %v1999_v34 = vcombine.low %v1993_v45, %v1994_v13  ;;  %v2013_v59 = vrot.slane %v1995_v20, %v2005_v53 }
 0x33c   :  { %v2006_v30 = vrot.slane %v1999_v34, %v2005_v53 }
 0x33e   :  { %v2014_v32 = vcombine.low %v2006_v30, %v2013_v59 }
 0x340   :  { %2015 = vrot.lane.b32.xlu0 %v2014_v32, %s2250_s30 }
 0x3b2   :  { %v2016_v36 = vpop.permute.xlu0 %2015 }
 0x3b3   :  { %v2017_v16 = vrot.slane %v2016_v36, 2 }
 0x3b5   :  { %v2018_v43 = vsel %vm1627_vm12, %v2016_v36, %v2017_v16 }
 0x3b6   :  { %2020 = vst [vmem:[#allocation11] sm:$0xf] %v2018_v43 }
 0x3b7   :  { %2217 = shalt.err (!%p2214_p13)
}
 0x3b8   :  { %s2218_s0 = scalar_lea.hbm %s3671_s5, 64 }
 0x3b9   :  { %p2219_p0 = scmp.ne.s32.totalorder %s3671_s5, %s2218_s0  ;;  %p2222_p1 = scmp.lt.u32.totalorder %s2218_s0, %s3671_s5 }
 0x3bb   :  { %p2224_p2 = pnand %p2222_p1, %p2219_p0 }
 0x3bd   :  { %2227 = shalt.err (!%p2224_p2)
}
 0x3be   :  { %2030 = dma.vmem_to_hbm [thread:$0]  %s2028_s12, 64, %s3671_s5, [#allocation5]  }
 0x3bf   :  { %2234 = dma.done.wait [#allocation5], 64  }
 0x3c0   :  { %2235 = vsyncadd [#allocation5], 4294967232 }
 0x3c1   :  { %2034 = vsyncpa [#allocation4], 1 }
 0x3c2   :  { %2035 = vsyncpa [#allocation5], 1 }
 0x3c3   :  { %2036 = vsyncpa [#allocation6], 1 }
 0x3c4   :  { %2037 = vsyncpa [#allocation8], 1 }

</bundles_post_ra>
